<compile_context>
chip_gen: v7x
topology: tpu7x:2x2x1
jax: 0.10.0
libtpu: 0.0.40
codegen_flags: <defaults>
</compile_context>

<pallas_src>
import functools

import jax
import jax.numpy as jnp
import numpy as np
from jax.experimental import pallas as pl
from jax.experimental.pallas import tpu as pltpu


def _expand_kernel(x_ref, o_ref, *, s, c_out, tH, W, rh):
    # x_ref: (C, tH, W) with C = s*s*c_out
    # o_ref: (c_out, tH, s*s*W)  ==  (c_out, tH*s, W*s) in contiguous memory
    Ws = W * s
    n_chunks = tH // rh

    def emit(row0):
        # Handle `rh` rows of the tile; live working set ~ 2*(C/s)*rh*W elems.
        for i in range(s):
            cols = []
            for j in range(s):
                base = (i * s + j) * c_out
                cols.append(x_ref[base:base + c_out, pl.ds(row0, rh), :])
            # Interleave along W on the lane dim: (c_out, rh, W, s) -> (c_out, rh, W*s)
            row = jnp.stack(cols, axis=-1).reshape(c_out, rh, Ws)
            # Row-offset i of depth-to-space lands at lane slice [i*Ws, (i+1)*Ws)
            # of the (H, s*s*W) output view -> contiguous store, no sublane shuffle.
            o_ref[:, pl.ds(row0, rh), i * Ws:(i + 1) * Ws] = row.astype(o_ref.dtype)

    if n_chunks == 1:
        emit(0)
    else:
        # fori_loop (not a Python loop) so per-chunk live ranges stay bounded
        # and the interleave intermediates do not spill to VMEM.
        def body(c, carry):
            emit(pl.multiple_of(c * rh, rh))
            return carry

        jax.lax.fori_loop(0, n_chunks, body, 0)


def _vmem_capacity_bytes():
    try:
        return int(pltpu.get_tpu_info().vmem_capacity_bytes)
    except Exception:
        return 64 * 1024 * 1024  # conservative default (v7x per-TC VMEM)


def _pick_block_h(N, H, C, W, itemsize, sub, target_bytes,
                  min_steps=8, min_run_bytes=2048):
    """Tile height that divides H, is a multiple of the sublane quantum (or the
    full H as layout-legal fallback), keeps per-step (in + out) bytes within
    target, prefers long DMA bursts but leaves enough parallel grid steps."""
    cands = sorted({t for t in range(sub, H + 1, sub) if H % t == 0} | {H})
    fits = [t for t in cands if 2 * C * t * W * itemsize <= target_bytes]
    if not fits:
        fits = cands[:1]
    best = fits[-1]
    # If the big tile collapses the grid (no pipeline overlap / nothing for the
    # second v7x TensorCore), back off while DMA runs stay long enough.
    if N * (H // best) < min_steps:
        for t in reversed(fits):
            if N * (H // t) >= min_steps and t * W * itemsize >= min_run_bytes:
                best = t
                break
    return best


def _pick_chunk_rows(tH, C, W, itemsize, s, sub, budget=128 * 1024):
    """Rows per in-kernel interleave chunk so the live working set
    (~2*(C/s)*rh*W*itemsize bytes) stays within ~half the vreg file."""
    if tH % sub:
        return tH  # full-H fallback tile: keep a single chunk
    per_row = 2 * (C // s) * W * itemsize
    rh = max(sub, (budget // max(per_row, 1)) // sub * sub)
    rh = min(rh, tH)
    while tH % rh:
        rh -= sub
    return max(rh, sub)


def expand(x, gain=2, *, block_h=None):
    """Pallas equivalent of Expand(gain).forward(x) for NCHW input."""
    N, C, H, W = x.shape
    s = int(gain)
    assert C % (s * s) == 0, "C must be divisible by gain**2"
    c_out = C // (s * s)
    itemsize = np.dtype(x.dtype).itemsize

    # Sublane quantum for the second-to-last block dim: 8 (4B) / 16 (2B) / 32 (1B).
    sub = max(8, 32 // itemsize)

    vmem_cap = _vmem_capacity_bytes()
    # Per-step (in + out) budget ~ VMEM/8 -> double-buffered ~ VMEM/4.
    target_bytes = int(min(16 << 20, max(2 << 20, vmem_cap // 8)))

    if block_h is None:
        block_h = _pick_block_h(N, H, C, W, itemsize, sub, target_bytes)
    assert H % block_h == 0 and (block_h == H or block_h % sub == 0), (
        "block_h must divide H and be a multiple of the sublane quantum")
    tH = block_h
    Ws2 = s * s * W
    rh = _pick_chunk_rows(tH, C, W, itemsize, s, sub)

    kernel = functools.partial(_expand_kernel, s=s, c_out=c_out, tH=tH, W=W, rh=rh)

    # Double-buffered (in + out) blocks plus headroom, capped well below
    # physical VMEM (v7x has only 64 MiB per TensorCore).
    blk_bytes = 2 * C * tH * W * itemsize
    need = 2 * blk_bytes + (2 << 20)
    soft_cap = (vmem_cap * 5) // 8
    vmem_limit = int(max(16 << 20, min(need, soft_cap)))
    if need > soft_cap:  # oversized fallback tile (H with no aligned divisor): best effort
        vmem_limit = int(min(need, (vmem_cap * 9) // 10))

    y = pl.pallas_call(
        kernel,
        out_shape=jax.ShapeDtypeStruct((N, c_out, H, Ws2), x.dtype),
        grid=(N, H // tH),
        in_specs=[pl.BlockSpec((None, C, tH, W), lambda n, h: (n, 0, h, 0))],
        out_specs=pl.BlockSpec((None, c_out, tH, Ws2), lambda n, h: (n, 0, h, 0)),
        compiler_params=pltpu.CompilerParams(
            dimension_semantics=("parallel", "parallel"),
            vmem_limit_bytes=vmem_limit),
        cost_estimate=pl.CostEstimate(
            flops=0, transcendentals=0,
            bytes_accessed=2 * N * C * H * W * itemsize),
    )(x)

    # (N, c_out, H, s*s*W) and (N, c_out, H*s, W*s) are the same contiguous
    # buffer (row-major), so this reshape is free.
    return y.reshape(N, c_out, H * s, W * s)


def _expand_ref(x, gain=2):
    """Pure-JAX reference mirroring the PyTorch view/permute/view exactly."""
    N, C, H, W = x.shape
    s = gain
    xr = x.reshape(N, s, s, C // s ** 2, H, W)
    xr = jnp.transpose(xr, (0, 3, 4, 1, 5, 2))
    return xr.reshape(N, C // s ** 2, H * s, W * s)


if __name__ == "__main__":
    key = jax.random.PRNGKey(0)
    k0, k1 = jax.random.split(key)

    # Small NCHW input: batch=2, channels=8, spatial=16 (gain=2 -> C_out=2).
    x = jax.random.normal(k0, (2, 8, 16, 16), dtype=jnp.float32)
    y_ref = _expand_ref(x, gain=2)

    # Default (auto-picked tile height).
    y = expand(x, gain=2)
    jax.block_until_ready(y)
    np.testing.assert_allclose(np.asarray(y), np.asarray(y_ref), rtol=0, atol=0)

    # Explicit H-tiled pipeline path (grid=(N, H//tH) with tH < H).
    y_tiled = expand(x, gain=2, block_h=8)
    jax.block_until_ready(y_tiled)
    np.testing.assert_allclose(np.asarray(y_tiled), np.asarray(y_ref), rtol=0, atol=0)

    # Larger shape exercising the lane-aligned store fast path (W*s % 128 == 0),
    # the multi-step parallel grid, and the in-kernel row-chunked interleave.
    x2 = jax.random.normal(k1, (2, 8, 64, 512), dtype=jnp.float32)
    y2 = expand(x2, gain=2)
    jax.block_until_ready(y2)
    np.testing.assert_allclose(np.asarray(y2), np.asarray(_expand_ref(x2, gain=2)),
                               rtol=0, atol=0)

    print("KERNEL_OK")
</pallas_src>

<mosaic_0001>
module attributes {stable_mosaic.version = 11 : i64} {
  func.func @_expand_kernel(%arg0: i32, %arg1: i32, %arg2: memref<1x8x16x16xf32, #tpu.memory_space<vmem>>, %arg3: memref<1x2x16x64xf32, #tpu.memory_space<vmem>>) attributes {dimension_semantics = [#tpu.dimension_semantics<parallel>, #tpu.dimension_semantics<parallel>], iteration_bounds = array<i64: 2, 1>, scalar_prefetch = 0 : i64, scratch_operands = 0 : i64, tpu.core_type = #tpu.core_type<tc>, window_params = [{transform_indices = @transform_0, window_bounds = array<i64: 1, 8, 16, 16>}, {transform_indices = @transform_1, window_bounds = array<i64: 1, 2, 16, 64>}]} {
    %c0 = arith.constant 0 : index
    %c0_0 = arith.constant 0 : index
    %c0_1 = arith.constant 0 : index
    %c0_2 = arith.constant 0 : index
    %0 = vector.load %arg2[%c0, %c0_0, %c0_1, %c0_2] : memref<1x8x16x16xf32, #tpu.memory_space<vmem>>, vector<1x2x16x16xf32>
    %1 = vector.shape_cast %0 : vector<1x2x16x16xf32> to vector<2x16x16xf32>
    %c0_3 = arith.constant 0 : index
    %c2 = arith.constant 2 : index
    %c0_4 = arith.constant 0 : index
    %c0_5 = arith.constant 0 : index
    %2 = vector.load %arg2[%c0_3, %c2, %c0_4, %c0_5] : memref<1x8x16x16xf32, #tpu.memory_space<vmem>>, vector<1x2x16x16xf32>
    %3 = vector.shape_cast %2 : vector<1x2x16x16xf32> to vector<2x16x16xf32>
    %4 = vector.shape_cast %1 : vector<2x16x16xf32> to vector<2x16x16x1xf32>
    %5 = vector.shape_cast %3 : vector<2x16x16xf32> to vector<2x16x16x1xf32>
    %6 = tpu.concatenate %4, %5 in 3 : vector<2x16x16x1xf32>, vector<2x16x16x1xf32> -> vector<2x16x16x2xf32>
    %7 = vector.shape_cast %6 : vector<2x16x16x2xf32> to vector<2x16x32xf32>
    %c0_6 = arith.constant 0 : index
    %c0_7 = arith.constant 0 : index
    %c0_8 = arith.constant 0 : index
    %c0_9 = arith.constant 0 : index
    %8 = vector.load %arg3[%c0_6, %c0_7, %c0_8, %c0_9] : memref<1x2x16x64xf32, #tpu.memory_space<vmem>>, vector<1x2x16x32xf32>
    %9 = vector.shape_cast %8 : vector<1x2x16x32xf32> to vector<2x16x32xf32>
    %10 = vector.shape_cast %7 : vector<2x16x32xf32> to vector<1x2x16x32xf32>
    tpu.vector_store %arg3[%c0_6, %c0_7, %c0_8, %c0_9], %10 {strides = array<i32>} : memref<1x2x16x64xf32, #tpu.memory_space<vmem>>, vector<1x2x16x32xf32>,
    %c0_10 = arith.constant 0 : index
    %c4 = arith.constant 4 : index
    %c0_11 = arith.constant 0 : index
    %c0_12 = arith.constant 0 : index
    %11 = vector.load %arg2[%c0_10, %c4, %c0_11, %c0_12] : memref<1x8x16x16xf32, #tpu.memory_space<vmem>>, vector<1x2x16x16xf32>
    %12 = vector.shape_cast %11 : vector<1x2x16x16xf32> to vector<2x16x16xf32>
    %c0_13 = arith.constant 0 : index
    %c6 = arith.constant 6 : index
    %c0_14 = arith.constant 0 : index
    %c0_15 = arith.constant 0 : index
    %13 = vector.load %arg2[%c0_13, %c6, %c0_14, %c0_15] : memref<1x8x16x16xf32, #tpu.memory_space<vmem>>, vector<1x2x16x16xf32>
    %14 = vector.shape_cast %13 : vector<1x2x16x16xf32> to vector<2x16x16xf32>
    %15 = vector.shape_cast %12 : vector<2x16x16xf32> to vector<2x16x16x1xf32>
    %16 = vector.shape_cast %14 : vector<2x16x16xf32> to vector<2x16x16x1xf32>
    %17 = tpu.concatenate %15, %16 in 3 : vector<2x16x16x1xf32>, vector<2x16x16x1xf32> -> vector<2x16x16x2xf32>
    %18 = vector.shape_cast %17 : vector<2x16x16x2xf32> to vector<2x16x32xf32>
    %c0_16 = arith.constant 0 : index
    %c0_17 = arith.constant 0 : index
    %c0_18 = arith.constant 0 : index
    %c32 = arith.constant 32 : index
    %19 = vector.load %arg3[%c0_16, %c0_17, %c0_18, %c32] : memref<1x2x16x64xf32, #tpu.memory_space<vmem>>, vector<1x2x16x32xf32>
    %20 = vector.shape_cast %19 : vector<1x2x16x32xf32> to vector<2x16x32xf32>
    %21 = vector.shape_cast %18 : vector<2x16x32xf32> to vector<1x2x16x32xf32>
    tpu.vector_store %arg3[%c0_16, %c0_17, %c0_18, %c32], %21 {strides = array<i32>} : memref<1x2x16x64xf32, #tpu.memory_space<vmem>>, vector<1x2x16x32xf32>,
    return
  }
  func.func @transform_0(%arg0: i32, %arg1: i32) -> (i32, i32, i32, i32) {
    %c0_i32 = arith.constant 0 : i32
    %c0_i32_0 = arith.constant 0 : i32
    %c0_i32_1 = arith.constant 0 : i32
    return %arg0, %c0_i32, %arg1, %c0_i32_0 : i32, i32, i32, i32
  }
  func.func @transform_1(%arg0: i32, %arg1: i32) -> (i32, i32, i32, i32) {
    %c0_i32 = arith.constant 0 : i32
    %c0_i32_0 = arith.constant 0 : i32
    %c0_i32_1 = arith.constant 0 : i32
    return %arg0, %c0_i32, %arg1, %c0_i32_0 : i32, i32, i32, i32
  }
}

</mosaic_0001>

<bundles_post_ra>
// kernel: tpu_custom_call.1
= control target key start
LH: loop header
LB: loop body
LE: loop exit
PB: predicated region body
PF: predicated region fallthrough
CT: control target
= control target key end

     0   :  { %6 = vsyncpa [#allocation3], 0  ;;  %s7537_s0 = inlined_call_operand.hbm [shape: f32[2,8,16,16], index: 0, kind: input, shape index: {}]   ;;  %s7538_s1 = inlined_call_operand.hbm [shape: f32[2,2,16,64], index: 1, kind: output, shape index: {}]  }
   0x1   :  { %8 = vsyncpa [#allocation3 + $0x1], 0 }
   0x2   :  { %9 = vsyncpa [#allocation4], 0 }
   0x3   :  { %11 = vsyncpa [#allocation4 + $0x1], 0  ;;  %s4890_s6 = smov 0   ;;  %s4892_s7 = smov 0  }
   0x4   :  { %s4894_s8 = smov 0   ;;  %s4896_s9 = smov 0  }
   0x5   :  { %s4898_s10 = smov 0   ;;  %s4900_s11 = smov 0  }
   0x6 LB: > { %s4631_s12 = sadd.s32 4294967295, %s4855_s11   ;;  %s4632_s13 = sadd.s32 4294967294, %s4855_s11   ;;  %s4855_s11 = sphi %s4900_s11, %s17_s11   ;;  %s4851_s10 = sphi %s4898_s10, %s7916_s10   ;;  %s4847_s9 = sphi %s4896_s9, %s7915_s9   ;;  %s4843_s8 = sphi %s4894_s8, %s7914_s8   ;;  %s4839_s7 = sphi %s4892_s7, %s7913_s7   ;;  %s4835_s6 = sphi %s4890_s6, %s7912_s6  }
   0x7   : > { %s29_s14 = sadd.s32 1, %s4851_s10  ;;  %s38_s15 = sadd.s32 1, %s4843_s8 }
   0x8   : > { %p31_p0 = scmp.ge.s32.totalorder %s29_s14, 2  ;;  %p45_p1 = scmp.ne.s32.totalorder %s4843_s8, %s4839_s7 }
   0x9   : > { %p46_p2 = scmp.eq.s32.totalorder %s4855_s11, 0  ;;  %p51_p3 = scmp.ne.s32.totalorder %s4839_s7, %s4835_s6 }
   0xa   : > { %s7918_s14 = smov (%p31_p0, %s29_s14), 0  ;;  %p52_p5 = scmp.eq.s32.totalorder %s4631_s12, 0 }
   0xb   : > { %p4931_p4 = por %p46_p2, %p45_p1  ;;  %s33_s17 = ssub.s32 %s4851_s10, %s7918_s14 }
   0xc   : > { %p77_p6 = scmp.eq.s32.totalorder %s4631_s12, 1  ;;  %p36_p7 = scmp.eq.s32.totalorder %s33_s17, 0 }
   0xd   : > { %p4937_p8 = por %p52_p5, %p51_p3  ;;  %p83_p10 = scmp.eq.s32.totalorder %s4632_s13, 1 }
   0xe   : > { %p4941_p9 = por %p77_p6, %p45_p1  ;;  %p4672_p13 = scmp.lt.s32.totalorder %s4855_s11, 2 }
   0xf   : > { %s4946_s20 = scalar_select %p36_p7, %s4843_s8, %s38_s15  }
  0x10   : > { %s7593_s19 = scalar_select %p4941_p9, 1, 0 }
  0x11   : > { %p4948_p11 = por %p83_p10, %p51_p3  ;;  %s103_s22 = sand.u32 1, %s4843_s8  }
  0x12   : > { %s4635_s23 = sshll.u32 %s103_s22, 7  ;;  %s4658_s24 = sshll.u32 %s4851_s10, 11 }
  0x13   : > { %s7594_s21 = scalar_select %p4948_p11, 1, 0 }
  0x14   : > { %s4959_s27 = scalar_lea.hbm %s7537_s0, %s4658_s24  ;;  %s107_s28 = scalar_lea.vmem [#allocation2], %s4635_s23 }
  0x15   : > { %s116_s29 = sshll.u32 %s107_s28, 4  ;;  %p4965_p0 = pnand %p4672_p13, %p4931_p4  ;;  %s4961_s29 = int_to_ptr.vmem [resolvable:$true] %s116_s29 }
  0x16   : > { %s4970_s2 = scalar_lea.sflag [#allocation3], %s103_s22  ;;  %s4743_s3 = scalar_lea.hbm %s4959_s27, 2048 }
  0x17   : > { %p4744_p2 = scmp.ne.s32.totalorder %s4959_s27, %s4743_s3  ;;  %p4745_p3 = pneg %p4965_p0 }
  0x18   : > { %s4748_s12 = scalar_lea.hbm %s7537_s0, 4096  ;;  %p4749_p4 = scmp.lt.u32.totalorder %s4959_s27, %s7537_s0 }
  0x19   : > { %p4746_p5 = pnand %p4745_p3, %p4744_p2  ;;  %p4750_p7 = scmp.lt.u32.totalorder %s4748_s12, %s4743_s3 }
  0x1a   : > { %p4752_p13 = scmp.lt.u32.totalorder %s4743_s3, %s4959_s27 }
  0x1b   : > { %p4747_p6 = pneg %p4746_p5  ;;  %p4751_p10 = por %p4750_p7, %p4749_p4 }
  0x1d   : > { %p4753_p12 = por %p4752_p13, %p4751_p10 }
  0x1f   : > { %p4754_p1 = pnand %p4753_p12, %p4747_p6 }
  0x21   : > { %4757 = shalt.err (!%p4754_p1)
}
  0x22   : > { %s4758_s16 = scalar_lea.vmem %s4961_s29, 2048  ;;  %s4857_s17 = smov [#allocation2]  }
  0x23   : > { %p4759_p2 = scmp.ne.s32.totalorder %s4961_s29, %s4758_s16  ;;  %s4763_s22 = sshll.u32 %s4857_s17, 4  ;;  %s4764_s22 = int_to_ptr.vmem [resolvable:$false] %s4763_s22 }
  0x24   : > { %s4765_s23 = scalar_lea.vmem %s4764_s22, 4096  ;;  %p4766_p9 = scmp.lt.s32.totalorder %s4961_s29, %s4764_s22 }
  0x25   : > { %p4761_p5 = pnand %p4759_p2, %p4745_p3  ;;  %p4767_p4 = scmp.lt.s32.totalorder %s4765_s23, %s4758_s16 }
  0x27   : > { %p4762_p11 = pneg %p4761_p5  ;;  %p4768_p7 = por %p4767_p4, %p4766_p9 }
  0x29   : > { %p4769_p10 = pnand %p4768_p7, %p4762_p11 }
  0x2b   : > { %4772 = shalt.err (!%p4769_p10)
}
  0x2c   : > { %s4858_s24 = smov 128   ;;  %s4859_s25 = smov 8  }
  0x2d   : > { %4667 = dma.hbm_to_vmem [thread:$0]  (!%p4965_p0), %s4959_s27, 2048, %s4961_s29, %s4970_s2, %s4858_s24, %s4858_s24, %s4859_s25  }
  0x2e   : > { %p124_p12 = scmp.lt.s32.totalorder %s4855_s11, 3  ;;  %p7596_p1 = scmp.ge.s32.totalorder %s4855_s11, 1 }
  0x30   : > { %p125_p3 = pnand %p7596_p1, %p124_p12 }
  0x32   : > { %128 = sbr.rel (%p125_p3) target bundleno = 1263 (0x4ef), region = 24 }
  0x39   : > { %s5002_s26 = sand.u32 1, %s4839_s7  }
  0x3a   : > { %s4639_s28 = sshll.u32 %s5002_s26, 7  ;;  %s131_s3 = scalar_lea.sflag [#allocation3], %s5002_s26 }
  0x3b   : > { %s5006_s4 = scalar_lea.vmem [#allocation2], %s4639_s28 }
  0x3c   : > { %4826 = dma.done.wait (%p4937_p8), %s131_s3, 2048  }
  0x3d   : > { %4828 = vsyncadd (%p4937_p8), %s131_s3, 4294965248  ;;  %v164_v0 = vlaneseq  ;;  %v155_v4 = vld [vmem:[%s5006_s4] sm:$0xff]  ;;  %v156_v19 = vld [vmem:[%s5006_s4 + $0x8] sm:$0xff]  ;;  %vm7572_vm0 = vcmask 7168   ;;  %s4862_s18 = smov 2   ;;  %s4863_s27 = smov 4  }
  0x3e   : > { %v157_v28 = vld [vmem:[%s5006_s4 + $0x10] sm:$0xff]  ;;  %v158_v37 = vld [vmem:[%s5006_s4 + $0x18] sm:$0xff]  ;;  %v4641_v50 = vld [vmem:[%s5006_s4 + $0x20] sm:$0xff]  ;;  %s4864_s29 = smov 6   ;;  %s4865_s30 = smov 8   ;;  %vm2261_vm1 = vcmask 15360  }
  0x3f   : > { %v5012_v1 = vshrl.u32 %v164_v0, 7  ;;  %s4866_s2 = smov 10   ;;  %s4867_s5 = smov 12   ;;  %vm2266_vm2 = vcmask 31744   ;;  %vm2271_vm3 = vcmask 48128   ;;  %vm2276_vm4 = vcmask 64512  }
  0x40   : > { %s4868_s12 = smov 14   ;;  %s4869_s13 = smov 16   ;;  %vm2281_vm5 = vcmask 80896   ;;  %vm2286_vm6 = vcmask 97280   ;;  %vm2291_vm7 = vcmask 113664   ;;  %vm2296_vm8 = vcmask 130048  }
  0x41   : > { %v5015_v2 = vsub.s32 1, %v5012_v1  ;;  %v5018_v3 = vsub.s32 0, %v5012_v1  ;;  %v5024_v7 = vsub.s32 2, %v5012_v1  ;;  %v5028_v9 = vsub.s32 3, %v5012_v1  ;;  %s4870_s15 = smov 18   ;;  %s4871_s16 = smov 20  }
  0x42   : > { %v5032_v11 = vsub.s32 4, %v5012_v1  ;;  %v5036_v13 = vsub.s32 5, %v5012_v1  ;;  %v5040_v15 = vsub.s32 6, %v5012_v1  ;;  %v5044_v17 = vsub.s32 7, %v5012_v1  ;;  %s4872_s17 = smov 22   ;;  %s4873_s22 = smov 24  }
  0x43   : > { %7597 = vst [vmem:[#allocation8_spill] sm:$0xff] %v5015_v2  ;;  %7598 = vst [vmem:[#allocation9_spill] sm:$0xff] %v5018_v3  ;;  %v178_v5 = vrot.slane %v155_v4, %v5015_v2  ;;  %v167_v6 = vrot.slane %v155_v4, %v5018_v3  ;;  %v189_v8 = vrot.slane %v155_v4, %v5024_v7  ;;  %s4874_s23 = smov 26   ;;  %s4875_s24 = smov 28   ;;  %vm2301_vm9 = vcmask 146432  }
  0x44   : > { %7599 = vst [vmem:[#allocation10_spill] sm:$0xff] %v5024_v7  ;;  %7600 = vst [vmem:[#allocation11_spill] sm:$0xff] %v5028_v9  ;;  %v200_v10 = vrot.slane %v155_v4, %v5028_v9  ;;  %v211_v12 = vrot.slane %v155_v4, %v5032_v11  ;;  %v222_v14 = vrot.slane %v155_v4, %v5036_v13  ;;  %s4876_s25 = smov 30   ;;  %vm2306_vm10 = vcmask 162816   ;;  %s4640_s28 = sshll.u32 %s5002_s26, 5 }
  0x45   : > { %180 = vbcast.lane.b32.xlu1 %v178_v5, 256  ;;  %169 = vbcast.lane.b32.xlu0 %v167_v6, 256  ;;  %7601 = vst [vmem:[#allocation12_spill] sm:$0xff] %v5032_v11  ;;  %7602 = vst [vmem:[#allocation13_spill] sm:$0xff] %v5036_v13  ;;  %v233_v16 = vrot.slane %v155_v4, %v5040_v15  ;;  %v244_v18 = vrot.slane %v155_v4, %v5044_v17  ;;  %vm2311_vm11 = vcmask 179200   ;;  %vm7582_vm12 = vcmask 195584  }
  0x46   : > { %7603 = vst [vmem:[#allocation14_spill] sm:$0xff] %v5040_v15  ;;  %7604 = vst [vmem:[#allocation15_spill] sm:$0xff] %v5044_v17  ;;  %v255_v20 = vrot.slane %v156_v19, %v5018_v3  ;;  %v266_v21 = vrot.slane %v156_v19, %v5015_v2  ;;  %v277_v22 = vrot.slane %v156_v19, %v5024_v7  ;;  %vm7575_vm13 = vcmask 211968   ;;  %s6237_s3 = scalar_lea.vmem [#allocation5], %s4640_s28  ;;  %p7909_p9 = scmp.ne.s32.totalorder %s7593_s19, 0 }
  0x47   : > { %v288_v23 = vrot.slane %v156_v19, %v5028_v9  ;;  %v299_v24 = vrot.slane %v156_v19, %v5032_v11  ;;  %v310_v25 = vrot.slane %v156_v19, %v5036_v13  ;;  %v321_v26 = vrot.slane %v156_v19, %v5040_v15 }
  0x48   : > { %v332_v27 = vrot.slane %v156_v19, %v5044_v17  ;;  %v343_v29 = vrot.slane %v157_v28, %v5018_v3  ;;  %v354_v30 = vrot.slane %v157_v28, %v5015_v2  ;;  %v365_v31 = vrot.slane %v157_v28, %v5024_v7 }
  0x49   : > { %184 = vbcast.lane.b32.xlu1 %v178_v5, 264  ;;  %173 = vbcast.lane.b32.xlu0 %v167_v6, 264  ;;  %v376_v32 = vrot.slane %v157_v28, %v5028_v9  ;;  %v387_v33 = vrot.slane %v157_v28, %v5032_v11  ;;  %v398_v34 = vrot.slane %v157_v28, %v5036_v13  ;;  %vm7574_vm14 = vcmask 228352  }
  0x4a   : > { %v409_v35 = vrot.slane %v157_v28, %v5040_v15  ;;  %v420_v36 = vrot.slane %v157_v28, %v5044_v17  ;;  %v431_v38 = vrot.slane %v158_v37, %v5018_v3  ;;  %v442_v39 = vrot.slane %v158_v37, %v5015_v2 }
  0x4b   : > { %v453_v40 = vrot.slane %v158_v37, %v5024_v7  ;;  %v464_v41 = vrot.slane %v158_v37, %v5028_v9  ;;  %v475_v42 = vrot.slane %v158_v37, %v5032_v11  ;;  %v486_v43 = vrot.slane %v158_v37, %v5036_v13 }
  0x4c   : > { %v497_v46 = vrot.slane %v158_v37, %v5040_v15  ;;  %v508_v49 = vrot.slane %v158_v37, %v5044_v17  ;;  %v519_v53 = vrot.slane %v4641_v50, %v5018_v3  ;;  %v530_v56 = vrot.slane %v4641_v50, %v5015_v2 }
  0x4d   : > { %195 = vbcast.lane.b32.xlu1 %v189_v8, 264  ;;  %191 = vbcast.lane.b32.xlu0 %v189_v8, 256  ;;  %v541_v59 = vrot.slane %v4641_v50, %v5024_v7  ;;  %v552_v62 = vrot.slane %v4641_v50, %v5028_v9  ;;  %v563_v4 = vrot.slane %v4641_v50, %v5032_v11  ;;  %vm7573_vm15 = vcmask 244736  }
  0x4e   : > { %v574_v8 = vrot.slane %v4641_v50, %v5036_v13  ;;  %v596_v19 = vrot.slane %v4641_v50, %v5044_v17 }
  0x51   : > { %206 = vbcast.lane.b32.xlu1 %v200_v10, 264  ;;  %202 = vbcast.lane.b32.xlu0 %v200_v10, 256 }
  0x55   : > { %217 = vbcast.lane.b32.xlu1 %v211_v12, 264  ;;  %213 = vbcast.lane.b32.xlu0 %v211_v12, 256 }
  0x59   : > { %228 = vbcast.lane.b32.xlu1 %v222_v14, 264  ;;  %224 = vbcast.lane.b32.xlu0 %v222_v14, 256  ;;  %v585_v14 = vrot.slane %v4641_v50, %v5040_v15 }
  0x5d   : > { %239 = vbcast.lane.b32.xlu1 %v233_v16, 264  ;;  %235 = vbcast.lane.b32.xlu0 %v233_v16, 256 }
  0x61   : > { %250 = vbcast.lane.b32.xlu1 %v244_v18, 264  ;;  %246 = vbcast.lane.b32.xlu0 %v244_v18, 256 }
  0x65   : > { %261 = vbcast.lane.b32.xlu1 %v255_v20, 264  ;;  %257 = vbcast.lane.b32.xlu0 %v255_v20, 256  ;;  %v4642_v20 = vld [vmem:[%s5006_s4 + $0x28] sm:$0xff] }
  0x69   : > { %272 = vbcast.lane.b32.xlu1 %v266_v21, 264  ;;  %268 = vbcast.lane.b32.xlu0 %v266_v21, 256 }
  0x6d   : > { %283 = vbcast.lane.b32.xlu1 %v277_v22, 264  ;;  %279 = vbcast.lane.b32.xlu0 %v277_v22, 256 }
  0x71   : > { %294 = vbcast.lane.b32.xlu1 %v288_v23, 264  ;;  %290 = vbcast.lane.b32.xlu0 %v288_v23, 256  ;;  %v607_v23 = vrot.slane %v4642_v20, %v5018_v3 }
  0x75   : > { %305 = vbcast.lane.b32.xlu1 %v299_v24, 264  ;;  %301 = vbcast.lane.b32.xlu0 %v299_v24, 256 }
  0x79   : > { %316 = vbcast.lane.b32.xlu1 %v310_v25, 264  ;;  %312 = vbcast.lane.b32.xlu0 %v310_v25, 256 }
  0x7d   : > { %327 = vbcast.lane.b32.xlu1 %v321_v26, 264  ;;  %323 = vbcast.lane.b32.xlu0 %v321_v26, 256  ;;  %v618_v26 = vrot.slane %v4642_v20, %v5015_v2 }
  0x81   : > { %338 = vbcast.lane.b32.xlu1 %v332_v27, 264  ;;  %334 = vbcast.lane.b32.xlu0 %v332_v27, 256 }
  0x85   : > { %349 = vbcast.lane.b32.xlu1 %v343_v29, 264  ;;  %345 = vbcast.lane.b32.xlu0 %v343_v29, 256  ;;  %v629_v29 = vrot.slane %v4642_v20, %v5024_v7 }
  0x89   : > { %360 = vbcast.lane.b32.xlu1 %v354_v30, 264  ;;  %356 = vbcast.lane.b32.xlu0 %v354_v30, 256 }
  0x8d   : > { %371 = vbcast.lane.b32.xlu1 %v365_v31, 264  ;;  %367 = vbcast.lane.b32.xlu0 %v365_v31, 256 }
  0x91   : > { %382 = vbcast.lane.b32.xlu1 %v376_v32, 264  ;;  %378 = vbcast.lane.b32.xlu0 %v376_v32, 256  ;;  %v640_v32 = vrot.slane %v4642_v20, %v5028_v9 }
  0x95   : > { %393 = vbcast.lane.b32.xlu1 %v387_v33, 264  ;;  %389 = vbcast.lane.b32.xlu0 %v387_v33, 256 }
  0x99   : > { %404 = vbcast.lane.b32.xlu1 %v398_v34, 264  ;;  %400 = vbcast.lane.b32.xlu0 %v398_v34, 256 }
  0x9d   : > { %415 = vbcast.lane.b32.xlu1 %v409_v35, 264  ;;  %411 = vbcast.lane.b32.xlu0 %v409_v35, 256  ;;  %v651_v35 = vrot.slane %v4642_v20, %v5032_v11 }
  0xa1   : > { %426 = vbcast.lane.b32.xlu1 %v420_v36, 264  ;;  %422 = vbcast.lane.b32.xlu0 %v420_v36, 256 }
  0xa5   : > { %437 = vbcast.lane.b32.xlu1 %v431_v38, 264  ;;  %433 = vbcast.lane.b32.xlu0 %v431_v38, 256  ;;  %v662_v38 = vrot.slane %v4642_v20, %v5036_v13 }
  0xa9   : > { %448 = vbcast.lane.b32.xlu1 %v442_v39, 264  ;;  %444 = vbcast.lane.b32.xlu0 %v442_v39, 256 }
  0xad   : > { %459 = vbcast.lane.b32.xlu1 %v453_v40, 264  ;;  %455 = vbcast.lane.b32.xlu0 %v453_v40, 256 }
  0xb1   : > { %470 = vbcast.lane.b32.xlu1 %v464_v41, 264  ;;  %466 = vbcast.lane.b32.xlu0 %v464_v41, 256  ;;  %v673_v41 = vrot.slane %v4642_v20, %v5040_v15 }
  0xb5   : > { %481 = vbcast.lane.b32.xlu1 %v475_v42, 264  ;;  %477 = vbcast.lane.b32.xlu0 %v475_v42, 256 }
  0xb7   : > { %v5072_v44 = vpop.permute.xlu1 %180  ;;  %v5074_v45 = vpop.permute.xlu0 %169 }
  0xb9   : > { %492 = vbcast.lane.b32.xlu1 %v486_v43, 264  ;;  %488 = vbcast.lane.b32.xlu0 %v486_v43, 256 }
  0xbb   : > { %v5077_v47 = vpop.permute.xlu1 %184  ;;  %v5079_v48 = vpop.permute.xlu0 %173 }
  0xbc   : > { %7605 = vst [vmem:[#allocation16_spill] sm:$0xff] %v5079_v48 }
  0xbd   : > { %503 = vbcast.lane.b32.xlu1 %v497_v46, 264  ;;  %499 = vbcast.lane.b32.xlu0 %v497_v46, 256  ;;  %v684_v46 = vrot.slane %v4642_v20, %v5044_v17 }
  0xbf   : > { %v5083_v51 = vpop.permute.xlu1 %195  ;;  %v5085_v52 = vpop.permute.xlu0 %191 }
  0xc1   : > { %514 = vbcast.lane.b32.xlu1 %v508_v49, 264  ;;  %510 = vbcast.lane.b32.xlu0 %v508_v49, 256  ;;  %v4643_v49 = vld [vmem:[%s5006_s4 + $0x30] sm:$0xff] }
  0xc3   : > { %v5088_v54 = vpop.permute.xlu1 %206  ;;  %v5090_v55 = vpop.permute.xlu0 %202 }
  0xc5   : > { %525 = vbcast.lane.b32.xlu1 %v519_v53, 264  ;;  %521 = vbcast.lane.b32.xlu0 %v519_v53, 256 }
  0xc7   : > { %v5093_v57 = vpop.permute.xlu1 %217  ;;  %v5095_v58 = vpop.permute.xlu0 %213 }
  0xc8   : > { %7606 = vst [vmem:[#allocation17_spill] sm:$0xff] %v5093_v57 }
  0xc9   : > { %536 = vbcast.lane.b32.xlu1 %v530_v56, 264  ;;  %532 = vbcast.lane.b32.xlu0 %v530_v56, 256  ;;  %v695_v56 = vrot.slane %v4643_v49, %v5018_v3 }
  0xcb   : > { %v5098_v60 = vpop.permute.xlu1 %228  ;;  %v5100_v61 = vpop.permute.xlu0 %224 }
  0xcd   : > { %547 = vbcast.lane.b32.xlu1 %v541_v59, 264  ;;  %543 = vbcast.lane.b32.xlu0 %v541_v59, 256 }
  0xcf   : > { %v5103_v63 = vpop.permute.xlu1 %239  ;;  %v5105_v0 = vpop.permute.xlu0 %235 }
  0xd1   : > { %558 = vbcast.lane.b32.xlu1 %v552_v62, 264  ;;  %554 = vbcast.lane.b32.xlu0 %v552_v62, 256 }
  0xd3   : > { %v5108_v5 = vpop.permute.xlu1 %250  ;;  %v5110_v6 = vpop.permute.xlu0 %246 }
  0xd5   : > { %569 = vbcast.lane.b32.xlu1 %v563_v4, 264  ;;  %565 = vbcast.lane.b32.xlu0 %v563_v4, 256  ;;  %v706_v4 = vrot.slane %v4643_v49, %v5015_v2 }
  0xd7   : > { %v5113_v10 = vpop.permute.xlu1 %261  ;;  %v5115_v12 = vpop.permute.xlu0 %257 }
  0xd8   : > { %7607 = vst [vmem:[#allocation18_spill] sm:$0xff] %v5113_v10 }
  0xd9   : > { %580 = vbcast.lane.b32.xlu1 %v574_v8, 264  ;;  %576 = vbcast.lane.b32.xlu0 %v574_v8, 256 }
  0xdb   : > { %v5118_v16 = vpop.permute.xlu1 %272  ;;  %v5120_v18 = vpop.permute.xlu0 %268 }
  0xdc   : > { %7608 = vst [vmem:[#allocation19_spill] sm:$0xff] %v5118_v16 }
  0xdd   : > { %591 = vbcast.lane.b32.xlu1 %v585_v14, 264  ;;  %587 = vbcast.lane.b32.xlu0 %v585_v14, 256 }
  0xdf   : > { %v5124_v21 = vpop.permute.xlu1 %283  ;;  %v5126_v22 = vpop.permute.xlu0 %279 }
  0xe0   : > { %7609 = vst [vmem:[#allocation20_spill] sm:$0xff] %v5124_v21 }
  0xe1   : > { %602 = vbcast.lane.b32.xlu1 %v596_v19, 264  ;;  %598 = vbcast.lane.b32.xlu0 %v596_v19, 256  ;;  %v717_v19 = vrot.slane %v4643_v49, %v5024_v7 }
  0xe3   : > { %v5129_v24 = vpop.permute.xlu1 %294  ;;  %v5131_v25 = vpop.permute.xlu0 %290 }
  0xe4   : > { %7610 = vst [vmem:[#allocation21_spill] sm:$0xff] %v5129_v24  ;;  %v4860_v24 = vmov 1983009808  }
  0xe5   : > { %613 = vbcast.lane.b32.xlu1 %v607_v23, 264  ;;  %609 = vbcast.lane.b32.xlu0 %v607_v23, 256 }
  0xe7   : > { %v5134_v27 = vpop.permute.xlu1 %305  ;;  %v5136_v28 = vpop.permute.xlu0 %301 }
  0xe8   : > { %7611 = vst [vmem:[#allocation22_spill] sm:$0xff] %v5134_v27 }
  0xe9   : > { %624 = vbcast.lane.b32.xlu1 %v618_v26, 264  ;;  %620 = vbcast.lane.b32.xlu0 %v618_v26, 256  ;;  %v728_v26 = vrot.slane %v4643_v49, %v5028_v9 }
  0xeb   : > { %v5139_v30 = vpop.permute.xlu1 %316  ;;  %v5141_v31 = vpop.permute.xlu0 %312 }
  0xec   : > { %7612 = vst [vmem:[#allocation23_spill] sm:$0xff] %v5139_v30  ;;  %v4644_v30 = vld [vmem:[%s5006_s4 + $0x38] sm:$0xff] }
  0xed   : > { %635 = vbcast.lane.b32.xlu1 %v629_v29, 264  ;;  %631 = vbcast.lane.b32.xlu0 %v629_v29, 256 }
  0xef   : > { %v5144_v33 = vpop.permute.xlu1 %327  ;;  %v5146_v34 = vpop.permute.xlu0 %323 }
  0xf0   : > { %7613 = vst [vmem:[#allocation24_spill] sm:$0xff] %v5144_v33  ;;  %v772_v33 = vrot.slane %v4643_v49, %v5044_v17 }
  0xf1   : > { %646 = vbcast.lane.b32.xlu1 %v640_v32, 264  ;;  %642 = vbcast.lane.b32.xlu0 %v640_v32, 256 }
  0xf3   : > { %v5149_v36 = vpop.permute.xlu1 %338  ;;  %v5151_v37 = vpop.permute.xlu0 %334 }
  0xf4   : > { %7614 = vst [vmem:[#allocation25_spill] sm:$0xff] %v5149_v36 }
  0xf5   : > { %657 = vbcast.lane.b32.xlu1 %v651_v35, 264  ;;  %653 = vbcast.lane.b32.xlu0 %v651_v35, 256  ;;  %v739_v35 = vrot.slane %v4643_v49, %v5032_v11 }
  0xf7   : > { %v5154_v39 = vpop.permute.xlu1 %349  ;;  %v5156_v40 = vpop.permute.xlu0 %345 }
  0xf8   : > { %7615 = vst [vmem:[#allocation26_spill] sm:$0xff] %v5154_v39 }
  0xf9   : > { %668 = vbcast.lane.b32.xlu1 %v662_v38, 264  ;;  %664 = vbcast.lane.b32.xlu0 %v662_v38, 256 }
  0xfb   : > { %v5159_v42 = vpop.permute.xlu1 %360  ;;  %v5161_v43 = vpop.permute.xlu0 %356 }
  0xfc   : > { %7616 = vst [vmem:[#allocation27_spill] sm:$0xff] %v5159_v42 }
  0xfd   : > { %679 = vbcast.lane.b32.xlu1 %v673_v41, 264  ;;  %675 = vbcast.lane.b32.xlu0 %v673_v41, 256 }
  0xff   : > { %v5165_v50 = vpop.permute.xlu1 %371  ;;  %v5167_v53 = vpop.permute.xlu0 %367 }
 0x100   : > { %7617 = vst [vmem:[#allocation28_spill] sm:$0xff] %v5165_v50 }
 0x101   : > { %690 = vbcast.lane.b32.xlu1 %v684_v46, 264  ;;  %686 = vbcast.lane.b32.xlu0 %v684_v46, 256  ;;  %v750_v46 = vrot.slane %v4643_v49, %v5036_v13 }
 0x103   : > { %v5170_v59 = vpop.permute.xlu1 %382  ;;  %v5172_v62 = vpop.permute.xlu0 %378 }
 0x104   : > { %7618 = vst [vmem:[#allocation29_spill] sm:$0xff] %v5170_v59 }
 0x105   : > { %701 = vbcast.lane.b32.xlu1 %v695_v56, 264  ;;  %697 = vbcast.lane.b32.xlu0 %v695_v56, 256 }
 0x107   : > { %v5175_v8 = vpop.permute.xlu1 %393  ;;  %v5177_v14 = vpop.permute.xlu0 %389 }
 0x108   : > { %7619 = vst [vmem:[#allocation30_spill] sm:$0xff] %v5175_v8 }
 0x109   : > { %712 = vbcast.lane.b32.xlu1 %v706_v4, 264  ;;  %708 = vbcast.lane.b32.xlu0 %v706_v4, 256 }
 0x10b   : > { %v5180_v20 = vpop.permute.xlu1 %404  ;;  %v5182_v23 = vpop.permute.xlu0 %400 }
 0x10c   : > { %7620 = vst [vmem:[#allocation31_spill] sm:$0xff] %v5180_v20 }
 0x10d   : > { %723 = vbcast.lane.b32.xlu1 %v717_v19, 264  ;;  %719 = vbcast.lane.b32.xlu0 %v717_v19, 256  ;;  %v761_v19 = vrot.slane %v4643_v49, %v5040_v15 }
 0x10f   : > { %v5185_v29 = vpop.permute.xlu1 %415  ;;  %v5187_v32 = vpop.permute.xlu0 %411 }
 0x110   : > { %7621 = vst [vmem:[#allocation32_spill] sm:$0xff] %v5185_v29 }
 0x111   : > { %734 = vbcast.lane.b32.xlu1 %v728_v26, 264  ;;  %730 = vbcast.lane.b32.xlu0 %v728_v26, 256 }
 0x113   : > { %v5190_v38 = vpop.permute.xlu1 %426  ;;  %v5192_v41 = vpop.permute.xlu0 %422 }
 0x114   : > { %7622 = vst [vmem:[#allocation33_spill] sm:$0xff] %v5190_v38 }
 0x115   : > { %745 = vbcast.lane.b32.xlu1 %v739_v35, 264  ;;  %741 = vbcast.lane.b32.xlu0 %v739_v35, 256 }
 0x117   : > { %v5195_v56 = vpop.permute.xlu1 %437  ;;  %v5197_v4 = vpop.permute.xlu0 %433 }
 0x118   : > { %7623 = vst [vmem:[#allocation34_spill] sm:$0xff] %v5195_v56  ;;  %v783_v56 = vrot.slane %v4644_v30, %v5018_v3  ;;  %v816_v3 = vrot.slane %v4644_v30, %v5028_v9  ;;  %v849_v9 = vrot.slane %v4644_v30, %v5040_v15 }
 0x119   : > { %756 = vbcast.lane.b32.xlu1 %v750_v46, 264  ;;  %752 = vbcast.lane.b32.xlu0 %v750_v46, 256 }
 0x11b   : > { %v5200_v26 = vpop.permute.xlu1 %448  ;;  %v5202_v27 = vpop.permute.xlu0 %444 }
 0x11c   : > { %7624 = vst [vmem:[#allocation35_spill] sm:$0xff] %v5200_v26  ;;  %v794_v26 = vrot.slane %v4644_v30, %v5015_v2  ;;  %v827_v2 = vrot.slane %v4644_v30, %v5032_v11  ;;  %v936_v11 = vunpack.c.l.s4 %v4860_v24 }
 0x11d   : > { %767 = vbcast.lane.b32.xlu1 %v761_v19, 264  ;;  %763 = vbcast.lane.b32.xlu0 %v761_v19, 256 }
 0x11e   : > { %v937_v21 = vunpack.c.0.s8 %v936_v11 }
 0x11f   : > { %v5206_v35 = vpop.permute.xlu1 %459  ;;  %v5208_v36 = vpop.permute.xlu0 %455 }
 0x120   : > { %7625 = vst [vmem:[#allocation36_spill] sm:$0xff] %v5206_v35  ;;  %v805_v35 = vrot.slane %v4644_v30, %v5024_v7  ;;  %v838_v7 = vrot.slane %v4644_v30, %v5036_v13 }
 0x121   : > { %778 = vbcast.lane.b32.xlu1 %v772_v33, 264  ;;  %774 = vbcast.lane.b32.xlu0 %v772_v33, 256 }
 0x123   : > { %v5211_v46 = vpop.permute.xlu1 %470  ;;  %v5213_v16 = vpop.permute.xlu0 %466 }
 0x124   : > { %7626 = vst [vmem:[#allocation37_spill] sm:$0xff] %v5211_v46 }
 0x125   : > { %789 = vbcast.lane.b32.xlu1 %v783_v56, 264  ;;  %785 = vbcast.lane.b32.xlu0 %v783_v56, 256 }
 0x127   : > { %v5216_v19 = vpop.permute.xlu1 %481  ;;  %v5218_v49 = vpop.permute.xlu0 %477 }
 0x128   : > { %7627 = vst [vmem:[#allocation38_spill] sm:$0xff] %v5216_v19 }
 0x129   : > { %800 = vbcast.lane.b32.xlu1 %v794_v26, 264  ;;  %796 = vbcast.lane.b32.xlu0 %v794_v26, 256 }
 0x12b   : > { %v5221_v10 = vpop.permute.xlu1 %492  ;;  %v5223_v33 = vpop.permute.xlu0 %488 }
 0x12c   : > { %7628 = vst [vmem:[#allocation39_spill] sm:$0xff] %v5221_v10 }
 0x12d   : > { %811 = vbcast.lane.b32.xlu1 %v805_v35, 264  ;;  %807 = vbcast.lane.b32.xlu0 %v805_v35, 256 }
 0x12f   : > { %v5226_v46 = vpop.permute.xlu1 %503  ;;  %v5228_v56 = vpop.permute.xlu0 %499 }
 0x130   : > { %7629 = vst [vmem:[#allocation40_spill] sm:$0xff] %v5226_v46 }
 0x131   : > { %822 = vbcast.lane.b32.xlu1 %v816_v3, 264  ;;  %818 = vbcast.lane.b32.xlu0 %v816_v3, 256 }
 0x133   : > { %v5231_v19 = vpop.permute.xlu1 %514  ;;  %v5233_v26 = vpop.permute.xlu0 %510 }
 0x134   : > { %7630 = vst [vmem:[#allocation41_spill] sm:$0xff] %v5231_v19  ;;  %v860_v19 = vrot.slane %v4644_v30, %v5044_v17 }
 0x135   : > { %833 = vbcast.lane.b32.xlu1 %v827_v2, 264  ;;  %829 = vbcast.lane.b32.xlu0 %v827_v2, 256 }
 0x137   : > { %v5236_v10 = vpop.permute.xlu1 %525  ;;  %v522_v35 = vpop.permute.xlu0 %521 }
 0x138   : > { %v869_v42 = vsel %vm7572_vm0, %v5074_v45, %v522_v35 }
 0x139   : > { %844 = vbcast.lane.b32.xlu1 %v838_v7, 264  ;;  %840 = vbcast.lane.b32.xlu0 %v838_v7, 256 }
 0x13b   : > { %v5239_v46 = vpop.permute.xlu1 %536  ;;  %v533_v3 = vpop.permute.xlu0 %532 }
 0x13c   : > { %v871_v30 = vsel %vm7572_vm0, %v5072_v44, %v533_v3 }
 0x13d   : > { %855 = vbcast.lane.b32.xlu1 %v849_v9, 264  ;;  %851 = vbcast.lane.b32.xlu0 %v849_v9, 256  ;;  %v5251_v9 = vsub.s32 %v937_v21, %v5012_v1 }
 0x13f   : > { %v5242_v2 = vpop.permute.xlu1 %547  ;;  %v544_v13 = vpop.permute.xlu0 %543  ;;  %7631 = vst [vmem:[#allocation42_spill] sm:$0xff] %v5251_v9 }
 0x140   : > { %v873_v7 = vsel %vm7572_vm0, %v5085_v52, %v544_v13 }
 0x141   : > { %v934_v15 = vcombine.high %v869_v42, %v873_v7  ;;  %866 = vbcast.lane.b32.xlu1 %v860_v19, 264  ;;  %862 = vbcast.lane.b32.xlu0 %v860_v19, 256  ;;  %v933_v17 = vcombine.low %v869_v42, %v873_v7 }
 0x143   : > { %v5248_v39 = vpop.permute.xlu1 %558  ;;  %v555_v24 = vpop.permute.xlu0 %554  ;;  %v941_v59 = vrot.slane %v933_v17, %v5251_v9  ;;  %v948_v21 = vrot.slane %v934_v15, %v5251_v9 }
 0x144   : > { %v875_v11 = vsel %vm7572_vm0, %v5090_v55, %v555_v24  ;;  %v4861_v55 = vmov 1934713408  }
 0x145   : > { %v949_v45 = vcombine.low %v871_v30, %v875_v11  ;;  %v950_v35 = vcombine.high %v871_v30, %v875_v11  ;;  %v1000_v7 = vunpack.c.l.s4 %v4861_v55 }
 0x147   : > { %v957_v13 = vrot.slane %v949_v45, %v5251_v9  ;;  %v964_v52 = vrot.slane %v950_v35, %v5251_v9  ;;  %v5259_v19 = vpop.permute.xlu1 %569  ;;  %v566_v8 = vpop.permute.xlu0 %565  ;;  %v1001_v35 = vunpack.c.0.s8 %v1000_v7 }
 0x148   : > { %7632 = vst [vmem:[#allocation43_spill] sm:$0xff] %v5259_v19  ;;  %v877_v11 = vsel %vm7572_vm0, %v5095_v58, %v566_v8 }
 0x149   : > { %v998_v50 = vcombine.high %v941_v59, %v957_v13  ;;  %v1013_v29 = vcombine.low %v948_v21, %v964_v52  ;;  %v1014_v44 = vcombine.high %v948_v21, %v964_v52  ;;  %v5278_v19 = vsub.s32 %v1001_v35, %v5012_v1 }
 0x14a   : > { %v997_v58 = vcombine.low %v941_v59, %v957_v13 }
 0x14b   : > { %v5263_v42 = vpop.permute.xlu1 %580  ;;  %v577_v3 = vpop.permute.xlu0 %576  ;;  %7633 = vst [vmem:[#allocation44_spill] sm:$0xff] %v5278_v19  ;;  %v5290_v1 = vrot.slane %v998_v50, %v5278_v19  ;;  %v5293_v59 = vrot.slane %v1013_v29, %v5278_v19  ;;  %v5310_v50 = vrot.slane %v1014_v44, %v5278_v19 }
 0x14c   : > { %v879_v52 = vsel %vm7572_vm0, %v5100_v61, %v577_v3 }
 0x14f   : > { %v5265_v24 = vpop.permute.xlu1 %591  ;;  %v588_v30 = vpop.permute.xlu0 %587 }
 0x150   : > { %v881_v45 = vsel %vm7572_vm0, %v5105_v0, %v588_v30 }
 0x151   : > { %v966_v17 = vcombine.high %v877_v11, %v881_v45  ;;  %v965_v21 = vcombine.low %v877_v11, %v881_v45  ;;  %v5287_v45 = vrot.slane %v997_v58, %v5278_v19 }
 0x153   : > { %v5271_v15 = vpop.permute.xlu1 %602  ;;  %v599_v20 = vpop.permute.xlu0 %598  ;;  %v973_v48 = vrot.slane %v965_v21, %v5251_v9  ;;  %v980_v61 = vrot.slane %v966_v17, %v5251_v9  ;;  %7635 = vst [vmem:[#allocation46_spill] sm:$0xff] %v5287_v45 }
 0x154   : > { %v883_v55 = vsel %vm7572_vm0, %v5110_v6, %v599_v20 }
 0x155   : > { %v981_v38 = vcombine.low %v879_v52, %v883_v55  ;;  %v982_v57 = vcombine.high %v879_v52, %v883_v55 }
 0x157   : > { %v989_v0 = vrot.slane %v981_v38, %v5251_v9  ;;  %v996_v8 = vrot.slane %v982_v57, %v5251_v9  ;;  %v5282_v7 = vpop.permute.xlu1 %613  ;;  %v610_v30 = vpop.permute.xlu0 %609 }
 0x158   : > { %7634 = vst [vmem:[#allocation45_spill] sm:$0xff] %v5282_v7 }
 0x159   : > { %v1029_v3 = vcombine.low %v973_v48, %v989_v0  ;;  %v1030_v11 = vcombine.high %v973_v48, %v989_v0  ;;  %v1045_v6 = vcombine.low %v980_v61, %v996_v8  ;;  %v1046_v20 = vcombine.high %v980_v61, %v996_v8 }
 0x15b   : > { %v621_v57 = vpop.permute.xlu0 %620  ;;  %v5296_v38 = vrot.slane %v1029_v3, %v5278_v19  ;;  %v5299_v13 = vrot.slane %v1030_v11, %v5278_v19  ;;  %v5302_v48 = vrot.slane %v1045_v6, %v5278_v19  ;;  %v5305_v17 = vrot.slane %v1046_v20, %v5278_v19  ;;  %v5307_v35 = vpop.permute.xlu1 %624 }
 0x15c   : > { %7637 = vst [vmem:[#allocation48_spill] sm:$0xff] %v5307_v35  ;;  %v885_v3 = vsel %vm7572_vm0, %v5115_v12, %v610_v30  ;;  %v887_v44 = vsel %vm7572_vm0, %v5120_v18, %v621_v57 }
 0x15d   : > { %7636 = vst [vmem:[#allocation47_spill] sm:$0xff] %v5296_v38  ;;  %v1062_v29 = vcombine.high %v5287_v45, %v5296_v38 }
 0x15f   : > { %v632_v58 = vpop.permute.xlu0 %631  ;;  %2025 = vrot.lane.b32.xlu0 %v1062_v29, %s4862_s18  ;;  %v5333_v20 = vpop.permute.xlu1 %635 }
 0x160   : > { %v889_v11 = vsel %vm7572_vm0, %v5126_v22, %v632_v58  ;;  %7638 = vst [vmem:[#allocation49_spill] sm:$0xff] %v5333_v20 }
 0x161   : > { %v1070_v6 = vcombine.high %v885_v3, %v889_v11  ;;  %v1069_v8 = vcombine.low %v885_v3, %v889_v11 }
 0x163   : > { %v643_v0 = vpop.permute.xlu0 %642  ;;  %v1077_v22 = vrot.slane %v1069_v8, %v5251_v9  ;;  %v1084_v58 = vrot.slane %v1070_v6, %v5251_v9  ;;  %v5343_v52 = vpop.permute.xlu1 %646 }
 0x164   : > { %v891_v61 = vsel %vm7572_vm0, %v5131_v25, %v643_v0  ;;  %7639 = vst [vmem:[#allocation50_spill] sm:$0xff] %v5343_v52 }
 0x165   : > { %v1085_v55 = vcombine.low %v887_v44, %v891_v61  ;;  %v1086_v21 = vcombine.high %v887_v44, %v891_v61 }
 0x167   : > { %v1093_v12 = vrot.slane %v1085_v55, %v5251_v9  ;;  %v1100_v30 = vrot.slane %v1086_v21, %v5251_v9  ;;  %v654_v29 = vpop.permute.xlu0 %653  ;;  %v5345_v3 = vpop.permute.xlu1 %657 }
 0x168   : > { %7640 = vst [vmem:[#allocation51_spill] sm:$0xff] %v5345_v3  ;;  %v893_v0 = vsel %vm7572_vm0, %v5136_v28, %v654_v29 }
 0x169   : > { %v1134_v38 = vcombine.high %v1077_v22, %v1093_v12  ;;  %v1149_v45 = vcombine.low %v1084_v58, %v1100_v30  ;;  %v1150_v18 = vcombine.high %v1084_v58, %v1100_v30  ;;  %v1133_v3 = vcombine.low %v1077_v22, %v1093_v12 }
 0x16b   : > { %v665_v57 = vpop.permute.xlu0 %664  ;;  %v5351_v8 = vpop.permute.xlu1 %668  ;;  %v5367_v12 = vrot.slane %v1134_v38, %v5278_v19  ;;  %v5370_v22 = vrot.slane %v1149_v45, %v5278_v19 }
 0x16c   : > { %7641 = vst [vmem:[#allocation52_spill] sm:$0xff] %v5351_v8  ;;  %v895_v61 = vsel %vm7572_vm0, %v5141_v31, %v665_v57 }
 0x16f   : > { %v676_v25 = vpop.permute.xlu0 %675  ;;  %v5361_v8 = vpop.permute.xlu1 %679 }
 0x170   : > { %v897_v21 = vsel %vm7572_vm0, %v5146_v34, %v676_v25  ;;  %7642 = vst [vmem:[#allocation53_spill] sm:$0xff] %v5361_v8 }
 0x171   : > { %v1102_v55 = vcombine.high %v893_v0, %v897_v21  ;;  %v1101_v11 = vcombine.low %v893_v0, %v897_v21 }
 0x173   : > { %v687_v44 = vpop.permute.xlu0 %686  ;;  %v1109_v34 = vrot.slane %v1101_v11, %v5251_v9  ;;  %v1116_v25 = vrot.slane %v1102_v55, %v5251_v9 }
 0x174   : > { %v899_v6 = vsel %vm7572_vm0, %v5151_v37, %v687_v44  ;;  %v5364_v37 = vrot.slane %v1133_v3, %v5278_v19  ;;  %v5385_v3 = vrot.slane %v1150_v18, %v5278_v19 }
 0x175   : > { %v1117_v30 = vcombine.low %v895_v61, %v899_v6  ;;  %v1118_v58 = vcombine.high %v895_v61, %v899_v6 }
 0x176   : > { %7643 = vst [vmem:[#allocation54_spill] sm:$0xff] %v5364_v37  ;;  %7647 = vst [vmem:[#allocation58_spill] sm:$0xff] %v5385_v3 }
 0x177   : > { %v1125_v35 = vrot.slane %v1117_v30, %v5251_v9  ;;  %v1132_v28 = vrot.slane %v1118_v58, %v5251_v9  ;;  %v698_v29 = vpop.permute.xlu0 %697 }
 0x179   : > { %v1165_v7 = vcombine.low %v1109_v34, %v1125_v35  ;;  %v1166_v31 = vcombine.high %v1109_v34, %v1125_v35  ;;  %v1181_v57 = vcombine.low %v1116_v25, %v1132_v28  ;;  %v1182_v0 = vcombine.high %v1116_v25, %v1132_v28  ;;  %v5403_v34 = vpop.permute.xlu1 %690 }
 0x17a   : > { %7648 = vst [vmem:[#allocation59_spill] sm:$0xff] %v5403_v34 }
 0x17b   : > { %v709_v21 = vpop.permute.xlu0 %708  ;;  %v5373_v44 = vrot.slane %v1165_v7, %v5278_v19  ;;  %v5376_v55 = vrot.slane %v1166_v31, %v5278_v19  ;;  %v5379_v35 = vrot.slane %v1181_v57, %v5278_v19  ;;  %v5382_v61 = vrot.slane %v1182_v0, %v5278_v19 }
 0x17c   : > { %v903_v58 = vsel %vm7572_vm0, %v5161_v43, %v709_v21 }
 0x17d   : > { %7644 = vst [vmem:[#allocation55_spill] sm:$0xff] %v5373_v44  ;;  %7645 = vst [vmem:[#allocation56_spill] sm:$0xff] %v5379_v35  ;;  %v1198_v45 = vcombine.high %v5364_v37, %v5373_v44  ;;  %v5406_v31 = vpop.permute.xlu1 %701 }
 0x17e   : > { %7646 = vst [vmem:[#allocation57_spill] sm:$0xff] %v5382_v61 }
 0x17f   : > { %v720_v6 = vpop.permute.xlu0 %719  ;;  %2027 = vrot.lane.b32.xlu1 %v1198_v45, %s4862_s18  ;;  %v901_v45 = vsel %vm7572_vm0, %v5156_v40, %v698_v29 }
 0x180   : > { %v905_v28 = vsel %vm7572_vm0, %v5167_v53, %v720_v6 }
 0x181   : > { %v5408_v11 = vpop.permute.xlu1 %712  ;;  %v1477_v37 = vcombine.low %v901_v45, %v905_v28 }
 0x183   : > { %v731_v25 = vpop.permute.xlu0 %730  ;;  %v1485_v29 = vrot.slane %v1477_v37, %v5251_v9 }
 0x184   : > { %v907_v18 = vsel %vm7572_vm0, %v5172_v62, %v731_v25 }
 0x185   : > { %v1493_v7 = vcombine.low %v903_v58, %v907_v18  ;;  %v5420_v44 = vpop.permute.xlu1 %723 }
 0x187   : > { %v742_v57 = vpop.permute.xlu0 %741  ;;  %v1501_v43 = vrot.slane %v1493_v7, %v5251_v9 }
 0x188   : > { %v909_v62 = vsel %vm7572_vm0, %v5177_v14, %v742_v57 }
 0x189   : > { %v5431_v61 = vpop.permute.xlu1 %734  ;;  %v1541_v3 = vcombine.low %v1485_v29, %v1501_v43 }
 0x18b   : > { %v753_v0 = vpop.permute.xlu0 %752  ;;  %v5435_v8 = vrot.slane %v1541_v3, %v5278_v19 }
 0x18c   : > { %v911_v53 = vsel %vm7572_vm0, %v5182_v23, %v753_v0 }
 0x18d   : > { %7649 = vst [vmem:[#allocation60_spill] sm:$0xff] %v5435_v8 }
 0x18f   : > { %v764_v30 = vpop.permute.xlu0 %763 }
 0x190   : > { %v913_v38 = vsel %vm7572_vm0, %v5187_v32, %v764_v30 }
 0x191   : > { %v1509_v21 = vcombine.low %v909_v62, %v913_v38  ;;  %v1510_v20 = vcombine.high %v909_v62, %v913_v38 }
 0x193   : > { %v775_v25 = vpop.permute.xlu0 %774  ;;  %v1517_v14 = vrot.slane %v1509_v21, %v5251_v9  ;;  %v1524_v35 = vrot.slane %v1510_v20, %v5251_v9 }
 0x194   : > { %v915_v6 = vsel %vm7572_vm0, %v5192_v41, %v775_v25  ;;  %v5440_v41 = vpop.permute.xlu1 %745 }
 0x195   : > { %v1525_v40 = vcombine.low %v911_v53, %v915_v6 }
 0x197   : > { %v1533_v32 = vrot.slane %v1525_v40, %v5251_v9  ;;  %v786_v30 = vpop.permute.xlu0 %785  ;;  %v1542_v40 = vcombine.high %v1485_v29, %v1501_v43 }
 0x199   : > { %v1573_v57 = vcombine.low %v1517_v14, %v1533_v32  ;;  %v1574_v0 = vcombine.high %v1517_v14, %v1533_v32  ;;  %v1556_v52 = vrot.slane %v1542_v40, %v5278_v19  ;;  %v7651_v32 = vcombine.low %v5290_v1, %v5299_v13 }
 0x19a   : > { %v1526_v14 = vcombine.high %v911_v53, %v915_v6 }
 0x19b   : > { %v797_v7 = vpop.permute.xlu0 %796  ;;  %v5438_v23 = vrot.slane %v1573_v57, %v5278_v19  ;;  %v1588_v21 = vrot.slane %v1574_v0, %v5278_v19  ;;  %v5449_v57 = vpop.permute.xlu1 %756  ;;  %v1478_v0 = vcombine.high %v901_v45, %v905_v28 }
 0x19c   : > { %v5459_v40 = vrot.slane %v1526_v14, %v5251_v9  ;;  %v5479_v62 = vsel %vm7572_vm0, %v5202_v27, %v797_v7 }
 0x19d   : > { %7650 = vst [vmem:[#allocation61_spill] sm:$0xff] %v5438_v23  ;;  %v1606_v37 = vcombine.high %v5435_v8, %v5438_v23  ;;  %v1607_v43 = vcombine.low %v1556_v52, %v1588_v21  ;;  %v1608_v45 = vcombine.high %v1556_v52, %v1588_v21  ;;  %v5492_v52 = vsel %vm7572_vm0, %v5197_v4, %v786_v30 }
 0x19e   : > { %v1589_v28 = vcombine.low %v1524_v35, %v5459_v40 }
 0x19f   : > { %v808_v25 = vpop.permute.xlu0 %807  ;;  %2029 = vrot.lane.b32.xlu0 %v1606_v37, %s4862_s18  ;;  %v1494_v37 = vcombine.high %v903_v58, %v907_v18  ;;  %v5456_v34 = vpop.permute.xlu1 %767  ;;  %v7652_v18 = vcombine.high %v5290_v1, %v5299_v13  ;;  %v5474_v58 = vrot.slane %v1478_v0, %v5251_v9 }
 0x1a0   : > { %v5483_v20 = vsel %vm7572_vm0, %v5208_v36, %v808_v25  ;;  %v1597_v36 = vrot.slane %v1589_v28, %v5278_v19 }
 0x1a1   : > { %v5462_v8 = vrot.slane %v1494_v37, %v5251_v9  ;;  %v1613_v6 = vcombine.low %v5492_v52, %v5483_v20 }
 0x1a3   : > { %v819_v3 = vpop.permute.xlu0 %818  ;;  %2041 = vrot.lane.b32.xlu0 %v7651_v32, %s4863_s27  ;;  %v1557_v13 = vcombine.low %v5474_v58, %v5462_v8  ;;  %v1621_v14 = vrot.slane %v1613_v6, %v5251_v9 }
 0x1a4   : > { %v5471_v38 = vsel %vm7572_vm0, %v5213_v16, %v819_v3  ;;  %v779_v16 = vpop.permute.xlu1 %778 }
 0x1a5   : > { %v1629_v53 = vcombine.low %v5479_v62, %v5471_v38  ;;  %v1565_v25 = vrot.slane %v1557_v13, %v5278_v19  ;;  %v5549_v13 = vsel %vm7572_vm0, %v5077_v47, %v5239_v46  ;;  %v1558_v46 = vcombine.high %v5474_v58, %v5462_v8 }
 0x1a7   : > { %v830_v29 = vpop.permute.xlu0 %829  ;;  %2045 = vrot.lane.b32.xlu0 %v1607_v43, %s4863_s27  ;;  %v1637_v21 = vrot.slane %v1629_v53, %v5251_v9  ;;  %v1610_v6 = vcombine.high %v1565_v25, %v1597_v36 }
 0x1a8   : > { %v5503_v7 = vsel %vm7572_vm0, %v5218_v49, %v830_v29  ;;  %v5521_v32 = vpop.permute.xlu1 %789  ;;  %v1609_v29 = vcombine.low %v1565_v25, %v1597_v36 }
 0x1a9   : > { %v1677_v37 = vcombine.low %v1621_v14, %v1637_v21 }
 0x1ab   : > { %v841_v23 = vpop.permute.xlu0 %840  ;;  %2057 = vrot.lane.b32.xlu0 %v7652_v18, %s4864_s29  ;;  %v5537_v28 = vrot.slane %v1677_v37, %v5278_v19 }
 0x1ac   : > { %v5515_v3 = vsel %vm7572_vm0, %v5223_v33, %v841_v23  ;;  %v5534_v23 = vpop.permute.xlu1 %800 }
 0x1af   : > { %v852_v1 = vpop.permute.xlu0 %851  ;;  %2061 = vrot.lane.b32.xlu0 %v1608_v45, %s4864_s29 }
 0x1b0   : > { %v5496_v27 = vsel %vm7572_vm0, %v5228_v56, %v852_v1  ;;  %v7653_v56 = vcombine.low %v5293_v59, %v5302_v48  ;;  %v7654_v1 = vcombine.high %v5293_v59, %v5302_v48  ;;  %v5562_v59 = vsel %vm7572_vm0, %v5083_v51, %v5242_v2  ;;  %v7655_v51 = vld [vmem:[#allocation16_spill] sm:$0xff]  ;;  %v5599_v36 = vpop.permute.xlu1 %811 }
 0x1b1   : > { %v1645_v4 = vcombine.low %v5503_v7, %v5496_v27  ;;  %v1678_v48 = vcombine.high %v1621_v14, %v1637_v21  ;;  %v5583_v2 = vsel %vm7572_vm0, %v7655_v51, %v5236_v10  ;;  %v7666_v51 = vld [vmem:[#allocation26_spill] sm:$0xff] }
 0x1b2   : > { %v1205_v25 = vcombine.low %v5583_v2, %v5562_v59 }
 0x1b3   : > { %2073 = vrot.lane.b32.xlu0 %v7653_v56, %s4865_s30  ;;  %v863_v30 = vpop.permute.xlu0 %862  ;;  %v1653_v0 = vrot.slane %v1645_v4, %v5251_v9  ;;  %v1692_v37 = vrot.slane %v1678_v48, %v5278_v19 }
 0x1b4   : > { %v5519_v49 = vsel %vm7572_vm0, %v5233_v26, %v863_v30  ;;  %v5532_v26 = vsel %vm7572_vm0, %v5088_v54, %v5248_v39  ;;  %v5554_v54 = vsel %vm7572_vm0, %v5108_v5, %v5271_v15  ;;  %v1590_v39 = vcombine.high %v1524_v35, %v5459_v40  ;;  %v7657_v35 = vld [vmem:[#allocation17_spill] sm:$0xff] }
 0x1b5   : > { %v1661_v43 = vcombine.low %v5515_v3, %v5519_v49  ;;  %v1221_v47 = vcombine.low %v5549_v13, %v5532_v26  ;;  %v5571_v5 = vsel %vm7572_vm0, %v5098_v60, %v5263_v42  ;;  %v5576_v15 = vsel %vm7572_vm0, %v5103_v63, %v5265_v24  ;;  %v7656_v42 = vld [vmem:[#allocation43_spill] sm:$0xff]  ;;  %v7658_v24 = vld [vmem:[#allocation33_spill] sm:$0xff] }
 0x1b6   : > { %v1253_v8 = vcombine.low %v5571_v5, %v5554_v54  ;;  %v5592_v63 = vsel %vm7572_vm0, %v7657_v35, %v7656_v42  ;;  %v5596_v40 = vsel %vm7572_vm0, %v7658_v24, %v779_v16  ;;  %v1604_v58 = vrot.slane %v1590_v39, %v5278_v19  ;;  %v7659_v16 = vld [vmem:[#allocation31_spill] sm:$0xff] }
 0x1b7   : > { %v1669_v18 = vrot.slane %v1661_v43, %v5251_v9  ;;  %2077 = vrot.lane.b32.xlu0 %v1609_v29, %s4865_s30  ;;  %v5605_v21 = vrot.slane %v1221_v47, %v5251_v9  ;;  %v1237_v56 = vcombine.low %v5592_v63, %v5576_v15  ;;  %v1572_v30 = vrot.slane %v1558_v46, %v5278_v19  ;;  %v7660_v43 = vld [vmem:[#allocation32_spill] sm:$0xff] }
 0x1b8   : > { %v5613_v14 = vsel %vm7572_vm0, %v7659_v16, %v5449_v57  ;;  %v5618_v29 = vsel %vm7572_vm0, %v7660_v43, %v5456_v34  ;;  %v5630_v57 = vrot.slane %v1253_v8, %v5251_v9  ;;  %v1662_v47 = vcombine.high %v5515_v3, %v5519_v49  ;;  %v7667_v8 = vld [vmem:[#allocation27_spill] sm:$0xff]  ;;  %v5668_v49 = vpop.permute.xlu1 %822 }
 0x1b9   : > { %v1709_v33 = vcombine.low %v1653_v0, %v1669_v18  ;;  %v1710_v53 = vcombine.high %v1653_v0, %v1669_v18  ;;  %v7661_v0 = vcombine.low %v5310_v50, %v5305_v17  ;;  %v7662_v18 = vcombine.low %v5367_v12, %v5376_v55 }
 0x1ba   : > { %v1611_v46 = vcombine.low %v1572_v30, %v1604_v58  ;;  %v5662_v42 = vsel %vm7572_vm0, %v7667_v8, %v5408_v11  ;;  %v1630_v35 = vcombine.high %v5479_v62, %v5471_v38  ;;  %v1213_v11 = vrot.slane %v1205_v25, %v5251_v9 }
 0x1bb   : > { %v5540_v45 = vrot.slane %v1709_v33, %v5278_v19  ;;  %2089 = vrot.lane.b32.xlu0 %v7654_v1, %s4866_s2  ;;  %v1724_v10 = vrot.slane %v1710_v53, %v5278_v19  ;;  %v7663_v33 = vld [vmem:[#allocation28_spill] sm:$0xff]  ;;  %v7664_v1 = vld [vmem:[#allocation29_spill] sm:$0xff]  ;;  %v1797_v53 = vcombine.low %v5613_v14, %v5596_v40  ;;  %v1614_v38 = vcombine.high %v5492_v52, %v5483_v20 }
 0x1bc   : > { %v5635_v34 = vsel %vm7572_vm0, %v7663_v33, %v5420_v44  ;;  %v5640_v39 = vsel %vm7572_vm0, %v7664_v1, %v5431_v61  ;;  %v5652_v44 = vrot.slane %v1237_v56, %v5251_v9  ;;  %v5657_v61 = vsel %vm7572_vm0, %v7666_v51, %v5406_v31 }
 0x1bd   : > { %v1742_v4 = vcombine.high %v5537_v28, %v5540_v45  ;;  %v1743_v48 = vcombine.low %v1692_v37, %v1724_v10  ;;  %v1765_v3 = vcombine.low %v5662_v42, %v5640_v39  ;;  %v1646_v31 = vcombine.high %v5503_v7, %v5496_v27 }
 0x1be   : > { %v1301_v24 = vcombine.low %v5652_v44, %v5630_v57  ;;  %v1749_v56 = vcombine.low %v5657_v61, %v5635_v34  ;;  %v5682_v16 = vrot.slane %v1797_v53, %v5251_v9  ;;  %v5687_v62 = vrot.slane %v1662_v47, %v5251_v9 }
 0x1bf   : > { %2093 = vrot.lane.b32.xlu0 %v1610_v6, %s4866_s2  ;;  %2031 = vrot.lane.b32.xlu1 %v1742_v4, %s4862_s18  ;;  %v7665_v6 = vld [vmem:[#allocation30_spill] sm:$0xff]  ;;  %v1269_v27 = vcombine.low %v1213_v11, %v5605_v21  ;;  %v5694_v25 = vrot.slane %v1765_v3, %v5251_v9  ;;  %v5697_v43 = vrot.slane %v1630_v35, %v5251_v9 }
 0x1c0   : > { %v5647_v4 = vsel %vm7572_vm0, %v7665_v6, %v5440_v41  ;;  %v7668_v20 = vcombine.high %v5310_v50, %v5305_v17  ;;  %v7669_v52 = vcombine.high %v5367_v12, %v5376_v55  ;;  %v5712_v33 = vrot.slane %v1749_v56, %v5251_v9  ;;  %v5719_v6 = vpop.permute.xlu1 %833 }
 0x1c1   : > { %v1781_v41 = vcombine.low %v5647_v4, %v5618_v29  ;;  %v5717_v53 = vrot.slane %v1614_v38, %v5251_v9  ;;  %v1612_v50 = vcombine.high %v1572_v30, %v1604_v58  ;;  %v1744_v47 = vcombine.high %v1692_v37, %v1724_v10  ;;  %v7670_v37 = vld [vmem:[#allocation56_spill] sm:$0xff] }
 0x1c2   : > { %v1277_v12 = vrot.slane %v1269_v27, %v5278_v19  ;;  %v1813_v55 = vcombine.low %v5712_v33, %v5694_v25  ;;  %v1302_v56 = vcombine.high %v5652_v44, %v5630_v57  ;;  %v7674_v44 = vld [vmem:[#allocation50_spill] sm:$0xff] }
 0x1c3   : > { %2105 = vrot.lane.b32.xlu0 %v7661_v0, %s4867_s5  ;;  %2043 = vrot.lane.b32.xlu1 %v7662_v18, %s4863_s27  ;;  %v5691_v7 = vrot.slane %v1781_v41, %v5251_v9  ;;  %v5700_v0 = vrot.slane %v1646_v31, %v5251_v9  ;;  %v1309_v18 = vrot.slane %v1301_v24, %v5278_v19 }
 0x1c4   : > { %v1821_v58 = vrot.slane %v1813_v55, %v5278_v19  ;;  %v845_v30 = vpop.permute.xlu1 %844  ;;  %v7671_v41 = vcombine.low %v5370_v22, %v7670_v37  ;;  %v1270_v31 = vcombine.high %v1213_v11, %v5605_v21  ;;  %v1254_v24 = vcombine.high %v5571_v5, %v5554_v54  ;;  %v7672_v11 = vld [vmem:[#allocation49_spill] sm:$0xff] }
 0x1c5   : > { %v1845_v1 = vcombine.low %v5691_v7, %v5682_v16  ;;  %v1725_v17 = vcombine.low %v5700_v0, %v5687_v62  ;;  %v1333_v8 = vcombine.low %v1277_v12, %v1309_v18  ;;  %v1334_v27 = vcombine.high %v1277_v12, %v1309_v18  ;;  %v7675_v18 = vld [vmem:[#allocation21_spill] sm:$0xff]  ;;  %v7681_v12 = vld [vmem:[#allocation59_spill] sm:$0xff] }
 0x1c6   : > { %v5751_v21 = vrot.slane %v1270_v31, %v5278_v19  ;;  %v1238_v54 = vcombine.high %v5592_v63, %v5576_v15  ;;  %v5756_v5 = vrot.slane %v1254_v24, %v5251_v9  ;;  %v7677_v15 = vld [vmem:[#allocation45_spill] sm:$0xff]  ;;  %v7683_v31 = vld [vmem:[#allocation52_spill] sm:$0xff]  ;;  %v7684_v24 = vld [vmem:[#allocation23_spill] sm:$0xff] }
 0x1c7   : > { %2109 = vrot.lane.b32.xlu0 %v1611_v46, %s4867_s5  ;;  %2047 = vrot.lane.b32.xlu1 %v1743_v48, %s4863_s27  ;;  %v1693_v46 = vcombine.low %v5717_v53, %v5697_v43  ;;  %v1853_v48 = vrot.slane %v1845_v1, %v5278_v19  ;;  %v1733_v51 = vrot.slane %v1725_v17, %v5278_v19  ;;  %v7673_v1 = vld [vmem:[#allocation20_spill] sm:$0xff]  ;;  %v7682_v55 = vld [vmem:[#allocation25_spill] sm:$0xff] }
 0x1c8   : > { %v856_v38 = vpop.permute.xlu1 %855  ;;  %v5761_v57 = vsel %vm7572_vm0, %v7673_v1, %v7672_v11  ;;  %v7679_v17 = vld [vmem:[#allocation48_spill] sm:$0xff]  ;;  %v7687_v1 = vld [vmem:[#allocation51_spill] sm:$0xff] }
 0x1c9   : > { %v1701_v10 = vrot.slane %v1693_v46, %v5278_v19  ;;  %v1877_v3 = vcombine.low %v1821_v58, %v1853_v48  ;;  %v5789_v46 = vsel %vm7572_vm0, %v7682_v55, %v7681_v12  ;;  %v7686_v11 = vld [vmem:[#allocation24_spill] sm:$0xff]  ;;  %v7690_v12 = vld [vmem:[#allocation58_spill] sm:$0xff]  ;;  %v7691_v55 = vld [vmem:[#allocation57_spill] sm:$0xff] }
 0x1cb   : > { %2121 = vrot.lane.b32.xlu0 %v7668_v20, %s4868_s12  ;;  %2059 = vrot.lane.b32.xlu1 %v7669_v52, %s4864_s29  ;;  %v1745_v35 = vcombine.low %v1701_v10, %v1733_v51  ;;  %v1206_v20 = vcombine.high %v5583_v2, %v5562_v59  ;;  %v1222_v52 = vcombine.high %v5549_v13, %v5532_v26  ;;  %v7678_v2 = vld [vmem:[#allocation18_spill] sm:$0xff] }
 0x1cc   : > { %v5766_v59 = vsel %vm7572_vm0, %v7675_v18, %v7674_v44  ;;  %v7676_v26 = vcombine.high %v5370_v22, %v7670_v37  ;;  %v5774_v13 = vrot.slane %v1302_v56, %v5278_v19  ;;  %v5779_v63 = vsel %vm7572_vm0, %v7678_v2, %v7677_v15  ;;  %v7688_v44 = vld [vmem:[#allocation22_spill] sm:$0xff] }
 0x1cd   : > { %v1846_v22 = vcombine.high %v5691_v7, %v5682_v16  ;;  %v1878_v37 = vcombine.high %v1821_v58, %v1853_v48  ;;  %v5802_v56 = vsel %vm7572_vm0, %v7684_v24, %v7683_v31  ;;  %v1814_v7 = vcombine.high %v5712_v33, %v5694_v25  ;;  %v867_v48 = vpop.permute.xlu1 %866  ;;  %v7695_v31 = vld [vmem:[#allocation40_spill] sm:$0xff] }
 0x1ce   : > { %v5821_v58 = vrot.slane %v1222_v52, %v5251_v9  ;;  %v5829_v25 = vsel %vm7572_vm0, %v7688_v44, %v7687_v1  ;;  %v5872_v24 = vsel %vm7572_vm0, %v7695_v31, %v856_v38  ;;  %v1766_v1 = vcombine.high %v5662_v42, %v5640_v39  ;;  %v7699_v39 = vld [vmem:[#allocation34_spill] sm:$0xff] }
 0x1cf   : > { %2125 = vrot.lane.b32.xlu0 %v1612_v50, %s4868_s12  ;;  %2063 = vrot.lane.b32.xlu1 %v1744_v47, %s4864_s29  ;;  %v7680_v50 = vld [vmem:[#allocation19_spill] sm:$0xff]  ;;  %v1860_v33 = vrot.slane %v1846_v22, %v5278_v19  ;;  %v7692_v22 = vcombine.low %v7690_v12, %v7691_v55  ;;  %v5914_v42 = vsel %vm7572_vm0, %v7699_v39, %v5521_v32 }
 0x1d0   : > { %v5784_v47 = vsel %vm7572_vm0, %v7680_v50, %v7679_v17  ;;  %v1828_v17 = vrot.slane %v1814_v7, %v5278_v19  ;;  %v7697_v7 = vld [vmem:[#allocation36_spill] sm:$0xff] }
 0x1d1   : > { %v5889_v38 = vsel %vm7572_vm0, %v7697_v7, %v5599_v36 }
 0x1d2   : > { %v1885_v44 = vcombine.low %v5914_v42, %v5889_v38 }
 0x1d3   : > { %2137 = vrot.lane.b32.xlu0 %v1333_v8, %s4869_s13  ;;  %2075 = vrot.lane.b32.xlu1 %v7671_v41, %s4865_s30  ;;  %v1726_v8 = vcombine.high %v5700_v0, %v5687_v62  ;;  %v1746_v41 = vcombine.high %v1701_v10, %v1733_v51  ;;  %v1389_v62 = vcombine.low %v5802_v56, %v5789_v46 }
 0x1d4   : > { %v1694_v0 = vcombine.high %v5717_v53, %v5697_v43  ;;  %v5818_v51 = vrot.slane %v1206_v20, %v5251_v9  ;;  %v5824_v10 = vrot.slane %v1238_v54, %v5251_v9  ;;  %v1335_v20 = vcombine.low %v5751_v21, %v5774_v13 }
 0x1d5   : > { %v1740_v53 = vrot.slane %v1726_v8, %v5278_v19  ;;  %v5850_v2 = vrot.slane %v1389_v62, %v5251_v9  ;;  %v1798_v8 = vcombine.high %v5613_v14, %v5596_v40  ;;  %v1879_v40 = vcombine.low %v1828_v17, %v1860_v33  ;;  %v7696_v62 = vld [vmem:[#allocation35_spill] sm:$0xff] }
 0x1d6   : > { %v1317_v52 = vcombine.low %v5824_v10, %v5756_v5  ;;  %v1708_v50 = vrot.slane %v1694_v0, %v5278_v19  ;;  %v7698_v0 = vld [vmem:[#allocation38_spill] sm:$0xff] }
 0x1d7   : > { %2141 = vrot.lane.b32.xlu0 %v1877_v3, %s4869_s13  ;;  %2079 = vrot.lane.b32.xlu1 %v1745_v35, %s4865_s30  ;;  %v1341_v3 = vcombine.low %v5779_v63, %v5761_v57  ;;  %v1357_v35 = vcombine.low %v5784_v47, %v5766_v59 }
 0x1d8   : > { %v1747_v14 = vcombine.low %v1708_v50, %v1740_v53 }
 0x1d9   : > { %v5840_v54 = vrot.slane %v1341_v3, %v5251_v9  ;;  %v5843_v18 = vrot.slane %v1357_v35, %v5251_v9  ;;  %v7694_v3 = vld [vmem:[#allocation39_spill] sm:$0xff] }
 0x1da   : > { %v5868_v35 = vsel %vm7572_vm0, %v7694_v3, %v845_v30  ;;  %v5884_v30 = vsel %vm7572_vm0, %v7696_v62, %v5534_v23 }
 0x1db   : > { %2153 = vrot.lane.b32.xlu0 %v1334_v27, %s4870_s15  ;;  %2091 = vrot.lane.b32.xlu1 %v7676_v26, %s4866_s2  ;;  %v7685_v27 = vld [vmem:[#allocation53_spill] sm:$0xff] }
 0x1dc   : > { %v5807_v16 = vsel %vm7572_vm0, %v7686_v11, %v7685_v27  ;;  %v7689_v26 = vld [vmem:[#allocation41_spill] sm:$0xff] }
 0x1dd   : > { %v1373_v43 = vcombine.low %v5829_v25, %v5807_v16  ;;  %v5847_v15 = vsel %vm7572_vm0, %v7689_v26, %v867_v48  ;;  %v5894_v48 = vsel %vm7572_vm0, %v7698_v0, %v5719_v6  ;;  %v5909_v6 = vrot.slane %v1798_v8, %v5251_v9 }
 0x1de   : > { %v1933_v11 = vcombine.low %v5868_v35, %v5847_v15  ;;  %v1917_v23 = vcombine.low %v5894_v48, %v5872_v24  ;;  %v1285_v26 = vcombine.low %v5818_v51, %v5821_v58 }
 0x1df   : > { %2157 = vrot.lane.b32.xlu0 %v1878_v37, %s4870_s15  ;;  %2095 = vrot.lane.b32.xlu1 %v1746_v41, %s4866_s2  ;;  %v7693_v37 = vld [vmem:[#allocation37_spill] sm:$0xff]  ;;  %v5875_v27 = vrot.slane %v1373_v43, %v5251_v9 }
 0x1e0   : > { %v5864_v41 = vsel %vm7572_vm0, %v7693_v37, %v5668_v49  ;;  %v1782_v49 = vcombine.high %v5647_v4, %v5618_v29  ;;  %v1750_v4 = vcombine.high %v5657_v61, %v5635_v34  ;;  %v1941_v43 = vrot.slane %v1933_v11, %v5251_v9 }
 0x1e1   : > { %v1901_v29 = vcombine.low %v5884_v30, %v5864_v41  ;;  %v1437_v36 = vcombine.low %v5875_v27, %v5850_v2  ;;  %v1405_v34 = vcombine.low %v5840_v54, %v5843_v18  ;;  %v1925_v8 = vrot.slane %v1917_v23, %v5251_v9 }
 0x1e2   : > { %v1796_v61 = vrot.slane %v1782_v49, %v5251_v9  ;;  %v1764_v3 = vrot.slane %v1750_v4, %v5251_v9  ;;  %v1893_v11 = vrot.slane %v1885_v44, %v5251_v9  ;;  %v1748_v49 = vcombine.high %v1708_v50, %v1740_v53 }
 0x1e3   : > { %2169 = vrot.lane.b32.xlu0 %v1335_v20, %s4871_s16  ;;  %2107 = vrot.lane.b32.xlu1 %v7692_v22, %s4867_s5  ;;  %v1336_v20 = vcombine.high %v5751_v21, %v5774_v13  ;;  %v1780_v22 = vrot.slane %v1766_v1, %v5251_v9  ;;  %v1909_v32 = vrot.slane %v1901_v29, %v5251_v9  ;;  %vm2336_vm0 = vcmask 261120  }
 0x1e4   : > { %v7700_v21 = vcombine.high %v7690_v12, %v7691_v55  ;;  %v1325_v13 = vrot.slane %v1317_v52, %v5278_v19  ;;  %v1445_v37 = vrot.slane %v1437_v36, %v5278_v19  ;;  %v1861_v31 = vcombine.low %v1796_v61, %v5909_v6 }
 0x1e5   : > { %v1293_v62 = vrot.slane %v1285_v26, %v5278_v19  ;;  %v1413_v7 = vrot.slane %v1405_v34, %v5278_v19  ;;  %v1829_v0 = vcombine.low %v1764_v3, %v1780_v22  ;;  %v1949_v12 = vcombine.low %v1893_v11, %v1909_v32 }
 0x1e6   : > { %v1869_v52 = vrot.slane %v1861_v31, %v5278_v19  ;;  %v1318_v50 = vcombine.high %v5824_v10, %v5756_v5  ;;  %v1438_v36 = vcombine.high %v5875_v27, %v5850_v2  ;;  %v1286_v44 = vcombine.high %v5818_v51, %v5821_v58 }
 0x1e7   : > { %2173 = vrot.lane.b32.xlu0 %v1879_v40, %s4871_s16  ;;  %2111 = vrot.lane.b32.xlu1 %v1747_v14, %s4867_s5  ;;  %v1981_v40 = vcombine.low %v1925_v8, %v1941_v43  ;;  %v1880_v14 = vcombine.high %v1828_v17, %v1860_v33  ;;  %v1337_v1 = vcombine.low %v1293_v62, %v1325_v13 }
 0x1e8   : > { %v1469_v29 = vcombine.low %v1413_v7, %v1445_v37  ;;  %v1837_v23 = vrot.slane %v1829_v0, %v5278_v19  ;;  %v1957_v33 = vrot.slane %v1949_v12, %v5278_v19  ;;  %v1338_v4 = vcombine.high %v1293_v62, %v1325_v13 }
 0x1e9   : > { %v1989_v55 = vrot.slane %v1981_v40, %v5278_v19  ;;  %v1470_v39 = vcombine.high %v1413_v7, %v1445_v37  ;;  %v1332_v26 = vrot.slane %v1318_v50, %v5278_v19  ;;  %v1452_v5 = vrot.slane %v1438_v36, %v5278_v19 }
 0x1ea   : > { %v1881_v53 = vcombine.low %v1837_v23, %v1869_v52  ;;  %v1862_v10 = vcombine.high %v1796_v61, %v5909_v6  ;;  %v1982_v2 = vcombine.high %v1925_v8, %v1941_v43  ;;  %v1882_v27 = vcombine.high %v1837_v23, %v1869_v52 }
 0x1eb   : > { %2185 = vrot.lane.b32.xlu0 %v1336_v20, %s4872_s17  ;;  %2123 = vrot.lane.b32.xlu1 %v7700_v21, %s4868_s12  ;;  %v2013_v17 = vcombine.low %v1957_v33, %v1989_v55  ;;  %v1406_v20 = vcombine.high %v5840_v54, %v5843_v18  ;;  %v2014_v34 = vcombine.high %v1957_v33, %v1989_v55  ;;  %v7701_v55 = vld [vmem:[#allocation9_spill] sm:$0xff] }
 0x1ec   : > { %v1300_v21 = vrot.slane %v1286_v44, %v5278_v19  ;;  %v1830_v58 = vcombine.high %v1764_v3, %v1780_v22  ;;  %v1950_v54 = vcombine.high %v1893_v11, %v1909_v32  ;;  %v1390_v18 = vcombine.high %v5802_v56, %v5789_v46 }
 0x1ed   : > { %v1420_v51 = vrot.slane %v1406_v20, %v5278_v19  ;;  %v1876_v13 = vrot.slane %v1862_v10, %v5278_v19  ;;  %v1996_v6 = vrot.slane %v1982_v2, %v5278_v19  ;;  %v1374_v8 = vcombine.high %v5829_v25, %v5807_v16  ;;  %v7704_v2 = vld [vmem:[#allocation11_spill] sm:$0xff] }
 0x1ee   : > { %v1339_v43 = vcombine.low %v1300_v21, %v1332_v26  ;;  %v1358_v22 = vcombine.high %v5784_v47, %v5766_v59  ;;  %v1844_v32 = vrot.slane %v1830_v58, %v5278_v19  ;;  %v1964_v37 = vrot.slane %v1950_v54, %v5278_v19 }
 0x1ef   : > { %2189 = vrot.lane.b32.xlu0 %v1880_v14, %s4872_s17  ;;  %2127 = vrot.lane.b32.xlu1 %v1748_v49, %s4868_s12  ;;  %v1471_v61 = vcombine.low %v1420_v51, %v1452_v5  ;;  %v1404_v46 = vrot.slane %v1390_v18, %v5251_v9  ;;  %v1342_v56 = vcombine.high %v5779_v63, %v5761_v57 }
 0x1f0   : > { %v1934_v16 = vcombine.high %v5868_v35, %v5847_v15  ;;  %v1883_v25 = vcombine.low %v1844_v32, %v1876_v13  ;;  %v2015_v3 = vcombine.low %v1964_v37, %v1996_v6  ;;  %v1388_v59 = vrot.slane %v1374_v8, %v5251_v9 }
 0x1f1   : > { %v1372_v47 = vrot.slane %v1358_v22, %v5251_v9  ;;  %v1902_v31 = vcombine.high %v5884_v30, %v5864_v41  ;;  %v1918_v11 = vcombine.high %v5894_v48, %v5872_v24  ;;  %v1340_v63 = vcombine.high %v1300_v21, %v1332_v26  ;;  %v4645_v48 = vld [vmem:[%s5006_s4 + $0x40] sm:$0xff] }
 0x1f2   : > { %v1453_v57 = vcombine.low %v1388_v59, %v1404_v46  ;;  %v1356_v15 = vrot.slane %v1342_v56, %v5251_v9  ;;  %v1886_v35 = vcombine.high %v5914_v42, %v5889_v38  ;;  %v1948_v40 = vrot.slane %v1934_v16, %v5251_v9  ;;  %v6004_v38 = vpop.permute.xlu0 %2025  ;;  %v7707_v16 = vld [vmem:[#allocation14_spill] sm:$0xff] }
 0x1f3   : > { %2201 = vrot.lane.b32.xlu0 %v1337_v1, %s4873_s22  ;;  %2139 = vrot.lane.b32.xlu1 %v1469_v29, %s4869_s13  ;;  %v1472_v14 = vcombine.high %v1420_v51, %v1452_v5  ;;  %v1916_v41 = vrot.slane %v1902_v31, %v5251_v9  ;;  %v1932_v24 = vrot.slane %v1918_v11, %v5251_v9  ;;  %v4646_v11 = vld [vmem:[%s5006_s4 + $0x48] sm:$0xff] }
 0x1f4   : > { %v1421_v49 = vcombine.low %v1356_v15, %v1372_v47  ;;  %v1461_v30 = vrot.slane %v1453_v57, %v5278_v19  ;;  %v1900_v62 = vrot.slane %v1886_v35, %v5251_v9  ;;  %v1884_v42 = vcombine.high %v1844_v32, %v1876_v13  ;;  %v7705_v13 = vld [vmem:[#allocation12_spill] sm:$0xff]  ;;  %v7706_v32 = vld [vmem:[#allocation13_spill] sm:$0xff]  ;;  %v6045_v57 = vpop.permute.xlu1 %2027 }
 0x1f5   : > { %v1997_v7 = vcombine.low %v1932_v24, %v1948_v40  ;;  %v2016_v0 = vcombine.high %v1964_v37, %v1996_v6  ;;  %v2354_v1 = vrot.slane %v4645_v48, %v7701_v55  ;;  %v1454_v20 = vcombine.high %v1388_v59, %v1404_v46 }
 0x1f6   : > { %v1429_v12 = vrot.slane %v1421_v49, %v5278_v19  ;;  %v1965_v52 = vcombine.low %v1900_v62, %v1916_v41  ;;  %v1422_v10 = vcombine.high %v1356_v15, %v1372_v47  ;;  %v1998_v21 = vcombine.high %v1932_v24, %v1948_v40  ;;  %v7708_v47 = vld [vmem:[#allocation15_spill] sm:$0xff] }
 0x1f7   : > { %2205 = vrot.lane.b32.xlu0 %v1881_v53, %s4873_s22  ;;  %2143 = vrot.lane.b32.xlu1 %v2013_v17, %s4869_s13  ;;  %v2005_v29 = vrot.slane %v1997_v7, %v5278_v19  ;;  %v7702_v17 = vld [vmem:[#allocation8_spill] sm:$0xff]  ;;  %v1966_v18 = vcombine.high %v1900_v62, %v1916_v41  ;;  %v2398_v6 = vrot.slane %v4645_v48, %v7705_v13 }
 0x1f8   : > { %v1473_v33 = vcombine.low %v1429_v12, %v1461_v30  ;;  %v1973_v53 = vrot.slane %v1965_v52, %v5278_v19  ;;  %v2365_v50 = vrot.slane %v4645_v48, %v7702_v17  ;;  %v1474_v5 = vcombine.high %v1429_v12, %v1461_v30 }
 0x1f9   : > { %v1436_v54 = vrot.slane %v1422_v10, %v5278_v19  ;;  %v1980_v22 = vrot.slane %v1966_v18, %v5278_v19  ;;  %v2409_v37 = vrot.slane %v4645_v48, %v7706_v32  ;;  %v2431_v31 = vrot.slane %v4645_v48, %v7708_v47 }
 0x1fa   : > { %v2018_v58 = vcombine.high %v1973_v53, %v2005_v29  ;;  %v2442_v35 = vrot.slane %v4646_v11, %v7701_v55  ;;  %v2453_v49 = vrot.slane %v4646_v11, %v7702_v17  ;;  %v2475_v7 = vrot.slane %v4646_v11, %v7704_v2 }
 0x1fb   : > { %2217 = vrot.lane.b32.xlu0 %v1338_v4, %s4874_s23  ;;  %2155 = vrot.lane.b32.xlu1 %v1470_v39, %s4870_s15  ;;  %v2017_v4 = vcombine.low %v1973_v53, %v2005_v29  ;;  %v7703_v39 = vld [vmem:[#allocation10_spill] sm:$0xff]  ;;  %v2486_v12 = vrot.slane %v4646_v11, %v7705_v13  ;;  %v2497_v29 = vrot.slane %v4646_v11, %v7706_v32 }
 0x1fc   : > { %v2376_v44 = vrot.slane %v4645_v48, %v7703_v39  ;;  %v2464_v30 = vrot.slane %v4646_v11, %v7703_v39 }
 0x1ff   : > { %2221 = vrot.lane.b32.xlu0 %v1882_v27, %s4874_s23  ;;  %2159 = vrot.lane.b32.xlu1 %v2014_v34, %s4870_s15  ;;  %v2387_v27 = vrot.slane %v4645_v48, %v7704_v2  ;;  %v1468_v34 = vrot.slane %v1454_v20, %v5278_v19  ;;  %v2519_v20 = vrot.slane %v4646_v11, %v7708_v47 }
 0x201   : > { %v1475_v8 = vcombine.low %v1436_v54, %v1468_v34  ;;  %v1476_v59 = vcombine.high %v1436_v54, %v1468_v34 }
 0x203   : > { %2233 = vrot.lane.b32.xlu0 %v1339_v43, %s4875_s24  ;;  %2171 = vrot.lane.b32.xlu1 %v1471_v61, %s4871_s16  ;;  %v2012_v43 = vrot.slane %v1998_v21, %v5278_v19  ;;  %v6146_v19 = vld [vmem:[%s5006_s4 + $0x58] sm:$0xff] }
 0x205   : > { %v2019_v56 = vcombine.low %v1980_v22, %v2012_v43  ;;  %v2020_v15 = vcombine.high %v1980_v22, %v2012_v43 }
 0x207   : > { %2237 = vrot.lane.b32.xlu0 %v1883_v25, %s4875_s24  ;;  %2175 = vrot.lane.b32.xlu1 %v2015_v3, %s4871_s16  ;;  %v2420_v25 = vrot.slane %v4645_v48, %v7707_v16 }
 0x20b   : > { %2249 = vrot.lane.b32.xlu0 %v1340_v63, %s4876_s25  ;;  %2187 = vrot.lane.b32.xlu1 %v1472_v14, %s4872_s17 }
 0x20f   : > { %2253 = vrot.lane.b32.xlu0 %v1884_v42, %s4876_s25  ;;  %2191 = vrot.lane.b32.xlu1 %v2016_v0, %s4872_s17 }
 0x211   : > { %v6011_v23 = vpop.permute.xlu0 %2029 }
 0x213   : > { %2356 = vbcast.lane.b32.xlu0 %v2354_v1, 256  ;;  %2203 = vrot.lane.b32.xlu1 %v1473_v33, %s4873_s22 }
 0x215   : > { %v6016_v36 = vpop.permute.xlu0 %2041 }
 0x217   : > { %2367 = vbcast.lane.b32.xlu0 %v2365_v50, 256  ;;  %2207 = vrot.lane.b32.xlu1 %v2017_v4, %s4873_s22 }
 0x219   : > { %v6020_v26 = vpop.permute.xlu0 %2045 }
 0x21b   : > { %2378 = vbcast.lane.b32.xlu0 %v2376_v44, 256  ;;  %2219 = vrot.lane.b32.xlu1 %v1474_v5, %s4874_s23  ;;  %v4647_v5 = vld [vmem:[%s5006_s4 + $0x50] sm:$0xff] }
 0x21c   : > { %v2530_v34 = vrot.slane %v4647_v5, %v7701_v55  ;;  %v6097_v54 = vrot.slane %v4647_v5, %v7702_v17  ;;  %v6105_v43 = vrot.slane %v4647_v5, %v7703_v39 }
 0x21d   : > { %v6025_v51 = vpop.permute.xlu0 %2057 }
 0x21f   : > { %2389 = vbcast.lane.b32.xlu0 %v2387_v27, 256  ;;  %2223 = vrot.lane.b32.xlu1 %v2018_v58, %s4874_s23 }
 0x221   : > { %v6031_v61 = vpop.permute.xlu0 %2061 }
 0x223   : > { %2400 = vbcast.lane.b32.xlu0 %v2398_v6, 256  ;;  %2235 = vrot.lane.b32.xlu1 %v1475_v8, %s4875_s24 }
 0x225   : > { %v6036_v46 = vpop.permute.xlu0 %2073 }
 0x227   : > { %2411 = vbcast.lane.b32.xlu0 %v2409_v37, 256  ;;  %2239 = vrot.lane.b32.xlu1 %v2019_v56, %s4875_s24 }
 0x229   : > { %v6040_v3 = vpop.permute.xlu0 %2077 }
 0x22b   : > { %2422 = vbcast.lane.b32.xlu0 %v2420_v25, 256  ;;  %2251 = vrot.lane.b32.xlu1 %v1476_v59, %s4876_s25  ;;  %v6121_v59 = vrot.slane %v4647_v5, %v7705_v13 }
 0x22d   : > { %v6047_v63 = vpop.permute.xlu0 %2089 }
 0x22f   : > { %2433 = vbcast.lane.b32.xlu0 %v2431_v31, 256  ;;  %2255 = vrot.lane.b32.xlu1 %v2020_v15, %s4876_s25  ;;  %v6129_v15 = vrot.slane %v4647_v5, %v7706_v32 }
 0x231   : > { %v6051_v40 = vpop.permute.xlu1 %2031  ;;  %v6053_v14 = vpop.permute.xlu0 %2093 }
 0x233   : > { %2444 = vbcast.lane.b32.xlu0 %v2442_v35, 256  ;;  %2360 = vbcast.lane.b32.xlu1 %v2354_v1, 264 }
 0x235   : > { %v6056_v41 = vpop.permute.xlu1 %2043  ;;  %v6058_v24 = vpop.permute.xlu0 %2105 }
 0x237   : > { %2455 = vbcast.lane.b32.xlu0 %v2453_v49, 256  ;;  %2371 = vbcast.lane.b32.xlu1 %v2365_v50, 264  ;;  %v2508_v50 = vrot.slane %v4646_v11, %v7707_v16 }
 0x239   : > { %v6061_v48 = vpop.permute.xlu1 %2047  ;;  %v6063_v62 = vpop.permute.xlu0 %2109 }
 0x23b   : > { %2466 = vbcast.lane.b32.xlu0 %v2464_v30, 256  ;;  %2382 = vbcast.lane.b32.xlu1 %v2376_v44, 264 }
 0x23d   : > { %v6066_v42 = vpop.permute.xlu1 %2059  ;;  %v6068_v0 = vpop.permute.xlu0 %2121 }
 0x23f   : > { %2477 = vbcast.lane.b32.xlu0 %v2475_v7, 256  ;;  %2393 = vbcast.lane.b32.xlu1 %v2387_v27, 264 }
 0x241   : > { %v6071_v52 = vpop.permute.xlu1 %2063  ;;  %v6073_v1 = vpop.permute.xlu0 %2125 }
 0x243   : > { %2488 = vbcast.lane.b32.xlu0 %v2486_v12, 256  ;;  %2404 = vbcast.lane.b32.xlu1 %v2398_v6, 264 }
 0x245   : > { %v6076_v33 = vpop.permute.xlu1 %2075  ;;  %v6078_v53 = vpop.permute.xlu0 %2137 }
 0x247   : > { %2499 = vbcast.lane.b32.xlu0 %v2497_v29, 256  ;;  %2415 = vbcast.lane.b32.xlu1 %v2409_v37, 264  ;;  %v6113_v37 = vrot.slane %v4647_v5, %v7704_v2 }
 0x249   : > { %v6081_v4 = vpop.permute.xlu1 %2079  ;;  %v6083_v44 = vpop.permute.xlu0 %2141 }
 0x24a   : > { %7709 = vst [vmem:[#allocation16_spill] sm:$0xff] %v6081_v4 }
 0x24b   : > { %2510 = vbcast.lane.b32.xlu0 %v2508_v50, 256  ;;  %2426 = vbcast.lane.b32.xlu1 %v2420_v25, 264 }
 0x24d   : > { %v6087_v10 = vpop.permute.xlu1 %2091  ;;  %v6089_v27 = vpop.permute.xlu0 %2153 }
 0x24f   : > { %2521 = vbcast.lane.b32.xlu0 %v2519_v20, 256  ;;  %2437 = vbcast.lane.b32.xlu1 %v2431_v31, 264 }
 0x251   : > { %v6092_v21 = vpop.permute.xlu1 %2095  ;;  %v6094_v58 = vpop.permute.xlu0 %2157 }
 0x252   : > { %7710 = vst [vmem:[#allocation43_spill] sm:$0xff] %v6092_v21 }
 0x253   : > { %2532 = vbcast.lane.b32.xlu0 %v2530_v34, 256  ;;  %2448 = vbcast.lane.b32.xlu1 %v2442_v35, 264 }
 0x255   : > { %v6099_v18 = vpop.permute.xlu1 %2107  ;;  %v6101_v6 = vpop.permute.xlu0 %2169 }
 0x257   : > { %2543 = vbcast.lane.b32.xlu0 %v6097_v54, 256  ;;  %2459 = vbcast.lane.b32.xlu1 %v2453_v49, 264 }
 0x259   : > { %v6107_v8 = vpop.permute.xlu1 %2111  ;;  %v6109_v22 = vpop.permute.xlu0 %2173 }
 0x25a   : > { %7711 = vst [vmem:[#allocation17_spill] sm:$0xff] %v6107_v8 }
 0x25b   : > { %2470 = vbcast.lane.b32.xlu1 %v2464_v30, 264  ;;  %2554 = vbcast.lane.b32.xlu0 %v6105_v43, 256  ;;  %v6135_v30 = vrot.slane %v4647_v5, %v7707_v16 }
 0x25d   : > { %v6115_v56 = vpop.permute.xlu1 %2123  ;;  %v6117_v25 = vpop.permute.xlu0 %2185 }
 0x25f   : > { %2481 = vbcast.lane.b32.xlu1 %v2475_v7, 264  ;;  %2565 = vbcast.lane.b32.xlu0 %v6113_v37, 256 }
 0x261   : > { %v6123_v31 = vpop.permute.xlu1 %2127  ;;  %v6125_v11 = vpop.permute.xlu0 %2189 }
 0x262   : > { %7712 = vst [vmem:[#allocation33_spill] sm:$0xff] %v6123_v31  ;;  %v7717_v31 = vld [vmem:[#allocation47_spill] sm:$0xff] }
 0x263   : > { %2492 = vbcast.lane.b32.xlu1 %v2486_v12, 264  ;;  %2576 = vbcast.lane.b32.xlu0 %v6121_v59, 256  ;;  %v6143_v12 = vrot.slane %v4647_v5, %v7708_v47 }
 0x265   : > { %v6131_v35 = vpop.permute.xlu1 %2139  ;;  %v2202_v49 = vpop.permute.xlu0 %2201 }
 0x266   : > { %7713 = vst [vmem:[#allocation31_spill] sm:$0xff] %v6131_v35 }
 0x267   : > { %2503 = vbcast.lane.b32.xlu1 %v2497_v29, 264  ;;  %2587 = vbcast.lane.b32.xlu0 %v6129_v15, 256 }
 0x269   : > { %v6137_v7 = vpop.permute.xlu1 %2143  ;;  %v6139_v60 = vpop.permute.xlu0 %2205 }
 0x26a   : > { %7714 = vst [vmem:[#allocation32_spill] sm:$0xff] %v6137_v7  ;;  %v6153_v7 = vrot.slane %v6146_v19, %v7701_v55 }
 0x26b   : > { %2514 = vbcast.lane.b32.xlu1 %v2508_v50, 264  ;;  %2598 = vbcast.lane.b32.xlu0 %v6135_v30, 256  ;;  %v7716_v50 = vld [vmem:[#allocation46_spill] sm:$0xff] }
 0x26c   : > { %v7718_v5 = vcombine.low %v7716_v50, %v7717_v31 }
 0x26d   : > { %v6148_v9 = vpop.permute.xlu1 %2155  ;;  %v2218_v29 = vpop.permute.xlu0 %2217 }
 0x26e   : > { %7715 = vst [vmem:[#allocation28_spill] sm:$0xff] %v6148_v9  ;;  %v2262_v8 = vsel %vm2261_vm1, %v7718_v5, %v6004_v38  ;;  %v6171_v38 = vrot.slane %v6146_v19, %v7702_v17 }
 0x26f   : > { %2525 = vbcast.lane.b32.xlu1 %v2519_v20, 264  ;;  %2609 = vbcast.lane.b32.xlu0 %v6143_v12, 256  ;;  %v2267_v9 = vsel %vm2266_vm2, %v2262_v8, %v6016_v36  ;;  %v7719_v36 = vld [vmem:[#allocation60_spill] sm:$0xff]  ;;  %v7720_v8 = vld [vmem:[#allocation61_spill] sm:$0xff] }
 0x270   : > { %v2272_v35 = vsel %vm2271_vm3, %v2267_v9, %v6025_v51  ;;  %v7721_v31 = vcombine.low %v7719_v36, %v7720_v8 }
 0x271   : > { %v6162_v21 = vpop.permute.xlu1 %2159  ;;  %v2222_v20 = vpop.permute.xlu0 %2221  ;;  %v2277_v4 = vsel %vm2276_vm4, %v2272_v35, %v6036_v46 }
 0x272   : > { %v2264_v50 = vsel %vm2261_vm1, %v7721_v31, %v6011_v23  ;;  %v2282_v9 = vsel %vm2281_vm5, %v2277_v4, %v6047_v63 }
 0x273   : > { %2536 = vbcast.lane.b32.xlu1 %v2530_v34, 264  ;;  %2620 = vbcast.lane.b32.xlu0 %v6153_v7, 256  ;;  %v2269_v51 = vsel %vm2266_vm2, %v2264_v50, %v6020_v26  ;;  %v2287_v46 = vsel %vm2286_vm6, %v2282_v9, %v6058_v24  ;;  %v6198_v24 = vrot.slane %v6146_v19, %v7703_v39 }
 0x274   : > { %v2274_v5 = vsel %vm2271_vm3, %v2269_v51, %v6031_v61  ;;  %v2292_v23 = vsel %vm2291_vm7, %v2287_v46, %v6068_v0 }
 0x275   : > { %v6184_v34 = vpop.permute.xlu1 %2171  ;;  %v2234_v35 = vpop.permute.xlu0 %2233  ;;  %v2279_v63 = vsel %vm2276_vm4, %v2274_v5, %v6040_v3  ;;  %v2297_v26 = vsel %vm2296_vm8, %v2292_v23, %v6078_v53 }
 0x276   : > { %v2284_v61 = vsel %vm2281_vm5, %v2279_v63, %v6053_v14  ;;  %v2302_v0 = vsel %vm2301_vm9, %v2297_v26, %v6089_v27  ;;  %v6277_v63 = vld [vmem:[%s5006_s4 + $0x60] sm:$0xff] }
 0x277   : > { %2547 = vbcast.lane.b32.xlu1 %v6097_v54, 264  ;;  %2631 = vbcast.lane.b32.xlu0 %v6171_v38, 256  ;;  %v2289_v3 = vsel %vm2286_vm6, %v2284_v61, %v6063_v62  ;;  %v2307_v53 = vsel %vm2306_vm10, %v2302_v0, %v6101_v6  ;;  %v6222_v6 = vrot.slane %v6146_v19, %v7704_v2  ;;  %v7723_v0 = vld [vmem:[#allocation55_spill] sm:$0xff] }
 0x278   : > { %v2294_v36 = vsel %vm2291_vm7, %v2289_v3, %v6073_v1  ;;  %v2312_v14 = vsel %vm2311_vm11, %v2307_v53, %v6117_v25  ;;  %v6285_v61 = vrot.slane %v6277_v63, %v7701_v55 }
 0x279   : > { %v6208_v4 = vpop.permute.xlu1 %2175  ;;  %v2238_v54 = vpop.permute.xlu0 %2237  ;;  %v2299_v27 = vsel %vm2296_vm8, %v2294_v36, %v6083_v44  ;;  %v2317_v62 = vsel %vm7582_vm12, %v2312_v14, %v2202_v49 }
 0x27a   : > { %v2304_v1 = vsel %vm2301_vm9, %v2299_v27, %v6094_v58  ;;  %v2322_v25 = vsel %vm7575_vm13, %v2317_v62, %v2218_v29  ;;  %v6245_v58 = vrot.slane %v6146_v19, %v7705_v13  ;;  %v6304_v27 = vrot.slane %v6277_v63, %v7702_v17 }
 0x27b   : > { %2558 = vbcast.lane.b32.xlu1 %v6105_v43, 264  ;;  %2642 = vbcast.lane.b32.xlu0 %v6198_v24, 256  ;;  %v2309_v44 = vsel %vm2306_vm10, %v2304_v1, %v6109_v22  ;;  %v2327_v49 = vsel %vm7574_vm14, %v2322_v25, %v2234_v35  ;;  %v6266_v35 = vrot.slane %v6146_v19, %v7707_v16 }
 0x27c   : > { %v2314_v31 = vsel %vm2311_vm11, %v2309_v44, %v6125_v11  ;;  %v7727_v44 = vld [vmem:[#allocation31_spill] sm:$0xff] }
 0x27d   : > { %v6230_v8 = vpop.permute.xlu1 %2187  ;;  %v2250_v43 = vpop.permute.xlu0 %2249  ;;  %v2319_v9 = vsel %vm7582_vm12, %v2314_v31, %v6139_v60 }
 0x27e   : > { %v2332_v50 = vsel %vm7573_vm15, %v2327_v49, %v2250_v43  ;;  %v2324_v22 = vsel %vm7575_vm13, %v2319_v9, %v2222_v20  ;;  %v7729_v49 = vld [vmem:[#allocation28_spill] sm:$0xff]  ;;  %v7730_v43 = vld [vmem:[#allocation17_spill] sm:$0xff] }
 0x27f   : > { %2337 = vst.msk [vmem:[%s6237_s3] sm:$0xff] %vm2336_vm0, %v2332_v50  ;;  %2569 = vbcast.lane.b32.xlu1 %v6113_v37, 264  ;;  %2653 = vbcast.lane.b32.xlu0 %v6222_v6, 256  ;;  %v2329_v11 = vsel %vm7574_vm14, %v2324_v22, %v2238_v54  ;;  %v6258_v37 = vrot.slane %v6146_v19, %v7706_v32  ;;  %v7731_v22 = vld [vmem:[#allocation33_spill] sm:$0xff] }
 0x281   : > { %v6249_v29 = vpop.permute.xlu1 %2191  ;;  %v2254_v60 = vpop.permute.xlu0 %2253 }
 0x282   : > { %v2334_v51 = vsel %vm7573_vm15, %v2329_v11, %v2254_v60 }
 0x283   : > { %2339 = vst.msk [vmem:[%s6237_s3 + $0x10] sm:$0xff] %vm2336_vm0, %v2334_v51  ;;  %2580 = vbcast.lane.b32.xlu1 %v6121_v59, 264  ;;  %2664 = vbcast.lane.b32.xlu0 %v6245_v58, 256  ;;  %v6274_v59 = vrot.slane %v6146_v19, %v7708_v47  ;;  %v7732_v51 = vld [vmem:[#allocation32_spill] sm:$0xff] }
 0x285   : > { %v2204_v46 = vpop.permute.xlu1 %2203  ;;  %v6260_v20 = vpop.permute.xlu0 %2356 }
 0x287   : > { %2591 = vbcast.lane.b32.xlu1 %v6129_v15, 264  ;;  %2675 = vbcast.lane.b32.xlu0 %v6258_v37, 256 }
 0x289   : > { %v2208_v5 = vpop.permute.xlu1 %2207  ;;  %v6268_v23 = vpop.permute.xlu0 %2367 }
 0x28b   : > { %2602 = vbcast.lane.b32.xlu1 %v6135_v30, 264  ;;  %2686 = vbcast.lane.b32.xlu0 %v6266_v35, 256  ;;  %v7722_v30 = vld [vmem:[#allocation54_spill] sm:$0xff] }
 0x28c   : > { %v7724_v3 = vcombine.low %v7722_v30, %v7723_v0 }
 0x28d   : > { %v2220_v15 = vpop.permute.xlu1 %2219  ;;  %v6279_v26 = vpop.permute.xlu0 %2378 }
 0x28e   : > { %v2263_v19 = vsel %vm2261_vm1, %v7724_v3, %v6045_v57  ;;  %v7725_v57 = vcombine.low %v5537_v28, %v5540_v45  ;;  %v7726_v45 = vld [vmem:[#allocation16_spill] sm:$0xff] }
 0x28f   : > { %2613 = vbcast.lane.b32.xlu1 %v6143_v12, 264  ;;  %2697 = vbcast.lane.b32.xlu0 %v6274_v59, 256  ;;  %v2268_v53 = vsel %vm2266_vm2, %v2263_v19, %v6056_v41 }
 0x290   : > { %v2273_v12 = vsel %vm2271_vm3, %v2268_v53, %v6066_v42  ;;  %v2265_v41 = vsel %vm2261_vm1, %v7725_v57, %v6051_v40 }
 0x291   : > { %v2224_v54 = vpop.permute.xlu1 %2223  ;;  %v6294_v36 = vpop.permute.xlu0 %2389  ;;  %v2278_v14 = vsel %vm2276_vm4, %v2273_v12, %v6076_v33  ;;  %v2270_v33 = vsel %vm2266_vm2, %v2265_v41, %v6061_v48  ;;  %v6331_v48 = vrot.slane %v6277_v63, %v7703_v39 }
 0x292   : > { %v2283_v42 = vsel %vm2281_vm5, %v2278_v14, %v6087_v10  ;;  %v2275_v25 = vsel %vm2271_vm3, %v2270_v33, %v6071_v52 }
 0x293   : > { %2624 = vbcast.lane.b32.xlu1 %v6153_v7, 264  ;;  %2708 = vbcast.lane.b32.xlu0 %v6285_v61, 256  ;;  %v2288_v7 = vsel %vm2286_vm6, %v2283_v42, %v6099_v18  ;;  %v2280_v40 = vsel %vm2276_vm4, %v2275_v25, %v7726_v45  ;;  %v7728_v18 = vld [vmem:[#allocation43_spill] sm:$0xff]  ;;  %v6396_v25 = vld [vmem:[%s5006_s4 + $0x68] sm:$0xff] }
 0x294   : > { %v2293_v28 = vsel %vm2291_vm7, %v2288_v7, %v6115_v56  ;;  %v2285_v52 = vsel %vm2281_vm5, %v2280_v40, %v7728_v18 }
 0x295   : > { %v2236_v62 = vpop.permute.xlu1 %2235  ;;  %v6317_v1 = vpop.permute.xlu0 %2400  ;;  %v2298_v10 = vsel %vm2296_vm8, %v2293_v28, %v7727_v44  ;;  %v2290_v31 = vsel %vm2286_vm6, %v2285_v52, %v7730_v43 }
 0x296   : > { %v2303_v56 = vsel %vm2301_vm9, %v2298_v10, %v7729_v49  ;;  %v2295_v11 = vsel %vm2291_vm7, %v2290_v31, %v7731_v22  ;;  %v2860_v22 = vrot.slane %v6396_v25, %v7707_v16 }
 0x297   : > { %2635 = vbcast.lane.b32.xlu1 %v6171_v38, 264  ;;  %2719 = vbcast.lane.b32.xlu0 %v6304_v27, 256  ;;  %v2308_v50 = vsel %vm2306_vm10, %v2303_v56, %v6184_v34  ;;  %v2300_v30 = vsel %vm2296_vm8, %v2295_v11, %v7732_v51  ;;  %v2739_v34 = vrot.slane %v6277_v63, %v7704_v2  ;;  %v4651_v11 = vld [vmem:[%s5006_s4 + $0x70] sm:$0xff] }
 0x298   : > { %v2313_v60 = vsel %vm2311_vm11, %v2308_v50, %v6230_v8  ;;  %v2305_v3 = vsel %vm2301_vm9, %v2300_v30, %v6162_v21  ;;  %v2750_v21 = vrot.slane %v6277_v63, %v7705_v13  ;;  %v2882_v30 = vrot.slane %v4651_v11, %v7701_v55 }
 0x299   : > { %v2240_v9 = vpop.permute.xlu1 %2239  ;;  %v6341_v38 = vpop.permute.xlu0 %2411  ;;  %v2318_v0 = vsel %vm7582_vm12, %v2313_v60, %v2204_v46  ;;  %v2310_v8 = vsel %vm2306_vm10, %v2305_v3, %v6208_v4  ;;  %v2904_v3 = vrot.slane %v4651_v11, %v7703_v39 }
 0x29a   : > { %v2323_v19 = vsel %vm7575_vm13, %v2318_v0, %v2220_v15 }
 0x29b   : > { %2646 = vbcast.lane.b32.xlu1 %v6198_v24, 264  ;;  %2730 = vbcast.lane.b32.xlu0 %v6331_v48, 256  ;;  %v2328_v53 = vsel %vm7574_vm14, %v2323_v19, %v2236_v62  ;;  %v2315_v24 = vsel %vm2311_vm11, %v2310_v8, %v6249_v29 }
 0x29c   : > { %v2320_v57 = vsel %vm7582_vm12, %v2315_v24, %v2208_v5 }
 0x29d   : > { %v2252_v12 = vpop.permute.xlu1 %2251  ;;  %v6360_v46 = vpop.permute.xlu0 %2422  ;;  %v2325_v4 = vsel %vm7575_vm13, %v2320_v57, %v2224_v54  ;;  %v2772_v54 = vrot.slane %v6277_v63, %v7707_v16  ;;  %v4652_v57 = vld [vmem:[%s5006_s4 + $0x78] sm:$0xff]  ;;  %s4877_s4 = smov 32  }
 0x29e   : > { %v2333_v14 = vsel %vm7573_vm15, %v2328_v53, %v2252_v12  ;;  %v2330_v15 = vsel %vm7574_vm14, %v2325_v4, %v2240_v9  ;;  %v2926_v53 = vrot.slane %v4651_v11, %v7705_v13 }
 0x29f   : > { %2338 = vst.msk [vmem:[%s6237_s3 + $0x8] sm:$0xff] %vm2336_vm0, %v2333_v14  ;;  %2657 = vbcast.lane.b32.xlu1 %v6222_v6, 264  ;;  %2741 = vbcast.lane.b32.xlu0 %v2739_v34, 256  ;;  %v2761_v6 = vrot.slane %v6277_v63, %v7706_v32  ;;  %v2948_v14 = vrot.slane %v4651_v11, %v7707_v16 }
 0x2a1   : > { %v2256_v41 = vpop.permute.xlu1 %2255  ;;  %v6373_v42 = vpop.permute.xlu0 %2433 }
 0x2a2   : > { %v2335_v29 = vsel %vm7573_vm15, %v2330_v15, %v2256_v41  ;;  %v2970_v15 = vrot.slane %v4652_v57, %v7701_v55 }
 0x2a3   : > { %2340 = vst.msk [vmem:[%s6237_s3 + $0x18] sm:$0xff] %vm2336_vm0, %v2335_v29  ;;  %2668 = vbcast.lane.b32.xlu1 %v6245_v58, 264  ;;  %2752 = vbcast.lane.b32.xlu0 %v2750_v21, 256  ;;  %v2783_v58 = vrot.slane %v6277_v63, %v7708_v47  ;;  %vm7755_vm0 = vcmask 7168  }
 0x2a4   : > { %vm7756_vm15 = vmmov %vm7755_vm0 }
 0x2a5   : > { %v6381_v5 = vpop.permute.xlu1 %2360  ;;  %v6383_v33 = vpop.permute.xlu0 %2444  ;;  %vm7758_vm14 = vmmov %vm7755_vm0 }
 0x2a6   : > { %7733 = vst [vmem:[#allocation29_spill] sm:$0xff] %v6381_v5  ;;  %vm7759_vm13 = vmmov %vm7755_vm0 }
 0x2a7   : > { %2679 = vbcast.lane.b32.xlu1 %v6258_v37, 264  ;;  %2763 = vbcast.lane.b32.xlu0 %v2761_v6, 256  ;;  %v2794_v37 = vrot.slane %v6396_v25, %v7701_v55  ;;  %v2871_v55 = vrot.slane %v6396_v25, %v7708_v47  ;;  %vm7796_vm12 = vmmov %vm7755_vm0 }
 0x2a9   : > { %v6388_v7 = vpop.permute.xlu1 %2371  ;;  %v6390_v62 = vpop.permute.xlu0 %2455 }
 0x2ab   : > { %2690 = vbcast.lane.b32.xlu1 %v6266_v35, 264  ;;  %2774 = vbcast.lane.b32.xlu0 %v2772_v54, 256  ;;  %v2805_v35 = vrot.slane %v6396_v25, %v7702_v17 }
 0x2ad   : > { %v6398_v28 = vpop.permute.xlu1 %2382  ;;  %v6400_v45 = vpop.permute.xlu0 %2466 }
 0x2ae   : > { %7734 = vst [vmem:[#allocation30_spill] sm:$0xff] %v6398_v28 }
 0x2af   : > { %2701 = vbcast.lane.b32.xlu1 %v6274_v59, 264  ;;  %2785 = vbcast.lane.b32.xlu0 %v2783_v58, 256  ;;  %v2816_v59 = vrot.slane %v6396_v25, %v7703_v39 }
 0x2b1   : > { %v6405_v40 = vpop.permute.xlu1 %2393  ;;  %v6407_v44 = vpop.permute.xlu0 %2477 }
 0x2b3   : > { %2712 = vbcast.lane.b32.xlu1 %v6285_v61, 264  ;;  %2796 = vbcast.lane.b32.xlu0 %v2794_v37, 256  ;;  %v2827_v61 = vrot.slane %v6396_v25, %v7704_v2 }
 0x2b5   : > { %v6412_v63 = vpop.permute.xlu1 %2404  ;;  %v6414_v10 = vpop.permute.xlu0 %2488 }
 0x2b6   : > { %7735 = vst [vmem:[#allocation26_spill] sm:$0xff] %v6412_v63 }
 0x2b7   : > { %2723 = vbcast.lane.b32.xlu1 %v6304_v27, 264  ;;  %2807 = vbcast.lane.b32.xlu0 %v2805_v35, 256  ;;  %v2838_v27 = vrot.slane %v6396_v25, %v7705_v13 }
 0x2b9   : > { %v6419_v18 = vpop.permute.xlu1 %2415  ;;  %v6421_v52 = vpop.permute.xlu0 %2499 }
 0x2bb   : > { %2734 = vbcast.lane.b32.xlu1 %v6331_v48, 264  ;;  %2818 = vbcast.lane.b32.xlu0 %v2816_v59, 256  ;;  %v2849_v48 = vrot.slane %v6396_v25, %v7706_v32 }
 0x2bd   : > { %v6426_v49 = vpop.permute.xlu1 %2426  ;;  %v6428_v56 = vpop.permute.xlu0 %2510 }
 0x2bf   : > { %2745 = vbcast.lane.b32.xlu1 %v2739_v34, 264  ;;  %2829 = vbcast.lane.b32.xlu0 %v2827_v61, 256 }
 0x2c1   : > { %v6432_v43 = vpop.permute.xlu1 %2437  ;;  %v6434_v31 = vpop.permute.xlu0 %2521 }
 0x2c3   : > { %2756 = vbcast.lane.b32.xlu1 %v2750_v21, 264  ;;  %2840 = vbcast.lane.b32.xlu0 %v2838_v27, 256 }
 0x2c5   : > { %v6438_v50 = vpop.permute.xlu1 %2448  ;;  %v6440_v9 = vpop.permute.xlu0 %2532 }
 0x2c6   : > { %7736 = vst [vmem:[#allocation27_spill] sm:$0xff] %v6438_v50 }
 0x2c7   : > { %2767 = vbcast.lane.b32.xlu1 %v2761_v6, 264  ;;  %2851 = vbcast.lane.b32.xlu0 %v2849_v48, 256  ;;  %v2992_v6 = vrot.slane %v4652_v57, %v7703_v39 }
 0x2c9   : > { %v6445_v60 = vpop.permute.xlu1 %2459  ;;  %v6447_v51 = vpop.permute.xlu0 %2543 }
 0x2ca   : > { %7737 = vst [vmem:[#allocation56_spill] sm:$0xff] %v6445_v60 }
 0x2cb   : > { %2778 = vbcast.lane.b32.xlu1 %v2772_v54, 264  ;;  %2862 = vbcast.lane.b32.xlu0 %v2860_v22, 256 }
 0x2cd   : > { %v6450_v0 = vpop.permute.xlu1 %2470  ;;  %v6452_v34 = vpop.permute.xlu0 %2554 }
 0x2ce   : > { %7738 = vst [vmem:[#allocation49_spill] sm:$0xff] %v6450_v0 }
 0x2cf   : > { %2789 = vbcast.lane.b32.xlu1 %v2783_v58, 264  ;;  %2884 = vbcast.lane.b32.xlu0 %v2882_v30, 256 }
 0x2d1   : > { %v6455_v19 = vpop.permute.xlu1 %2481  ;;  %v6457_v8 = vpop.permute.xlu0 %2565 }
 0x2d2   : > { %7739 = vst [vmem:[#allocation20_spill] sm:$0xff] %v6455_v19 }
 0x2d3   : > { %2800 = vbcast.lane.b32.xlu1 %v2794_v37, 264  ;;  %2906 = vbcast.lane.b32.xlu0 %v2904_v3, 256  ;;  %v3014_v37 = vrot.slane %v4652_v57, %v7705_v13 }
 0x2d5   : > { %v6460_v12 = vpop.permute.xlu1 %2492  ;;  %v6462_v24 = vpop.permute.xlu0 %2576 }
 0x2d6   : > { %7740 = vst [vmem:[#allocation50_spill] sm:$0xff] %v6460_v12 }
 0x2d7   : > { %2811 = vbcast.lane.b32.xlu1 %v2805_v35, 264  ;;  %2928 = vbcast.lane.b32.xlu0 %v2926_v53, 256 }
 0x2d9   : > { %v6466_v21 = vpop.permute.xlu1 %2503  ;;  %v6468_v4 = vpop.permute.xlu0 %2587 }
 0x2da   : > { %7741 = vst [vmem:[#allocation21_spill] sm:$0xff] %v6466_v21  ;;  %v2959_v21 = vrot.slane %v4651_v11, %v7708_v47 }
 0x2db   : > { %2822 = vbcast.lane.b32.xlu1 %v2816_v59, 264  ;;  %2950 = vbcast.lane.b32.xlu0 %v2948_v14, 256 }
 0x2dd   : > { %v6471_v41 = vpop.permute.xlu1 %2514  ;;  %v6473_v29 = vpop.permute.xlu0 %2598 }
 0x2de   : > { %7742 = vst [vmem:[#allocation45_spill] sm:$0xff] %v6471_v41 }
 0x2df   : > { %2833 = vbcast.lane.b32.xlu1 %v2827_v61, 264  ;;  %2972 = vbcast.lane.b32.xlu0 %v2970_v15, 256  ;;  %v3036_v61 = vrot.slane %v4652_v57, %v7707_v16  ;;  %v2937_v16 = vrot.slane %v4651_v11, %v7706_v32 }
 0x2e1   : > { %v6476_v54 = vpop.permute.xlu1 %2525  ;;  %v6478_v58 = vpop.permute.xlu0 %2609 }
 0x2e2   : > { %7743 = vst [vmem:[#allocation18_spill] sm:$0xff] %v6476_v54  ;;  %v2981_v54 = vrot.slane %v4652_v57, %v7702_v17 }
 0x2e3   : > { %2844 = vbcast.lane.b32.xlu1 %v2838_v27, 264  ;;  %2994 = vbcast.lane.b32.xlu0 %v2992_v6, 256  ;;  %v2893_v27 = vrot.slane %v4651_v11, %v7702_v17 }
 0x2e5   : > { %v6481_v35 = vpop.permute.xlu1 %2536  ;;  %v6483_v59 = vpop.permute.xlu0 %2620 }
 0x2e6   : > { %7744 = vst [vmem:[#allocation48_spill] sm:$0xff] %v6481_v35 }
 0x2e7   : > { %2855 = vbcast.lane.b32.xlu1 %v2849_v48, 264  ;;  %3016 = vbcast.lane.b32.xlu0 %v3014_v37, 256  ;;  %v2915_v48 = vrot.slane %v4651_v11, %v7704_v2 }
 0x2e9   : > { %v6488_v39 = vpop.permute.xlu1 %2547  ;;  %v6490_v50 = vpop.permute.xlu0 %2631 }
 0x2ea   : > { %7745 = vst [vmem:[#allocation19_spill] sm:$0xff] %v6488_v39  ;;  %v6518_v39 = vrot.slane %v4652_v57, %v7704_v2 }
 0x2eb   : > { %2873 = vbcast.lane.b32.xlu1 %v2871_v55, 256  ;;  %3038 = vbcast.lane.b32.xlu0 %v3036_v61, 256 }
 0x2ed   : > { %v6493_v13 = vpop.permute.xlu1 %2558  ;;  %v6495_v12 = vpop.permute.xlu0 %2642 }
 0x2ee   : > { %7746 = vst [vmem:[#allocation59_spill] sm:$0xff] %v6493_v13 }
 0x2ef   : > { %2895 = vbcast.lane.b32.xlu1 %v2893_v27, 256  ;;  %2866 = vbcast.lane.b32.xlu0 %v2860_v22, 264 }
 0x2f1   : > { %v6498_v0 = vpop.permute.xlu1 %2569  ;;  %v6500_v25 = vpop.permute.xlu0 %2653 }
 0x2f2   : > { %7747 = vst [vmem:[#allocation25_spill] sm:$0xff] %v6498_v0 }
 0x2f3   : > { %2917 = vbcast.lane.b32.xlu1 %v2915_v48, 256  ;;  %2888 = vbcast.lane.b32.xlu0 %v2882_v30, 264 }
 0x2f5   : > { %v6503_v60 = vpop.permute.xlu1 %2580  ;;  %v6505_v41 = vpop.permute.xlu0 %2664 }
 0x2f6   : > { %7748 = vst [vmem:[#allocation52_spill] sm:$0xff] %v6503_v60 }
 0x2f7   : > { %2939 = vbcast.lane.b32.xlu1 %v2937_v16, 256  ;;  %2910 = vbcast.lane.b32.xlu0 %v2904_v3, 264 }
 0x2f9   : > { %v6508_v19 = vpop.permute.xlu1 %2591  ;;  %v6510_v22 = vpop.permute.xlu0 %2675 }
 0x2fa   : > { %7749 = vst [vmem:[#allocation23_spill] sm:$0xff] %v6508_v19 }
 0x2fb   : > { %2961 = vbcast.lane.b32.xlu1 %v2959_v21, 256  ;;  %2932 = vbcast.lane.b32.xlu0 %v2926_v53, 264  ;;  %v6526_v53 = vrot.slane %v4652_v57, %v7706_v32 }
 0x2fd   : > { %v6513_v35 = vpop.permute.xlu1 %2602  ;;  %v6515_v30 = vpop.permute.xlu0 %2686 }
 0x2fe   : > { %7750 = vst [vmem:[#allocation53_spill] sm:$0xff] %v6513_v35 }
 0x2ff   : > { %2983 = vbcast.lane.b32.xlu1 %v2981_v54, 256  ;;  %2954 = vbcast.lane.b32.xlu0 %v2948_v14, 264  ;;  %v6532_v14 = vrot.slane %v4652_v57, %v7708_v47 }
 0x301   : > { %v6520_v3 = vpop.permute.xlu1 %2613  ;;  %v6522_v11 = vpop.permute.xlu0 %2697 }
 0x302   : > { %7751 = vst [vmem:[#allocation24_spill] sm:$0xff] %v6520_v3 }
 0x303   : > { %3005 = vbcast.lane.b32.xlu1 %v6518_v39, 256  ;;  %2976 = vbcast.lane.b32.xlu0 %v2970_v15, 264 }
 0x305   : > { %v6528_v17 = vpop.permute.xlu1 %2624  ;;  %v2709_v60 = vpop.permute.xlu0 %2708 }
 0x306   : > { %7752 = vst [vmem:[#allocation51_spill] sm:$0xff] %v6528_v17  ;;  %v3055_v32 = vsel %vm7755_vm0, %v6260_v20, %v2709_v60  ;;  %v7760_v20 = vld [vmem:[#allocation42_spill] sm:$0xff] }
 0x307   : > { %3027 = vbcast.lane.b32.xlu1 %v6526_v53, 256  ;;  %2998 = vbcast.lane.b32.xlu0 %v2992_v6, 264 }
 0x309   : > { %v6534_v2 = vpop.permute.xlu1 %2635  ;;  %v2720_v13 = vpop.permute.xlu0 %2719 }
 0x30a   : > { %7753 = vst [vmem:[#allocation22_spill] sm:$0xff] %v6534_v2  ;;  %v3057_v2 = vsel %vm7758_vm14, %v6268_v23, %v2720_v13  ;;  %vm7765_vm14 = vmmov %vm7755_vm0 }
 0x30b   : > { %3049 = vbcast.lane.b32.xlu1 %v6532_v14, 256  ;;  %3020 = vbcast.lane.b32.xlu0 %v3014_v37, 264 }
 0x30d   : > { %v6537_v19 = vpop.permute.xlu1 %2646  ;;  %v2731_v15 = vpop.permute.xlu0 %2730 }
 0x30e   : > { %7754 = vst [vmem:[#allocation41_spill] sm:$0xff] %v6537_v19  ;;  %v3059_v17 = vsel %vm7756_vm15, %v6279_v26, %v2731_v15  ;;  %vm7767_vm15 = vmmov %vm7755_vm0 }
 0x30f   : > { %v3120_v0 = vcombine.high %v3055_v32, %v3059_v17  ;;  %2877 = vbcast.lane.b32.xlu1 %v2871_v55, 264  ;;  %3042 = vbcast.lane.b32.xlu0 %v3036_v61, 264  ;;  %v3119_v47 = vcombine.low %v3055_v32, %v3059_v17 }
 0x311   : > { %v6543_v57 = vpop.permute.xlu1 %2657  ;;  %v2742_v6 = vpop.permute.xlu0 %2741  ;;  %v3127_v60 = vrot.slane %v3119_v47, %v7760_v20  ;;  %v3134_v26 = vrot.slane %v3120_v0, %v7760_v20 }
 0x312   : > { %7757 = vst [vmem:[#allocation58_spill] sm:$0xff] %v6543_v57  ;;  %v3061_v37 = vsel %vm7759_vm13, %v6294_v36, %v2742_v6  ;;  %vm7764_vm13 = vmmov %vm7755_vm0 }
 0x313   : > { %v3135_v19 = vcombine.low %v3057_v2, %v3061_v37  ;;  %v3136_v35 = vcombine.high %v3057_v2, %v3061_v37  ;;  %2899 = vbcast.lane.b32.xlu1 %v2893_v27, 264 }
 0x315   : > { %v3143_v55 = vrot.slane %v3135_v19, %v7760_v20  ;;  %v3150_v61 = vrot.slane %v3136_v35, %v7760_v20  ;;  %v6553_v17 = vpop.permute.xlu1 %2668  ;;  %v2753_v15 = vpop.permute.xlu0 %2752 }
 0x316   : > { %7761 = vst [vmem:[#allocation57_spill] sm:$0xff] %v6553_v17  ;;  %v3063_v0 = vsel %vm7764_vm13, %v6317_v1, %v2753_v15  ;;  %vm7781_vm13 = vmmov %vm7755_vm0 }
 0x317   : > { %v3184_v32 = vcombine.high %v3127_v60, %v3143_v55  ;;  %v3199_v57 = vcombine.low %v3134_v26, %v3150_v61  ;;  %v3200_v23 = vcombine.high %v3134_v26, %v3150_v61  ;;  %2921 = vbcast.lane.b32.xlu1 %v2915_v48, 264  ;;  %v3183_v17 = vcombine.low %v3127_v60, %v3143_v55 }
 0x319   : > { %v6555_v13 = vpop.permute.xlu1 %2679  ;;  %v2764_v36 = vpop.permute.xlu0 %2763 }
 0x31a   : > { %7762 = vst [vmem:[#allocation37_spill] sm:$0xff] %v6555_v13  ;;  %v3065_v48 = vsel %vm7767_vm15, %v6341_v38, %v2764_v36  ;;  %vm7783_vm15 = vmmov %vm7755_vm0 }
 0x31b   : > { %2943 = vbcast.lane.b32.xlu1 %v2937_v16, 264 }
 0x31d   : > { %v6557_v27 = vpop.permute.xlu1 %2690  ;;  %v2775_v2 = vpop.permute.xlu0 %2774 }
 0x31e   : > { %7763 = vst [vmem:[#allocation39_spill] sm:$0xff] %v6557_v27  ;;  %v3067_v19 = vsel %vm7765_vm14, %v6360_v46, %v2775_v2  ;;  %vm7782_vm14 = vmmov %vm7755_vm0 }
 0x31f   : > { %v3152_v35 = vcombine.high %v3063_v0, %v3067_v19  ;;  %2965 = vbcast.lane.b32.xlu1 %v2959_v21, 264  ;;  %v3151_v47 = vcombine.low %v3063_v0, %v3067_v19 }
 0x321   : > { %v6563_v6 = vpop.permute.xlu1 %2701  ;;  %v2786_v37 = vpop.permute.xlu0 %2785  ;;  %v3159_v1 = vrot.slane %v3151_v47, %v7760_v20  ;;  %v3166_v46 = vrot.slane %v3152_v35, %v7760_v20 }
 0x322   : > { %7766 = vst [vmem:[#allocation40_spill] sm:$0xff] %v6563_v6  ;;  %v3069_v16 = vsel %vm7755_vm0, %v6373_v42, %v2786_v37  ;;  %v7769_v42 = vld [vmem:[#allocation44_spill] sm:$0xff] }
 0x323   : > { %v3167_v26 = vcombine.low %v3065_v48, %v3069_v16  ;;  %v3168_v61 = vcombine.high %v3065_v48, %v3069_v16  ;;  %2987 = vbcast.lane.b32.xlu1 %v2981_v54, 264  ;;  %v6577_v54 = vrot.slane %v3183_v17, %v7769_v42  ;;  %v6580_v60 = vrot.slane %v3184_v32, %v7769_v42 }
 0x324   : > { %v6583_v55 = vrot.slane %v3199_v57, %v7769_v42  ;;  %v6600_v32 = vrot.slane %v3200_v23, %v7769_v42 }
 0x325   : > { %v3175_v21 = vrot.slane %v3167_v26, %v7760_v20  ;;  %v3182_v15 = vrot.slane %v3168_v61, %v7760_v20  ;;  %v6573_v2 = vpop.permute.xlu1 %2712  ;;  %v2797_v0 = vpop.permute.xlu0 %2796  ;;  %7770 = vst [vmem:[#allocation36_spill] sm:$0xff] %v6577_v54 }
 0x326   : > { %7768 = vst [vmem:[#allocation35_spill] sm:$0xff] %v6573_v2  ;;  %7773 = vst [vmem:[#allocation9_spill] sm:$0xff] %v6600_v32 }
 0x327   : > { %v3215_v19 = vcombine.low %v3159_v1, %v3175_v21  ;;  %v3216_v38 = vcombine.high %v3159_v1, %v3175_v21  ;;  %v3231_v36 = vcombine.low %v3166_v46, %v3182_v15  ;;  %v3232_v13 = vcombine.high %v3166_v46, %v3182_v15  ;;  %3009 = vbcast.lane.b32.xlu1 %v6518_v39, 264 }
 0x329   : > { %v6586_v35 = vrot.slane %v3215_v19, %v7769_v42  ;;  %v6589_v47 = vrot.slane %v3216_v38, %v7769_v42  ;;  %v6592_v37 = vrot.slane %v3231_v36, %v7769_v42  ;;  %v6595_v39 = vrot.slane %v3232_v13, %v7769_v42  ;;  %v6597_v17 = vpop.permute.xlu1 %2723  ;;  %v2808_v48 = vpop.permute.xlu0 %2807 }
 0x32a   : > { %v6649_v32 = vsel %vm7782_vm14, %v6390_v62, %v2808_v48  ;;  %vm7786_vm14 = vmmov %vm7755_vm0 }
 0x32b   : > { %7771 = vst [vmem:[#allocation38_spill] sm:$0xff] %v6586_v35  ;;  %7772 = vst [vmem:[#allocation34_spill] sm:$0xff] %v6595_v39  ;;  %3031 = vbcast.lane.b32.xlu1 %v6526_v53, 264  ;;  %v3248_v57 = vcombine.high %v6577_v54, %v6586_v35 }
 0x32d   : > { %v6619_v46 = vpop.permute.xlu1 %2734  ;;  %4211 = vrot.lane.b32.xlu0 %v3248_v57, %s4862_s18  ;;  %v2819_v21 = vpop.permute.xlu0 %2818 }
 0x32e   : > { %7774 = vst [vmem:[#allocation8_spill] sm:$0xff] %v6619_v46 }
 0x32f   : > { %3053 = vbcast.lane.b32.xlu1 %v6532_v14, 264 }
 0x331   : > { %v6623_v15 = vpop.permute.xlu1 %2745  ;;  %v2830_v19 = vpop.permute.xlu0 %2829 }
 0x332   : > { %v6645_v6 = vsel %vm7781_vm13, %v6407_v44, %v2830_v19  ;;  %vm7785_vm13 = vmmov %vm7755_vm0 }
 0x335   : > { %v6625_v38 = vpop.permute.xlu1 %2756  ;;  %v2841_v36 = vpop.permute.xlu0 %2840 }
 0x336   : > { %7775 = vst [vmem:[#allocation10_spill] sm:$0xff] %v6625_v38 }
 0x339   : > { %v6627_v23 = vpop.permute.xlu1 %2767  ;;  %v2852_v53 = vpop.permute.xlu0 %2851 }
 0x33d   : > { %v6629_v61 = vpop.permute.xlu1 %2778  ;;  %v2863_v1 = vpop.permute.xlu0 %2862 }
 0x33e   : > { %v6665_v44 = vsel %vm7785_vm13, %v6428_v56, %v2863_v1  ;;  %vm7790_vm13 = vmmov %vm7755_vm0 }
 0x341   : > { %v6631_v13 = vpop.permute.xlu1 %2789  ;;  %v2885_v16 = vpop.permute.xlu0 %2884 }
 0x345   : > { %v6633_v26 = vpop.permute.xlu1 %2800  ;;  %v2907_v35 = vpop.permute.xlu0 %2906 }
 0x346   : > { %7776 = vst [vmem:[#allocation11_spill] sm:$0xff] %v6633_v26  ;;  %v6653_v26 = vsel %vm7783_vm15, %v6400_v45, %v2819_v21  ;;  %v6671_v45 = vsel %vm7786_vm14, %v6414_v10, %v2841_v36  ;;  %vm7787_vm15 = vmmov %vm7755_vm0 }
 0x347   : > { %v3287_v21 = vcombine.low %v6671_v45, %v6665_v44  ;;  %vm7791_vm14 = vmmov %vm7755_vm0 }
 0x349   : > { %v6635_v57 = vpop.permute.xlu1 %2811  ;;  %v2929_v39 = vpop.permute.xlu0 %2928 }
 0x34a   : > { %7777 = vst [vmem:[#allocation12_spill] sm:$0xff] %v6635_v57 }
 0x34d   : > { %v6637_v14 = vpop.permute.xlu1 %2822  ;;  %v2951_v19 = vpop.permute.xlu0 %2950 }
 0x34e   : > { %7778 = vst [vmem:[#allocation13_spill] sm:$0xff] %v6637_v14  ;;  %v3271_v14 = vcombine.low %v6649_v32, %v6645_v6 }
 0x350   : > { %v6674_v48 = vrot.slane %v3271_v14, %v7760_v20  ;;  %v6694_v14 = vrot.slane %v3287_v21, %v7760_v20 }
 0x351   : > { %v6639_v54 = vpop.permute.xlu1 %2833 }
 0x352   : > { %7779 = vst [vmem:[#allocation14_spill] sm:$0xff] %v6639_v54 }
 0x355   : > { %v6641_v27 = vpop.permute.xlu1 %2844 }
 0x356   : > { %7780 = vst [vmem:[#allocation15_spill] sm:$0xff] %v6641_v27  ;;  %v6661_v27 = vsel %vm7755_vm0, %v6383_v33, %v2797_v0  ;;  %v6680_v0 = vsel %vm7787_vm15, %v6421_v52, %v2852_v53  ;;  %v2973_v53 = vpop.permute.xlu0 %2972  ;;  %vm7792_vm15 = vmmov %vm7755_vm0 }
 0x357   : > { %v3255_v62 = vcombine.low %v6661_v27, %v6653_v26 }
 0x359   : > { %v6657_v57 = vpop.permute.xlu1 %2855  ;;  %v6687_v1 = vrot.slane %v3255_v62, %v7760_v20 }
 0x35a   : > { %7784 = vst [vmem:[#allocation46_spill] sm:$0xff] %v6657_v57 }
 0x35b   : > { %v3319_v36 = vcombine.low %v6687_v1, %v6674_v48 }
 0x35d   : > { %v2874_v33 = vpop.permute.xlu1 %2873  ;;  %v6702_v62 = vrot.slane %v3319_v36, %v7769_v42  ;;  %v2995_v36 = vpop.permute.xlu0 %2994 }
 0x35e   : > { %v6684_v56 = vsel %vm7755_vm0, %v6434_v31, %v2874_v33 }
 0x35f   : > { %v3303_v10 = vcombine.low %v6680_v0, %v6684_v56  ;;  %7788 = vst [vmem:[#allocation47_spill] sm:$0xff] %v6702_v62 }
 0x361   : > { %v6697_v57 = vrot.slane %v3303_v10, %v7760_v20  ;;  %v2896_v52 = vpop.permute.xlu1 %2895  ;;  %v6715_v10 = vsel %vm7791_vm14, %v6452_v34, %v2907_v35  ;;  %vm7794_vm14 = vmmov %vm7755_vm0 }
 0x362   : > { %v6719_v5 = vsel %vm7792_vm15, %v6447_v51, %v2896_v52  ;;  %v3095_v35 = vsel %vm7794_vm14, %v6462_v24, %v2929_v39  ;;  %vm7795_vm15 = vmmov %vm7755_vm0 }
 0x363   : > { %v3351_v31 = vcombine.low %v6694_v14, %v6697_v57  ;;  %vm7801_vm14 = vmmov %vm7755_vm0 }
 0x365   : > { %v6705_v33 = vrot.slane %v3351_v31, %v7769_v42  ;;  %v2918_v54 = vpop.permute.xlu1 %2917 }
 0x366   : > { %v6709_v3 = vsel %vm7790_vm13, %v6457_v8, %v2918_v54  ;;  %v6728_v54 = vsel %vm7755_vm0, %v6440_v9, %v2885_v16  ;;  %vm7793_vm13 = vmmov %vm7755_vm0 }
 0x367   : > { %7789 = vst [vmem:[#allocation60_spill] sm:$0xff] %v6705_v33  ;;  %v3384_v21 = vcombine.high %v6702_v62, %v6705_v33  ;;  %v3679_v31 = vcombine.low %v6719_v5, %v6709_v3  ;;  %v3099_v34 = vsel %vm7793_vm13, %v6473_v29, %v2951_v19  ;;  %v3663_v51 = vcombine.low %v6728_v54, %v6715_v10  ;;  %v3017_v33 = vpop.permute.xlu0 %3016  ;;  %vm7800_vm13 = vmmov %vm7755_vm0 }
 0x368   : > { %v3695_v52 = vcombine.low %v3095_v35, %v3099_v34 }
 0x369   : > { %v2940_v2 = vpop.permute.xlu1 %2939  ;;  %4213 = vrot.lane.b32.xlu1 %v3384_v21, %s4862_s18  ;;  %v3687_v63 = vrot.slane %v3679_v31, %v7760_v20  ;;  %v3671_v16 = vrot.slane %v3663_v51, %v7760_v20 }
 0x36a   : > { %v3097_v8 = vsel %vm7795_vm15, %v6468_v4, %v2940_v2  ;;  %v3703_v19 = vrot.slane %v3695_v52, %v7760_v20  ;;  %vm7802_vm15 = vmmov %vm7755_vm0 }
 0x36b   : > { %v3727_v62 = vcombine.low %v3671_v16, %v3687_v63  ;;  %v3039_v28 = vpop.permute.xlu0 %3038 }
 0x36d   : > { %v2962_v21 = vpop.permute.xlu1 %2961  ;;  %v6745_v31 = vrot.slane %v3727_v62, %v7769_v42 }
 0x36e   : > { %v3101_v9 = vsel %vm7796_vm12, %v6478_v58, %v2962_v21  ;;  %vm7799_vm12 = vmmov %vm7755_vm0  ;;  %v6758_v21 = vsel %vm7755_vm0, %v6495_v12, %v2995_v36  ;;  %v6775_v12 = vsel %vm7802_vm15, %v6515_v30, %v3039_v28  ;;  %v7804_v30 = vcombine.low %v6580_v60, %v6589_v47 }
 0x36f   : > { %v3711_v29 = vcombine.low %v3097_v8, %v3101_v9  ;;  %7797 = vst [vmem:[#allocation61_spill] sm:$0xff] %v6745_v31  ;;  %vm7812_vm15 = vmmov %vm7755_vm0 }
 0x371   : > { %v3719_v38 = vrot.slane %v3711_v29, %v7760_v20  ;;  %v2984_v24 = vpop.permute.xlu1 %2983  ;;  %v3728_v29 = vcombine.high %v3671_v16, %v3687_v63 }
 0x372   : > { %v6762_v62 = vsel %vm7800_vm13, %v6490_v50, %v2984_v24  ;;  %v6779_v50 = vpop.permute.xlu0 %2866  ;;  %vm7805_vm13 = vmmov %vm7755_vm0 }
 0x373   : > { %v3759_v39 = vcombine.low %v3703_v19, %v3719_v38  ;;  %v3760_v51 = vcombine.high %v3703_v19, %v3719_v38  ;;  %v6771_v38 = vsel %vm7801_vm14, %v6483_v59, %v2973_v53  ;;  %v3742_v59 = vrot.slane %v3728_v29, %v7769_v42  ;;  %vm7811_vm14 = vmmov %vm7755_vm0 }
 0x374   : > { %v3799_v63 = vcombine.low %v6771_v38, %v6758_v21  ;;  %v3696_v29 = vcombine.high %v3095_v35, %v3099_v34  ;;  %v3352_v34 = vcombine.high %v6694_v14, %v6697_v57  ;;  %v7808_v14 = vcombine.high %v6580_v60, %v6589_v47 }
 0x375   : > { %v6748_v4 = vrot.slane %v3759_v39, %v7769_v42  ;;  %v3006_v2 = vpop.permute.xlu1 %3005  ;;  %v3774_v36 = vrot.slane %v3760_v51, %v7769_v42 }
 0x376   : > { %v6752_v58 = vsel %vm7799_vm12, %v6500_v25, %v3006_v2  ;;  %vm7803_vm12 = vmmov %vm7755_vm0  ;;  %v3712_v2 = vcombine.high %v3097_v8, %v3101_v9  ;;  %v6808_v25 = vpop.permute.xlu0 %2888  ;;  %v3664_v8 = vcombine.high %v6728_v54, %v6715_v10 }
 0x377   : > { %7798 = vst [vmem:[#allocation54_spill] sm:$0xff] %v6748_v4  ;;  %v3792_v52 = vcombine.high %v6745_v31, %v6748_v4  ;;  %v3815_v39 = vcombine.low %v6762_v62, %v6752_v58  ;;  %v6784_v16 = vsel %vm7803_vm12, %v6505_v41, %v3017_v33  ;;  %v3807_v33 = vrot.slane %v3799_v63, %v7760_v20  ;;  %vm7813_vm12 = vmmov %vm7755_vm0  ;;  %v7868_v31 = vld [vmem:[#allocation37_spill] sm:$0xff] }
 0x378   : > { %v3831_v19 = vcombine.low %v6784_v16, %v6775_v12  ;;  %v6819_v35 = vrot.slane %v3712_v2, %v7760_v20 }
 0x379   : > { %v3028_v46 = vpop.permute.xlu1 %3027  ;;  %4215 = vrot.lane.b32.xlu0 %v3792_v52, %s4862_s18  ;;  %v3823_v53 = vrot.slane %v3815_v39, %v7760_v20  ;;  %v3793_v52 = vcombine.low %v3742_v59, %v3774_v36 }
 0x37a   : > { %v6796_v24 = vsel %vm7755_vm0, %v6510_v22, %v3028_v46  ;;  %v3839_v39 = vrot.slane %v3831_v19, %v7760_v20  ;;  %v6845_v54 = vpop.permute.xlu0 %2910 }
 0x37b   : > { %v3863_v22 = vcombine.low %v3807_v33, %v3823_v53  ;;  %v3864_v47 = vcombine.high %v3807_v33, %v3823_v53  ;;  %v3272_v53 = vcombine.high %v6649_v32, %v6645_v6  ;;  %v3288_v33 = vcombine.high %v6671_v45, %v6665_v44 }
 0x37c   : > { %v3256_v6 = vcombine.high %v6661_v27, %v6653_v26  ;;  %v3816_v27 = vcombine.high %v6762_v62, %v6752_v58 }
 0x37d   : > { %v3050_v28 = vpop.permute.xlu1 %3049  ;;  %4227 = vrot.lane.b32.xlu0 %v7804_v30, %s4863_s27  ;;  %v3680_v30 = vcombine.high %v6719_v5, %v6709_v3  ;;  %v3320_v5 = vcombine.high %v6687_v1, %v6674_v48  ;;  %v6824_v3 = vrot.slane %v3696_v29, %v7760_v20  ;;  %v6830_v19 = vrot.slane %v3863_v22, %v7769_v42 }
 0x37e   : > { %v6800_v41 = vsel %vm7805_vm13, %v6522_v11, %v3050_v28  ;;  %v6842_v48 = vrot.slane %v3664_v8, %v7760_v20  ;;  %v3366_v1 = vrot.slane %v3352_v34, %v7769_v42  ;;  %v3304_v22 = vcombine.high %v6680_v0, %v6684_v56  ;;  %v6869_v34 = vpop.permute.xlu0 %2932  ;;  %vm7814_vm13 = vmmov %vm7755_vm0 }
 0x37f   : > { %v3847_v51 = vcombine.low %v6796_v24, %v6800_v41  ;;  %v6827_v63 = vrot.slane %v3680_v30, %v7760_v20  ;;  %7806 = vst [vmem:[#allocation55_spill] sm:$0xff] %v6830_v19  ;;  %v3775_v28 = vcombine.low %v6824_v3, %v6819_v35  ;;  %v3334_v29 = vrot.slane %v3320_v5, %v7769_v42 }
 0x380   : > { %v3878_v0 = vrot.slane %v3864_v47, %v7769_v42  ;;  %v6882_v32 = vrot.slane %v3304_v22, %v7760_v20  ;;  %v3848_v44 = vcombine.high %v6796_v24, %v6800_v41  ;;  %v6899_v24 = vrot.slane %v3256_v6, %v7760_v20 }
 0x381   : > { %v3855_v46 = vrot.slane %v3847_v51, %v7760_v20  ;;  %v6811_v11 = vpop.permute.xlu1 %2877  ;;  %4231 = vrot.lane.b32.xlu0 %v3793_v52, %s4863_s27  ;;  %v3794_v51 = vcombine.high %v3742_v59, %v3774_v36  ;;  %v3743_v60 = vcombine.low %v6842_v48, %v6827_v63  ;;  %v3783_v36 = vrot.slane %v3775_v28, %v7769_v42 }
 0x382   : > { %v6890_v28 = vrot.slane %v3288_v33, %v7760_v20  ;;  %v3800_v41 = vcombine.high %v6771_v38, %v6758_v21  ;;  %v7810_v21 = vcombine.high %v6583_v55, %v6592_v37  ;;  %v6924_v38 = vsel %vm7811_vm14, %v6432_v43, %v6631_v13  ;;  %vm7817_vm14 = vmmov %vm7755_vm0 }
 0x383   : > { %v3895_v9 = vcombine.low %v3839_v39, %v3855_v46  ;;  %v3896_v2 = vcombine.high %v3839_v39, %v3855_v46  ;;  %v3385_v39 = vcombine.low %v3334_v29, %v3366_v1  ;;  %v3751_v8 = vrot.slane %v3743_v60, %v7769_v42 }
 0x384   : > { %v6914_v60 = vrot.slane %v3816_v27, %v7760_v20  ;;  %v3776_v47 = vcombine.high %v6824_v3, %v6819_v35  ;;  %v6941_v43 = vsel %vm7812_vm15, %v6405_v40, %v6623_v15  ;;  %v6952_v35 = vsel %vm7755_vm0, %v6426_v49, %v6629_v61  ;;  %v7816_v49 = vld [vmem:[#allocation30_spill] sm:$0xff]  ;;  %vm7820_vm15 = vmmov %vm7755_vm0 }
 0x385   : > { %v6833_v10 = vrot.slane %v3895_v9, %v7769_v42  ;;  %v6835_v57 = vpop.permute.xlu1 %2899  ;;  %4243 = vrot.lane.b32.xlu0 %v7808_v14, %s4864_s29  ;;  %v3910_v59 = vrot.slane %v3896_v2, %v7769_v42  ;;  %v7809_v9 = vcombine.low %v6583_v55, %v6592_v37  ;;  %v3795_v45 = vcombine.low %v3751_v8, %v3783_v36 }
 0x386   : > { %v6887_v14 = vrot.slane %v3272_v53, %v7760_v20  ;;  %v3832_v2 = vcombine.high %v6784_v16, %v6775_v12  ;;  %v6906_v12 = vrot.slane %v3848_v44, %v7760_v20  ;;  %v3386_v16 = vcombine.high %v3334_v29, %v3366_v1 }
 0x387   : > { %7807 = vst [vmem:[#allocation16_spill] sm:$0xff] %v6833_v10  ;;  %v3928_v52 = vcombine.high %v6830_v19, %v6833_v10  ;;  %v3929_v5 = vcombine.low %v3878_v0, %v3910_v59  ;;  %v6927_v1 = vrot.slane %v3800_v41, %v7760_v20  ;;  %v3796_v22 = vcombine.high %v3751_v8, %v3783_v36 }
 0x388   : > { %v3335_v58 = vcombine.low %v6899_v24, %v6887_v14  ;;  %v6911_v62 = vrot.slane %v3832_v2, %v7760_v20  ;;  %v6947_v53 = vsel %vm7813_vm12, %v6419_v18, %v6627_v23  ;;  %v3744_v3 = vcombine.high %v6842_v48, %v6827_v63  ;;  %v7815_v23 = vld [vmem:[#allocation8_spill] sm:$0xff]  ;;  %v7818_v63 = vld [vmem:[#allocation10_spill] sm:$0xff]  ;;  %vm7823_vm12 = vmmov %vm7755_vm0 }
 0x389   : > { %v6854_v30 = vpop.permute.xlu1 %2921  ;;  %4247 = vrot.lane.b32.xlu0 %v3794_v51, %s4864_s29  ;;  %4217 = vrot.lane.b32.xlu1 %v3928_v52, %s4862_s18  ;;  %v3367_v51 = vcombine.low %v6890_v28, %v6882_v32  ;;  %v2955_v52 = vpop.permute.xlu0 %2954  ;;  %v3879_v36 = vcombine.low %v6927_v1, %v6914_v60  ;;  %v6965_v18 = vsel %vm7814_vm13, %v6388_v7, %v6597_v17  ;;  %v7819_v48 = vld [vmem:[#allocation26_spill] sm:$0xff]  ;;  %v7821_v17 = vld [vmem:[#allocation35_spill] sm:$0xff]  ;;  %vm7829_vm13 = vmmov %vm7755_vm0  ;;  %s4659_s18 = sshll.u32 %s4847_s9, 9  ;;  %s4878_s9 = smov [#allocation5]  }
 0x38a   : > { %v3911_v55 = vcombine.low %v6911_v62, %v6906_v12  ;;  %v3343_v13 = vrot.slane %v3335_v58, %v7769_v42  ;;  %v6970_v61 = vsel %vm7817_vm14, %v7816_v49, %v7815_v23  ;;  %v3439_v15 = vcombine.low %v6947_v53, %v6924_v38  ;;  %v7826_v58 = vld [vmem:[#allocation34_spill] sm:$0xff]  ;;  %vm7831_vm14 = vmmov %vm7755_vm0  ;;  %v7834_v23 = vld [vmem:[#allocation59_spill] sm:$0xff] }
 0x38b   : > { %v6930_v29 = vrot.slane %v3367_v51, %v7769_v42  ;;  %v3790_v33 = vrot.slane %v3776_v47, %v7769_v42  ;;  %v3407_v6 = vcombine.low %v6965_v18, %v6941_v43  ;;  %v3758_v27 = vrot.slane %v3744_v3, %v7769_v42  ;;  %v7832_v3 = vld [vmem:[#allocation23_spill] sm:$0xff] }
 0x38c   : > { %v3919_v8 = vrot.slane %v3911_v55, %v7769_v42  ;;  %v3887_v41 = vrot.slane %v3879_v36, %v7769_v42  ;;  %v7007_v47 = vrot.slane %v3439_v15, %v7760_v20 }
 0x38d   : > { %v6872_v56 = vpop.permute.xlu1 %2943  ;;  %4259 = vrot.lane.b32.xlu0 %v7809_v9, %s4865_s30  ;;  %4229 = vrot.lane.b32.xlu1 %v3385_v39, %s4863_s27  ;;  %v3930_v39 = vcombine.high %v3878_v0, %v3910_v59  ;;  %v6958_v40 = vpop.permute.xlu0 %2976  ;;  %v6977_v59 = vsel %vm7820_vm15, %v7819_v48, %v7818_v63  ;;  %v3387_v7 = vcombine.low %v3343_v13, %v6930_v29  ;;  %v7822_v0 = vld [vmem:[#allocation29_spill] sm:$0xff]  ;;  %vm7833_vm15 = vmmov %vm7755_vm0 }
 0x38e   : > { %v6985_v9 = vsel %vm7823_vm12, %v7822_v0, %v7821_v17  ;;  %v3423_v44 = vcombine.low %v6977_v59, %v6952_v35  ;;  %v7021_v36 = vsel %vm7833_vm15, %v7832_v3, %v6872_v56  ;;  %vm7835_vm12 = vmmov %vm7755_vm0  ;;  %v3797_v63 = vcombine.low %v3758_v27, %v3790_v33  ;;  %v7836_v56 = vld [vmem:[#allocation52_spill] sm:$0xff] }
 0x38f   : > { %v3391_v2 = vcombine.low %v6985_v9, %v6970_v61  ;;  %v7026_v49 = vsel %vm7835_vm12, %v7834_v23, %v6845_v54  ;;  %v3931_v48 = vcombine.low %v3887_v41, %v3919_v8  ;;  %v7041_v17 = vsel %vm7755_vm0, %v7836_v56, %v6869_v34  ;;  %v7837_v54 = vld [vmem:[#allocation19_spill] sm:$0xff]  ;;  %vm7843_vm15 = vmmov %vm7755_vm0 }
 0x390   : > { %v3388_v23 = vcombine.high %v3343_v13, %v6930_v29  ;;  %vm7846_vm12 = vmmov %vm7755_vm0 }
 0x391   : > { %v2966_v26 = vpop.permute.xlu1 %2965  ;;  %4263 = vrot.lane.b32.xlu0 %v3795_v45, %s4865_s30  ;;  %4233 = vrot.lane.b32.xlu1 %v3929_v5, %s4863_s27  ;;  %v7824_v45 = vld [vmem:[#allocation24_spill] sm:$0xff]  ;;  %v7028_v15 = vpop.permute.xlu0 %2998  ;;  %v7060_v34 = vrot.slane %v3391_v2, %v7760_v20  ;;  %v3336_v2 = vcombine.high %v6899_v24, %v6887_v14  ;;  %v3798_v24 = vcombine.high %v3758_v27, %v3790_v33  ;;  %v7847_v27 = vld [vmem:[#allocation46_spill] sm:$0xff]  ;;  %s4544_s27 = sshll.u32 %s6237_s3, 4  ;;  %s7486_s27 = int_to_ptr.vmem [resolvable:$true] %s4544_s27 }
 0x392   : > { %v6993_v5 = vsel %vm7755_vm0, %v7824_v45, %v2966_v26  ;;  %v7828_v26 = vld [vmem:[#allocation53_spill] sm:$0xff]  ;;  %v7839_v45 = vld [vmem:[#allocation48_spill] sm:$0xff] }
 0x393   : > { %v7011_v55 = vsel %vm7829_vm13, %v7828_v26, %v2955_v52  ;;  %v3983_v52 = vcombine.low %v7021_v36, %v6993_v5  ;;  %vm7838_vm13 = vmmov %vm7755_vm0 }
 0x394   : > { %v7046_v0 = vsel %vm7838_vm13, %v7837_v54, %v6835_v57  ;;  %v7842_v54 = vld [vmem:[#allocation18_spill] sm:$0xff]  ;;  %vm7850_vm13 = vmmov %vm7755_vm0 }
 0x395   : > { %4275 = vrot.lane.b32.xlu0 %v7810_v21, %s4866_s2  ;;  %4245 = vrot.lane.b32.xlu1 %v3386_v16, %s4864_s29  ;;  %v6936_v37 = vpop.permute.xlu1 %2987  ;;  %v7825_v16 = vld [vmem:[#allocation9_spill] sm:$0xff]  ;;  %v3021_v56 = vpop.permute.xlu0 %3020 }
 0x396   : > { %v7827_v21 = vcombine.low %v7825_v16, %v7826_v58 }
 0x399   : > { %4279 = vrot.lane.b32.xlu0 %v3796_v22, %s4866_s2  ;;  %4249 = vrot.lane.b32.xlu1 %v3930_v39, %s4864_s29  ;;  %v6999_v51 = vpop.permute.xlu1 %3009  ;;  %v7830_v22 = vld [vmem:[#allocation25_spill] sm:$0xff] }
 0x39a   : > { %v7016_v39 = vsel %vm7831_vm14, %v7830_v22, %v6854_v30  ;;  %v7033_v30 = vrot.slane %v3407_v6, %v7760_v20  ;;  %vm7840_vm14 = vmmov %vm7755_vm0  ;;  %v3967_v6 = vcombine.low %v7041_v17, %v7011_v55  ;;  %v7069_v22 = vrot.slane %v3983_v52, %v7760_v20 }
 0x39b   : > { %v3912_v52 = vcombine.high %v6911_v62, %v6906_v12  ;;  %v7848_v12 = vld [vmem:[#allocation21_spill] sm:$0xff] }
 0x39c   : > { %v7115_v62 = vsel %vm7755_vm0, %v7848_v12, %v7847_v27  ;;  %v7858_v27 = vld [vmem:[#allocation50_spill] sm:$0xff]  ;;  %v3043_v12 = vpop.permute.xlu0 %3042 }
 0x39d   : > { %4291 = vrot.lane.b32.xlu0 %v7827_v21, %s4867_s5  ;;  %4261 = vrot.lane.b32.xlu1 %v3387_v7, %s4865_s30  ;;  %v7036_v7 = vrot.slane %v3423_v44, %v7760_v20  ;;  %v7051_v21 = vsel %vm7840_vm14, %v7839_v45, %v6808_v25  ;;  %v3951_v44 = vcombine.low %v7046_v0, %v7016_v39  ;;  %v3032_v3 = vpop.permute.xlu1 %3031  ;;  %vm7853_vm14 = vmmov %vm7755_vm0 }
 0x39e   : > { %v3368_v25 = vcombine.high %v6890_v28, %v6882_v32  ;;  %v3935_v26 = vcombine.low %v7051_v21, %v7026_v49  ;;  %v7841_v28 = vcombine.high %v7825_v16, %v7826_v58  ;;  %v7101_v16 = vsel %vm7843_vm15, %v7842_v54, %v6811_v11  ;;  %v7849_v11 = vld [vmem:[#allocation45_spill] sm:$0xff]  ;;  %vm7856_vm15 = vmmov %vm7755_vm0 }
 0x39f   : > { %v3487_v57 = vcombine.low %v7036_v7, %v7007_v47  ;;  %v7080_v32 = vrot.slane %v3951_v44, %v7760_v20  ;;  %v3932_v45 = vcombine.high %v3887_v41, %v3919_v8  ;;  %v3350_v44 = vrot.slane %v3336_v2, %v7769_v42  ;;  %v7852_v2 = vld [vmem:[#allocation56_spill] sm:$0xff]  ;;  %v7854_v54 = vld [vmem:[#allocation13_spill] sm:$0xff] }
 0x3a0   : > { %v7091_v13 = vrot.slane %v3368_v25, %v7769_v42  ;;  %v7094_v14 = vrot.slane %v3935_v26, %v7760_v20  ;;  %v7845_v25 = vld [vmem:[#allocation20_spill] sm:$0xff]  ;;  %v7120_v26 = vsel %vm7850_vm13, %v7849_v11, %v6779_v50  ;;  %v3880_v8 = vcombine.high %v6927_v1, %v6914_v60  ;;  %vm7863_vm13 = vmmov %vm7755_vm0 }
 0x3a1   : > { %4295 = vrot.lane.b32.xlu0 %v3797_v63, %s4867_s5  ;;  %4265 = vrot.lane.b32.xlu1 %v3931_v48, %s4865_s30  ;;  %v3455_v63 = vcombine.low %v7060_v34, %v7033_v30  ;;  %v7077_v48 = vrot.slane %v3967_v6, %v7760_v20  ;;  %v7088_v29 = vrot.slane %v3487_v57, %v7769_v42  ;;  %v7844_v57 = vld [vmem:[#allocation14_spill] sm:$0xff] }
 0x3a2   : > { %v7110_v33 = vsel %vm7846_vm12, %v7845_v25, %v7844_v57  ;;  %v3999_v41 = vcombine.low %v7094_v14, %v7080_v32  ;;  %v7855_v57 = vld [vmem:[#allocation49_spill] sm:$0xff]  ;;  %v3575_v60 = vcombine.low %v7115_v62, %v7101_v16  ;;  %v7857_v25 = vld [vmem:[#allocation15_spill] sm:$0xff]  ;;  %vm7859_vm12 = vmmov %vm7755_vm0 }
 0x3a3   : > { %v4031_v58 = vcombine.low %v7077_v48, %v7069_v22  ;;  %v3463_v6 = vrot.slane %v3455_v63, %v7769_v42  ;;  %v7851_v63 = vld [vmem:[#allocation12_spill] sm:$0xff]  ;;  %v7136_v50 = vsel %vm7856_vm15, %v7855_v57, %v7854_v54  ;;  %v7861_v54 = vld [vmem:[#allocation27_spill] sm:$0xff]  ;;  %vm7867_vm15 = vmmov %vm7755_vm0 }
 0x3a4   : > { %v4007_v19 = vrot.slane %v3999_v41, %v7769_v42  ;;  %v7871_v41 = vld [vmem:[#allocation41_spill] sm:$0xff] }
 0x3a5   : > { %4307 = vrot.lane.b32.xlu0 %v7841_v28, %s4868_s12  ;;  %4277 = vrot.lane.b32.xlu1 %v3388_v23, %s4866_s2  ;;  %v3054_v23 = vpop.permute.xlu1 %3053  ;;  %v7131_v28 = vsel %vm7853_vm14, %v7852_v2, %v7851_v63  ;;  %v3519_v1 = vcombine.low %v3463_v6, %v7088_v29  ;;  %v4039_v11 = vrot.slane %v4031_v58, %v7769_v42  ;;  %v7860_v2 = vld [vmem:[#allocation11_spill] sm:$0xff]  ;;  %vm7865_vm14 = vmmov %vm7755_vm0 }
 0x3a6   : > { %v3389_v63 = vcombine.low %v3350_v44, %v7091_v13  ;;  %v7152_v57 = vsel %vm7755_vm0, %v7861_v54, %v7860_v2  ;;  %v3543_v46 = vcombine.low %v7131_v28, %v7110_v33  ;;  %v3894_v58 = vrot.slane %v3880_v8, %v7769_v42  ;;  %v7864_v54 = vld [vmem:[#allocation39_spill] sm:$0xff] }
 0x3a7   : > { %v7169_v2 = vrot.slane %v3575_v60, %v7760_v20  ;;  %v7173_v4 = vsel %vm7865_vm14, %v7864_v54, %v3043_v12  ;;  %v4063_v12 = vcombine.low %v4007_v19, %v4039_v11  ;;  %vm7875_vm14 = vmmov %vm7755_vm0 }
 0x3a8   : > { %v7192_v54 = vrot.slane %v3543_v46, %v7760_v20 }
 0x3a9   : > { %4311 = vrot.lane.b32.xlu0 %v3798_v24, %s4868_s12  ;;  %4281 = vrot.lane.b32.xlu1 %v3932_v45, %s4866_s2  ;;  %v7144_v24 = vsel %vm7859_vm12, %v7858_v27, %v7857_v25  ;;  %v3926_v45 = vrot.slane %v3912_v52, %v7769_v42  ;;  %v7862_v25 = vld [vmem:[#allocation40_spill] sm:$0xff]  ;;  %v3527_v52 = vcombine.low %v7152_v57, %v7136_v50  ;;  %vm7869_vm12 = vmmov %vm7755_vm0 }
 0x3aa   : > { %v3559_v10 = vcombine.low %v7144_v24, %v7120_v26  ;;  %v7160_v27 = vsel %vm7863_vm13, %v7862_v25, %v3054_v23  ;;  %v7866_v23 = vld [vmem:[#allocation58_spill] sm:$0xff]  ;;  %v7182_v8 = vsel %vm7869_vm12, %v7868_v31, %v3032_v3  ;;  %vm7873_vm13 = vmmov %vm7755_vm0 }
 0x3ab   : > { %v7178_v25 = vsel %vm7867_vm15, %v7866_v23, %v6999_v51  ;;  %7870 = vst [vmem:[#allocation31_spill] sm:$0xff] %v7182_v8  ;;  %v4119_v60 = vcombine.low %v7182_v8, %v7160_v27  ;;  %v7872_v23 = vld [vmem:[#allocation57_spill] sm:$0xff]  ;;  %v7874_v3 = vld [vmem:[#allocation22_spill] sm:$0xff]  ;;  %vm7877_vm15 = vmmov %vm7755_vm0 }
 0x3ac   : > { %v7195_v51 = vrot.slane %v3559_v10, %v7760_v20  ;;  %v7199_v31 = vsel %vm7873_vm13, %v7872_v23, %v3021_v56  ;;  %v3488_v56 = vcombine.high %v7036_v7, %v7007_v47  ;;  %v7224_v23 = vrot.slane %v3527_v52, %v7760_v20 }
 0x3ad   : > { %4323 = vrot.lane.b32.xlu0 %v3519_v1, %s4869_s13  ;;  %4293 = vrot.lane.b32.xlu1 %v3389_v63, %s4867_s5  ;;  %v7187_v1 = vsel %vm7755_vm0, %v7871_v41, %v7028_v15  ;;  %v3933_v63 = vcombine.low %v3894_v58, %v3926_v45  ;;  %v7204_v15 = vsel %vm7875_vm14, %v7874_v3, %v6936_v37  ;;  %v7876_v41 = vld [vmem:[#allocation51_spill] sm:$0xff] }
 0x3ae   : > { %v7209_v8 = vsel %vm7877_vm15, %v7876_v41, %v6958_v40  ;;  %v4103_v46 = vcombine.low %v7199_v31, %v7173_v4  ;;  %v4087_v10 = vcombine.low %v7204_v15, %v7178_v25  ;;  %v3623_v40 = vcombine.low %v7195_v51, %v7169_v2 }
 0x3af   : > { %7878 = vst [vmem:[#allocation43_spill] sm:$0xff] %v7209_v8  ;;  %v4071_v37 = vcombine.low %v7209_v8, %v7187_v1  ;;  %v7227_v3 = vrot.slane %v4119_v60, %v7760_v20  ;;  %v3390_v41 = vcombine.high %v3350_v44, %v7091_v13  ;;  %v3591_v47 = vcombine.low %v7224_v23, %v7192_v54 }
 0x3b0   : > { %v7236_v7 = vrot.slane %v4103_v46, %v7760_v20  ;;  %v7239_v8 = vrot.slane %v4087_v10, %v7760_v20  ;;  %v3502_v13 = vrot.slane %v3488_v56, %v7769_v42  ;;  %v3934_v44 = vcombine.high %v3894_v58, %v3926_v45 }
 0x3b1   : > { %4297 = vrot.lane.b32.xlu1 %v3933_v63, %s4867_s5  ;;  %4327 = vrot.lane.b32.xlu0 %v4063_v12, %s4869_s13  ;;  %v3520_v63 = vcombine.high %v3463_v6, %v7088_v29  ;;  %v3456_v12 = vcombine.high %v7060_v34, %v7033_v30  ;;  %v7245_v29 = vrot.slane %v4071_v37, %v7760_v20  ;;  %s7484_s5 = scalar_lea.hbm %s7538_s1, %s4659_s18 }
 0x3b2   : > { %v3631_v30 = vrot.slane %v3623_v40, %v7769_v42  ;;  %v4032_v34 = vcombine.high %v7077_v48, %v7069_v22  ;;  %v4167_v6 = vcombine.low %v7236_v7, %v7227_v3  ;;  %v4064_v52 = vcombine.high %v4007_v19, %v4039_v11 }
 0x3b3   : > { %v3470_v60 = vrot.slane %v3456_v12, %v7769_v42  ;;  %v3599_v46 = vrot.slane %v3591_v47, %v7769_v42  ;;  %v4000_v10 = vcombine.high %v7094_v14, %v7080_v32  ;;  %v4135_v56 = vcombine.low %v7245_v29, %v7239_v8 }
 0x3b4   : > { %v3440_v22 = vcombine.high %v6947_v53, %v6924_v38  ;;  %v4046_v48 = vrot.slane %v4032_v34, %v7769_v42  ;;  %v4175_v19 = vrot.slane %v4167_v6, %v7769_v42  ;;  %v3408_v58 = vcombine.high %v6965_v18, %v6941_v43 }
 0x3b5   : > { %4309 = vrot.lane.b32.xlu1 %v3390_v41, %s4868_s12  ;;  %4339 = vrot.lane.b32.xlu0 %v3520_v63, %s4870_s15  ;;  %v3655_v45 = vcombine.low %v3599_v46, %v3631_v30  ;;  %v3521_v11 = vcombine.low %v3470_v60, %v3502_v13  ;;  %v3424_v32 = vcombine.high %v6977_v59, %v6952_v35 }
 0x3b6   : > { %v4014_v14 = vrot.slane %v4000_v10, %v7769_v42  ;;  %v4143_v37 = vrot.slane %v4135_v56, %v7769_v42  ;;  %v3392_v38 = vcombine.high %v6985_v9, %v6970_v61  ;;  %v7275_v53 = vrot.slane %v3440_v22, %v7760_v20 }
 0x3b7   : > { %v3984_v43 = vcombine.high %v7021_v36, %v6993_v5  ;;  %v7280_v35 = vrot.slane %v3408_v58, %v7760_v20  ;;  %v7283_v59 = vrot.slane %v3424_v32, %v7760_v20  ;;  %v3968_v41 = vcombine.high %v7041_v17, %v7011_v55 }
 0x3b8   : > { %v4065_v18 = vcombine.low %v4014_v14, %v4046_v48  ;;  %v4199_v40 = vcombine.low %v4143_v37, %v4175_v19  ;;  %v3952_v61 = vcombine.high %v7046_v0, %v7016_v39  ;;  %v7292_v9 = vrot.slane %v3392_v38, %v7760_v20 }
 0x3b9   : > { %4313 = vrot.lane.b32.xlu1 %v3934_v44, %s4868_s12  ;;  %4343 = vrot.lane.b32.xlu0 %v4064_v52, %s4870_s15  ;;  %v3503_v5 = vcombine.low %v7283_v59, %v7275_v53  ;;  %v3936_v36 = vcombine.high %v7051_v21, %v7026_v49  ;;  %v3624_v63 = vcombine.high %v7195_v51, %v7169_v2  ;;  %s4529_s12 = scalar_lea.sflag [#allocation4], %s5002_s26 }
 0x3ba   : > { %v7301_v55 = vrot.slane %v3984_v43, %v7760_v20  ;;  %v3522_v39 = vcombine.high %v3470_v60, %v3502_v13  ;;  %v3656_v17 = vcombine.high %v3599_v46, %v3631_v30  ;;  %v3471_v0 = vcombine.low %v7292_v9, %v7280_v35 }
 0x3bb   : > { %v3592_v12 = vcombine.high %v7224_v23, %v7192_v54  ;;  %v7308_v47 = vrot.slane %v3968_v41, %v7760_v20  ;;  %v7311_v34 = vrot.slane %v3952_v61, %v7760_v20  ;;  %v3511_v49 = vrot.slane %v3503_v5, %v7769_v42 }
 0x3bc   : > { %v7317_v21 = vrot.slane %v3936_v36, %v7760_v20  ;;  %v3638_v2 = vrot.slane %v3624_v63, %v7769_v42  ;;  %v4168_v51 = vcombine.high %v7236_v7, %v7227_v3  ;;  %v4066_v23 = vcombine.high %v4014_v14, %v4046_v48  ;;  %v7879_v48 = vld [vmem:[#allocation31_spill] sm:$0xff] }
 0x3bd   : > { %4325 = vrot.lane.b32.xlu1 %v3655_v45, %s4869_s13  ;;  %4355 = vrot.lane.b32.xlu0 %v3521_v11, %s4871_s16  ;;  %v4047_v54 = vcombine.low %v7308_v47, %v7301_v55  ;;  %v4200_v13 = vcombine.high %v4143_v37, %v4175_v19  ;;  %v3479_v30 = vrot.slane %v3471_v0, %v7769_v42  ;;  %v7882_v0 = vld [vmem:[#allocation60_spill] sm:$0xff] }
 0x3be   : > { %v3606_v6 = vrot.slane %v3592_v12, %v7769_v42  ;;  %v4015_v44 = vcombine.low %v7317_v21, %v7311_v34  ;;  %v4136_v52 = vcombine.high %v7245_v29, %v7239_v8  ;;  %v3576_v60 = vcombine.high %v7115_v62, %v7101_v16 }
 0x3bf   : > { %v4055_v3 = vrot.slane %v4047_v54, %v7769_v42  ;;  %v4182_v7 = vrot.slane %v4168_v51, %v7769_v42  ;;  %v3523_v46 = vcombine.low %v3479_v30, %v3511_v49  ;;  %v3560_v56 = vcombine.high %v7144_v24, %v7120_v26 }
 0x3c0   : > { %v3657_v10 = vcombine.low %v3606_v6, %v3638_v2  ;;  %v3544_v22 = vcombine.high %v7131_v28, %v7110_v33  ;;  %v4023_v8 = vrot.slane %v4015_v44, %v7769_v42  ;;  %v4150_v29 = vrot.slane %v4136_v52, %v7769_v42 }
 0x3c1   : > { %4359 = vrot.lane.b32.xlu0 %v4065_v18, %s4871_s16  ;;  %4329 = vrot.lane.b32.xlu1 %v4199_v40, %s4869_s13  ;;  %v3590_v16 = vrot.slane %v3576_v60, %v7760_v20  ;;  %v3528_v62 = vcombine.high %v7152_v57, %v7136_v50  ;;  %v4120_v19 = vcombine.high %v7879_v48, %v7160_v27  ;;  %v7880_v57 = vld [vmem:[#allocation43_spill] sm:$0xff]  ;;  %v7887_v48 = vld [vmem:[#allocation36_spill] sm:$0xff]  ;;  %s4773_s13 = scalar_lea.vmem %s7486_s27, 512 }
 0x3c2   : > { %v4067_v26 = vcombine.low %v4023_v8, %v4055_v3  ;;  %v4201_v24 = vcombine.low %v4150_v29, %v4182_v7  ;;  %v3574_v33 = vrot.slane %v3560_v56, %v7760_v20  ;;  %v3558_v28 = vrot.slane %v3544_v22, %v7760_v20  ;;  %v7884_v22 = vld [vmem:[#allocation61_spill] sm:$0xff]  ;;  %p4774_p8 = scmp.ne.s32.totalorder %s7486_s27, %s4773_s13 }
 0x3c3   : > { %v4104_v45 = vcombine.high %v7199_v31, %v7173_v4  ;;  %v4088_v11 = vcombine.high %v7204_v15, %v7178_v25  ;;  %v3504_v50 = vcombine.high %v7283_v59, %v7275_v53  ;;  %v4072_v27 = vcombine.high %v7880_v57, %v7187_v1 }
 0x3c4   : > { %v3639_v58 = vcombine.low %v3574_v33, %v3590_v16  ;;  %v3542_v32 = vrot.slane %v3528_v62, %v7760_v20  ;;  %v4134_v14 = vrot.slane %v4120_v19, %v7760_v20  ;;  %v3524_v37 = vcombine.high %v3479_v30, %v3511_v49  ;;  %v7888_v19 = vld [vmem:[#allocation38_spill] sm:$0xff]  ;;  %p4775_p11 = pnand %p4774_p8, %p7909_p9 }
 0x3c5   : > { %4371 = vrot.lane.b32.xlu0 %v3522_v39, %s4872_s17  ;;  %4341 = vrot.lane.b32.xlu1 %v3656_v17, %s4870_s15  ;;  %v3658_v4 = vcombine.high %v3606_v6, %v3638_v2  ;;  %v3472_v25 = vcombine.high %v7292_v9, %v7280_v35  ;;  %v4118_v15 = vrot.slane %v4104_v45, %v7760_v20  ;;  %v7881_v17 = vld [vmem:[#allocation47_spill] sm:$0xff]  ;;  %v4212_v6 = vpop.permute.xlu0 %4211 }
 0x3c6   : > { %v3607_v31 = vcombine.low %v3542_v32, %v3558_v28  ;;  %v4102_v38 = vrot.slane %v4088_v11, %v7760_v20  ;;  %v3518_v1 = vrot.slane %v3504_v50, %v7769_v42  ;;  %v4086_v53 = vrot.slane %v4072_v27, %v7760_v20  ;;  %p4776_p0 = pneg %p4775_p11 }
 0x3c7   : > { %v3647_v43 = vrot.slane %v3639_v58, %v7769_v42  ;;  %v4048_v18 = vcombine.high %v7308_v47, %v7301_v55  ;;  %v4183_v40 = vcombine.low %v4118_v15, %v4134_v14  ;;  %v4068_v35 = vcombine.high %v4023_v8, %v4055_v3  ;;  %v7885_v8 = vld [vmem:[#allocation54_spill] sm:$0xff] }
 0x3c8   : > { %v4202_v59 = vcombine.high %v4150_v29, %v4182_v7  ;;  %v3486_v41 = vrot.slane %v3472_v25, %v7769_v42  ;;  %v3615_v61 = vrot.slane %v3607_v31, %v7769_v42  ;;  %v4016_v9 = vcombine.high %v7317_v21, %v7311_v34 }
 0x3c9   : > { %4375 = vrot.lane.b32.xlu0 %v4066_v23, %s4872_s17  ;;  %4345 = vrot.lane.b32.xlu1 %v4200_v13, %s4870_s15  ;;  %v4151_v5 = vcombine.low %v4086_v53, %v4102_v38  ;;  %v4062_v20 = vrot.slane %v4048_v18, %v7769_v42  ;;  %v4191_v36 = vrot.slane %v4183_v40, %v7769_v42  ;;  %s4777_s15 = sshll.u32 %s4878_s9, 4  ;;  %s4778_s15 = int_to_ptr.vmem [resolvable:$false] %s4777_s15 }
 0x3ca   : > { %v3525_v55 = vcombine.low %v3486_v41, %v3518_v1  ;;  %v3659_v39 = vcombine.low %v3615_v61, %v3647_v43  ;;  %v7883_v12 = vcombine.low %v7881_v17, %v7882_v0  ;;  %v4030_v49 = vrot.slane %v4016_v9, %v7769_v42  ;;  %p4780_p6 = scmp.lt.s32.totalorder %s7486_s27, %s4778_s15 }
 0x3cb   : > { %v4159_v34 = vrot.slane %v4151_v5, %v7769_v42  ;;  %v3640_v54 = vcombine.high %v3574_v33, %v3590_v16  ;;  %v3526_v51 = vcombine.high %v3486_v41, %v3518_v1  ;;  %v3660_v23 = vcombine.high %v3615_v61, %v3647_v43 }
 0x3cc   : > { %v4069_v21 = vcombine.low %v4030_v49, %v4062_v20  ;;  %v3608_v13 = vcombine.high %v3542_v32, %v3558_v28  ;;  %v4184_v44 = vcombine.high %v4118_v15, %v4134_v14  ;;  %v4070_v52 = vcombine.high %v4030_v49, %v4062_v20 }
 0x3cd   : > { %4387 = vrot.lane.b32.xlu0 %v3523_v46, %s4873_s22  ;;  %4357 = vrot.lane.b32.xlu1 %v3657_v10, %s4871_s16  ;;  %v4203_v2 = vcombine.low %v4159_v34, %v4191_v36  ;;  %v3654_v30 = vrot.slane %v3640_v54, %v7769_v42  ;;  %v4204_v60 = vcombine.high %v4159_v34, %v4191_v36 }
 0x3ce   : > { %v3622_v3 = vrot.slane %v3608_v13, %v7769_v42  ;;  %v4152_v7 = vcombine.high %v4086_v53, %v4102_v38  ;;  %v4198_v46 = vrot.slane %v4184_v44, %v7769_v42  ;;  %v7886_v29 = vcombine.low %v7884_v22, %v7885_v8 }
 0x3d0   : > { %v3661_v56 = vcombine.low %v3622_v3, %v3654_v30  ;;  %v4166_v62 = vrot.slane %v4152_v7, %v7769_v42  ;;  %v3662_v50 = vcombine.high %v3622_v3, %v3654_v30 }
 0x3d1   : > { %4391 = vrot.lane.b32.xlu0 %v4067_v26, %s4873_s22  ;;  %4361 = vrot.lane.b32.xlu1 %v4201_v24, %s4871_s16  ;;  %v7889_v26 = vcombine.low %v7887_v48, %v7888_v19  ;;  %s4779_s16 = scalar_lea.vmem %s4778_s15, 1024 }
 0x3d2   : > { %v4205_v28 = vcombine.low %v4166_v62, %v4198_v46  ;;  %v4206_v27 = vcombine.high %v4166_v62, %v4198_v46  ;;  %p4781_p13 = scmp.lt.s32.totalorder %s4779_s16, %s4773_s13 }
 0x3d3   : > { %v4447_v24 = vsel %vm2261_vm1, %v7889_v26, %v4212_v6 }
 0x3d4   : > { %p4782_p2 = por %p4781_p13, %p4780_p6 }
 0x3d5   : > { %4403 = vrot.lane.b32.xlu0 %v3524_v37, %s4874_s23  ;;  %4373 = vrot.lane.b32.xlu1 %v3658_v4, %s4872_s17  ;;  %v7890_v37 = vld [vmem:[#allocation55_spill] sm:$0xff]  ;;  %v7891_v4 = vld [vmem:[#allocation16_spill] sm:$0xff] }
 0x3d6   : > { %v7892_v25 = vcombine.low %v7890_v37, %v7891_v4  ;;  %p4783_p5 = pnand %p4782_p2, %p4776_p0 }
 0x3d9   : > { %4407 = vrot.lane.b32.xlu0 %v4068_v35, %s4874_s23  ;;  %4377 = vrot.lane.b32.xlu1 %v4202_v59, %s4872_s17 }
 0x3db   : > { %v4214_v63 = vpop.permute.xlu1 %4213 }
 0x3dc   : > { %v4448_v47 = vsel %vm2261_vm1, %v7883_v12, %v4214_v63 }
 0x3dd   : > { %4419 = vrot.lane.b32.xlu0 %v3525_v55, %s4875_s24  ;;  %4389 = vrot.lane.b32.xlu1 %v3659_v39, %s4873_s22 }
 0x3e1   : > { %4423 = vrot.lane.b32.xlu0 %v4069_v21, %s4875_s24  ;;  %4393 = vrot.lane.b32.xlu1 %v4203_v2, %s4873_s22 }
 0x3e5   : > { %4435 = vrot.lane.b32.xlu0 %v3526_v51, %s4876_s25  ;;  %4405 = vrot.lane.b32.xlu1 %v3660_v23, %s4874_s23 }
 0x3e9   : > { %4439 = vrot.lane.b32.xlu0 %v4070_v52, %s4876_s25  ;;  %4409 = vrot.lane.b32.xlu1 %v4204_v60, %s4874_s23 }
 0x3eb   : > { %v4216_v10 = vpop.permute.xlu0 %4215 }
 0x3ec   : > { %v4449_v16 = vsel %vm2261_vm1, %v7886_v29, %v4216_v10 }
 0x3ed   : > { %4421 = vrot.lane.b32.xlu1 %v3661_v56, %s4875_s24 }
 0x3ef   : > { %v4228_v33 = vpop.permute.xlu0 %4227 }
 0x3f0   : > { %v4451_v45 = vsel %vm2266_vm2, %v4447_v24, %v4228_v33 }
 0x3f1   : > { %4425 = vrot.lane.b32.xlu1 %v4205_v28, %s4875_s24 }
 0x3f3   : > { %v4232_v11 = vpop.permute.xlu0 %4231 }
 0x3f4   : > { %v4453_v57 = vsel %vm2266_vm2, %v4449_v16, %v4232_v11 }
 0x3f5   : > { %4437 = vrot.lane.b32.xlu1 %v3662_v50, %s4876_s25 }
 0x3f7   : > { %v4244_v42 = vpop.permute.xlu0 %4243 }
 0x3f8   : > { %v4455_v58 = vsel %vm2271_vm3, %v4451_v45, %v4244_v42 }
 0x3f9   : > { %4441 = vrot.lane.b32.xlu1 %v4206_v27, %s4876_s25 }
 0x3fb   : > { %v4218_v32 = vpop.permute.xlu1 %4217  ;;  %v4248_v14 = vpop.permute.xlu0 %4247 }
 0x3fc   : > { %v4450_v31 = vsel %vm2261_vm1, %v7892_v25, %v4218_v32  ;;  %v4457_v15 = vsel %vm2271_vm3, %v4453_v57, %v4248_v14  ;;  %vm7893_vm1 = vcmask 195584  }
 0x3fd   : > { %vm7901_vm14 = vmmov %vm7893_vm1 }
 0x3ff   : > { %v4230_v38 = vpop.permute.xlu1 %4229  ;;  %v4260_v1 = vpop.permute.xlu0 %4259 }
 0x400   : > { %v4452_v53 = vsel %vm2266_vm2, %v4448_v47, %v4230_v38  ;;  %v4459_v43 = vsel %vm2276_vm4, %v4455_v58, %v4260_v1 }
 0x403   : > { %v4234_v18 = vpop.permute.xlu1 %4233  ;;  %v4264_v40 = vpop.permute.xlu0 %4263 }
 0x404   : > { %v4454_v35 = vsel %vm2266_vm2, %v4450_v31, %v4234_v18  ;;  %v4461_v59 = vsel %vm2276_vm4, %v4457_v15, %v4264_v40  ;;  %vm7894_vm2 = vcmask 211968  }
 0x405   : > { %vm7898_vm12 = vmmov %vm7894_vm2 }
 0x406   : > { %vm7902_vm15 = vmmov %vm7894_vm2 }
 0x407   : > { %v4246_v41 = vpop.permute.xlu1 %4245  ;;  %v4276_v61 = vpop.permute.xlu0 %4275 }
 0x408   : > { %v4456_v9 = vsel %vm2271_vm3, %v4452_v53, %v4246_v41  ;;  %v4463_v5 = vsel %vm2281_vm5, %v4459_v43, %v4276_v61 }
 0x40b   : > { %v4250_v20 = vpop.permute.xlu1 %4249  ;;  %v4280_v36 = vpop.permute.xlu0 %4279 }
 0x40c   : > { %v4458_v63 = vsel %vm2271_vm3, %v4454_v35, %v4250_v20  ;;  %v4465_v55 = vsel %vm2281_vm5, %v4461_v59, %v4280_v36  ;;  %vm7895_vm3 = vcmask 228352  }
 0x40d   : > { %vm7899_vm0 = vmmov %vm7895_vm3 }
 0x40f   : > { %v4262_v39 = vpop.permute.xlu1 %4261  ;;  %v4292_v17 = vpop.permute.xlu0 %4291 }
 0x410   : > { %v4460_v0 = vsel %vm2276_vm4, %v4456_v9, %v4262_v39  ;;  %v4467_v50 = vsel %vm2286_vm6, %v4463_v5, %v4292_v17 }
 0x413   : > { %v4266_v12 = vpop.permute.xlu1 %4265  ;;  %v4296_v47 = vpop.permute.xlu0 %4295 }
 0x414   : > { %v4462_v49 = vsel %vm2276_vm4, %v4458_v63, %v4266_v12  ;;  %v4469_v14 = vsel %vm2286_vm6, %v4465_v55, %v4296_v47  ;;  %vm7896_vm4 = vcmask 244736  }
 0x415   : > { %vm7900_vm13 = vmmov %vm7896_vm4 }
 0x417   : > { %v4278_v34 = vpop.permute.xlu1 %4277  ;;  %v4308_v21 = vpop.permute.xlu0 %4307 }
 0x418   : > { %v4464_v2 = vsel %vm2281_vm5, %v4460_v0, %v4278_v34  ;;  %v4471_v27 = vsel %vm2291_vm7, %v4467_v50, %v4308_v21 }
 0x41b   : > { %v4282_v54 = vpop.permute.xlu1 %4281  ;;  %v4312_v51 = vpop.permute.xlu0 %4311 }
 0x41c   : > { %v4466_v23 = vsel %vm2281_vm5, %v4462_v49, %v4282_v54  ;;  %v4473_v31 = vsel %vm2291_vm7, %v4469_v14, %v4312_v51  ;;  %vm7897_vm5 = vmmov %vm7893_vm1 }
 0x41f   : > { %v4294_v13 = vpop.permute.xlu1 %4293  ;;  %v4324_v30 = vpop.permute.xlu0 %4323 }
 0x420   : > { %v4475_v58 = vsel %vm2296_vm8, %v4471_v27, %v4324_v30  ;;  %v4468_v39 = vsel %vm2286_vm6, %v4464_v2, %v4294_v13 }
 0x423   : > { %v4298_v6 = vpop.permute.xlu1 %4297  ;;  %v4328_v44 = vpop.permute.xlu0 %4327 }
 0x424   : > { %v4477_v38 = vsel %vm2296_vm8, %v4473_v31, %v4328_v44  ;;  %v4470_v49 = vsel %vm2286_vm6, %v4466_v23, %v4298_v6  ;;  %vm7904_vm6 = vmmov %vm7896_vm4 }
 0x427   : > { %v4310_v52 = vpop.permute.xlu1 %4309  ;;  %v4340_v60 = vpop.permute.xlu0 %4339 }
 0x428   : > { %v4479_v32 = vsel %vm2301_vm9, %v4475_v58, %v4340_v60  ;;  %v4472_v0 = vsel %vm2291_vm7, %v4468_v39, %v4310_v52 }
 0x42b   : > { %v4314_v3 = vpop.permute.xlu1 %4313  ;;  %v4344_v7 = vpop.permute.xlu0 %4343 }
 0x42c   : > { %v4481_v53 = vsel %vm2301_vm9, %v4477_v38, %v4344_v7  ;;  %v4474_v54 = vsel %vm2291_vm7, %v4470_v49, %v4314_v3  ;;  %vm7905_vm7 = vmmov %vm7897_vm5 }
 0x42f   : > { %v4326_v46 = vpop.permute.xlu1 %4325  ;;  %v4356_v10 = vpop.permute.xlu0 %4355 }
 0x430   : > { %v4483_v37 = vsel %vm2306_vm10, %v4479_v32, %v4356_v10  ;;  %v4476_v12 = vsel %vm2296_vm8, %v4472_v0, %v4326_v46 }
 0x433   : > { %v4330_v56 = vpop.permute.xlu1 %4329  ;;  %v4360_v22 = vpop.permute.xlu0 %4359 }
 0x434   : > { %v4485_v18 = vsel %vm2306_vm10, %v4481_v53, %v4360_v22  ;;  %v4478_v30 = vsel %vm2296_vm8, %v4474_v54, %v4330_v56  ;;  %vm7906_vm8 = vmmov %vm7894_vm2 }
 0x437   : > { %v4342_v8 = vpop.permute.xlu1 %4341  ;;  %v4372_v29 = vpop.permute.xlu0 %4371 }
 0x438   : > { %v4487_v15 = vsel %vm2311_vm11, %v4483_v37, %v4372_v29  ;;  %v4480_v47 = vsel %vm2301_vm9, %v4476_v12, %v4342_v8 }
 0x43b   : > { %v4346_v16 = vpop.permute.xlu1 %4345  ;;  %v4376_v62 = vpop.permute.xlu0 %4375 }
 0x43c   : > { %v4489_v41 = vsel %vm2311_vm11, %v4485_v18, %v4376_v62  ;;  %v4482_v13 = vsel %vm2301_vm9, %v4478_v30, %v4346_v16  ;;  %vm7907_vm9 = vmmov %vm7899_vm0 }
 0x43f   : > { %v4358_v48 = vpop.permute.xlu1 %4357  ;;  %v4388_v19 = vpop.permute.xlu0 %4387 }
 0x440   : > { %v4491_v1 = vsel %vm7893_vm1, %v4487_v15, %v4388_v19  ;;  %v4484_v34 = vsel %vm2306_vm10, %v4480_v47, %v4358_v48  ;;  %vm7903_vm1 = vmmov %vm7899_vm0 }
 0x443   : > { %v4362_v26 = vpop.permute.xlu1 %4361  ;;  %v4392_v24 = vpop.permute.xlu0 %4391 }
 0x444   : > { %v4493_v9 = vsel %vm7897_vm5, %v4489_v41, %v4392_v24  ;;  %v4486_v52 = vsel %vm2306_vm10, %v4482_v13, %v4362_v26  ;;  %vm7908_vm10 = vmmov %vm7896_vm4 }
 0x447   : > { %v4374_v33 = vpop.permute.xlu1 %4373  ;;  %v4404_v28 = vpop.permute.xlu0 %4403 }
 0x448   : > { %v4495_v43 = vsel %vm7894_vm2, %v4491_v1, %v4404_v28  ;;  %v4488_v51 = vsel %vm2311_vm11, %v4484_v34, %v4374_v33 }
 0x44b   : > { %v4378_v45 = vpop.permute.xlu1 %4377  ;;  %v4408_v11 = vpop.permute.xlu0 %4407 }
 0x44c   : > { %v4497_v5 = vsel %vm7898_vm12, %v4493_v9, %v4408_v11  ;;  %v4490_v60 = vsel %vm2311_vm11, %v4486_v52, %v4378_v45  ;;  %vm4523_vm11 = vcmask 523520  }
 0x44f   : > { %v4390_v57 = vpop.permute.xlu1 %4389  ;;  %v4420_v42 = vpop.permute.xlu0 %4419 }
 0x450   : > { %v4499_v40 = vsel %vm7895_vm3, %v4495_v43, %v4420_v42  ;;  %v4492_v2 = vsel %vm7901_vm14, %v4488_v51, %v4390_v57 }
 0x453   : > { %v4394_v4 = vpop.permute.xlu1 %4393  ;;  %v4424_v25 = vpop.permute.xlu0 %4423 }
 0x454   : > { %v4501_v20 = vsel %vm7899_vm0, %v4497_v5, %v4424_v25  ;;  %v4494_v7 = vsel %vm7905_vm7, %v4490_v60, %v4394_v4 }
 0x457   : > { %v4406_v35 = vpop.permute.xlu1 %4405  ;;  %v4436_v59 = vpop.permute.xlu0 %4435 }
 0x458   : > { %v4503_v61 = vsel %vm7896_vm4, %v4499_v40, %v4436_v59  ;;  %v4496_v44 = vsel %vm7902_vm15, %v4492_v2, %v4406_v35 }
 0x459   : > { %4511 = vrot.lane.b32.xlu0 %v4503_v61, %s4877_s4 }
 0x45b   : > { %v4410_v36 = vpop.permute.xlu1 %4409  ;;  %v4440_v63 = vpop.permute.xlu0 %4439 }
 0x45c   : > { %v4505_v55 = vsel %vm7900_vm13, %v4501_v20, %v4440_v63  ;;  %v4498_v46 = vsel %vm7906_vm8, %v4494_v7, %v4410_v36 }
 0x45d   : > { %4515 = vrot.lane.b32.xlu0 %v4505_v55, %s4877_s4 }
 0x45f   : > { %v4422_v17 = vpop.permute.xlu1 %4421 }
 0x460   : > { %v4500_v23 = vsel %vm7903_vm1, %v4496_v44, %v4422_v17 }
 0x463   : > { %v4426_v21 = vpop.permute.xlu1 %4425 }
 0x464   : > { %v4502_v10 = vsel %vm7907_vm9, %v4498_v46, %v4426_v21 }
 0x467   : > { %v4438_v6 = vpop.permute.xlu1 %4437 }
 0x468   : > { %v4504_v3 = vsel %vm7904_vm6, %v4500_v23, %v4438_v6 }
 0x469   : > { %4513 = vrot.lane.b32.xlu1 %v4504_v3, %s4877_s4 }
 0x46b   : > { %v4442_v56 = vpop.permute.xlu1 %4441 }
 0x46c   : > { %v4506_v22 = vsel %vm7908_vm10, %v4502_v10, %v4442_v56 }
 0x46d   : > { %4517 = vrot.lane.b32.xlu1 %v4506_v22, %s4877_s4 }
 0x4cb   : > { %v4512_v8 = vpop.permute.xlu0 %4511 }
 0x4cc   : > { %4524 = vst.msk [vmem:[%s6237_s3] sm:$0xff] %vm4523_vm11, %v4512_v8 }
 0x4cf   : > { %v4516_v29 = vpop.permute.xlu0 %4515 }
 0x4d0   : > { %4526 = vst.msk [vmem:[%s6237_s3 + $0x10] sm:$0xff] %vm4523_vm11, %v4516_v29 }
 0x4db   : > { %v4514_v16 = vpop.permute.xlu1 %4513 }
 0x4dc   : > { %4525 = vst.msk [vmem:[%s6237_s3 + $0x8] sm:$0xff] %vm4523_vm11, %v4514_v16 }
 0x4df   : > { %v4518_v62 = vpop.permute.xlu1 %4517 }
 0x4e0   : > { %4527 = vst.msk [vmem:[%s6237_s3 + $0x18] sm:$0xff] %vm4523_vm11, %v4518_v62 }
 0x4e1   : > { %4786 = shalt.err (!%p4783_p5)
}
 0x4e2   : > { %s4787_s17 = scalar_lea.hbm %s7484_s5, 512  ;;  %s4791_s24 = scalar_lea.hbm %s7538_s1, 1024 }
 0x4e3   : > { %p4788_p4 = scmp.ne.s32.totalorder %s7484_s5, %s4787_s17  ;;  %p4792_p12 = scmp.lt.u32.totalorder %s7484_s5, %s7538_s1 }
 0x4e4   : > { %p4793_p1 = scmp.lt.u32.totalorder %s4791_s24, %s4787_s17  ;;  %p4795_p8 = scmp.lt.u32.totalorder %s4787_s17, %s7484_s5 }
 0x4e5   : > { %p4789_p7 = pnand %p4788_p4, %p7909_p9 }
 0x4e6   : > { %p4794_p3 = por %p4793_p1, %p4792_p12 }
 0x4e7   : > { %p4790_p10 = pneg %p4789_p7 }
 0x4e8   : > { %p4796_p11 = por %p4795_p8, %p4794_p3 }
 0x4ea   : > { %p4797_p0 = pnand %p4796_p11, %p4790_p10 }
 0x4ec   : > { %4800 = shalt.err (!%p4797_p0)
}
 0x4ed   : > { %s4879_s3 = smov 128  }
 0x4ee   : > { %4662 = dma.vmem_to_hbm [thread:$0]  (%p7909_p9), %s7486_s27, 512, %s7484_s5, %s4529_s12, %s4879_s3, %s4879_s3, %s4865_s30  }
 0x4ef PF: > { %s4559_s4 = sand.u32 1, %s4835_s6   ;;  %p7910_p6 = scmp.ne.s32.totalorder %s7594_s21, 0 }
 0x4f0   : > { %p7911_p13 = scmp.ge.s32.totalorder %s4855_s11, 2  ;;  %s4560_s18 = scalar_lea.sflag [#allocation4], %s4559_s4 }
 0x4f2   : > { %p4669_p2 = pnand %p7911_p13, %p7910_p6 }
 0x4f4   : > { %4830 = dma.done.wait (!%p4669_p2), %s4560_s18, 512  }
 0x4f5   : > { %4832 = vsyncadd (!%p4669_p2), %s4560_s18, 4294966784  ;;  %s17_s11 = sadd.s32 1, %s4855_s11   ;;  %s7912_s6 = smov %s4839_s7 }
 0x4f6   : > { %p14_p5 = scmp.ge.s32.totalorder %s17_s11, 4   ;;  %s7913_s7 = smov %s4843_s8 }
 0x4f7   : > { %s7914_s8 = smov %s4946_s20  ;;  %s7915_s9 = smov %s4851_s10 }
 0x4f8   : > { %s7916_s10 = smov %s7918_s14  ;;  %16 = sbr.rel (!%p14_p5) target bundleno = 6 (0x6), region = 72 }
 0x4ff   :  { %4565 = vsyncpa [#allocation3], 1 }
 0x500   :  { %4567 = vsyncpa [#allocation3 + $0x1], 1 }
 0x501   :  { %4568 = vsyncpa [#allocation4], 1 }
 0x502   :  { %4570 = vsyncpa [#allocation4 + $0x1], 1 }

</bundles_post_ra>
